<compile_context>
chip_gen: v6e
topology: v6e:2x2x1
jax: 0.10.0
libtpu: 0.0.40
codegen_flags: <defaults>
</compile_context>

<pallas_src>
import jax
import jax.numpy as jnp
from jax.experimental import pallas as pl
from jax.experimental.pallas import tpu as pltpu


def _round_up(n, m):
    return ((n + m - 1) // m) * m


def _nbytes(a):
    return int(a.size) * jnp.dtype(a.dtype).itemsize


def _default_epilogue_dtype():
    """bf16 epilogue on chips with a bf16 VPU (v6e/v7x); f32 otherwise (v5e and older)."""
    try:
        kind = jax.devices()[0].device_kind.lower()
    except Exception:
        return jnp.float32
    for old in ("v2", "v3", "v4", "v5"):
        if old in kind:
            return jnp.float32
    return jnp.bfloat16


# ----------------------------------------------------------------------------
# Kernel
# ----------------------------------------------------------------------------
def mlp_kernel(x_ref, w1_ref, b1_ref, w2_ref, b2_ref, w3_ref, b3_ref, o_ref):
    # Epilogue dtype (f32 on v5e, bf16 on v6e/v7x) is baked into the bias
    # buffers by prepare_params(); dtype is static at trace time.
    ep = b1_ref.dtype

    # Layer 1: bf16 MXU matmul, f32 accumulation, epilogue in `ep`.
    h1 = jnp.dot(x_ref[...], w1_ref[...], preferred_element_type=jnp.float32)
    h1 = jnp.maximum(h1.astype(ep) + b1_ref[...], 0.0).astype(jnp.bfloat16)

    # Layer 2.
    h2 = jnp.dot(h1, w2_ref[...], preferred_element_type=jnp.float32)
    h2 = jnp.maximum(h2.astype(ep) + b2_ref[...], 0.0).astype(jnp.bfloat16)

    # Layer 3 (output lane dim pre-padded to 128 -> lane-dense stores).
    out = jnp.dot(h2, w3_ref[...], preferred_element_type=jnp.float32)
    o_ref[...] = (out + b3_ref[...]).astype(o_ref.dtype)


# ----------------------------------------------------------------------------
# One-time parameter preparation (hoisted out of the per-call path)
# ----------------------------------------------------------------------------
def prepare_params(params, obs_size, *, epilogue_dtype=None):
    """Pad + cast weights once at init; returns everything the kernel needs."""
    if epilogue_dtype is None:
        epilogue_dtype = _default_epilogue_dtype()
    w1, b1, w2, b2, w3, b3 = params
    hidden = w1.shape[1]
    action = w3.shape[1]

    k_pad = _round_up(obs_size, 128)   # layer-1 K: one full MXU tile
    n_pad = _round_up(action, 128)     # lane-dense output

    w1_p = jnp.pad(w1.astype(jnp.bfloat16), ((0, k_pad - obs_size), (0, 0)))
    w2_p = w2.astype(jnp.bfloat16)
    w3_p = jnp.pad(w3.astype(jnp.bfloat16), ((0, 0), (0, n_pad - action)))

    b1_p = b1.reshape(1, hidden).astype(epilogue_dtype)
    b2_p = b2.reshape(1, hidden).astype(epilogue_dtype)
    b3_p = jnp.pad(b3.reshape(1, action).astype(jnp.float32),
                   ((0, 0), (0, n_pad - action)))

    return dict(w1=w1_p, b1=b1_p, w2=w2_p, b2=b2_p, w3=w3_p, b3=b3_p,
                obs_size=obs_size, action=action, hidden=hidden,
                k_pad=k_pad, n_pad=n_pad)


# ----------------------------------------------------------------------------
# Forward pass (mirrors MLP.forward: x.reshape(-1, obs_size) -> 3-layer MLP)
# ----------------------------------------------------------------------------
def mlp_forward(x, prep, *, tile_b_max=512, out_dtype=jnp.float32):
    obs_size, action, hidden = prep["obs_size"], prep["action"], prep["hidden"]
    k_pad, n_pad = prep["k_pad"], prep["n_pad"]

    x2d = x.reshape(-1, obs_size)
    batch = x2d.shape[0]

    # Batch padding: sublane multiple only (16 covers bf16 packing, f32's 8).
    SUB = 16
    b_min = _round_up(batch, SUB)
    tile_b = min(tile_b_max, b_min)
    if b_min >= 256:
        # Ensure >=2 grid steps so the "parallel" batch axis can be split
        # across both TensorCores on v7x.
        tile_b = min(tile_b, _round_up(pl.cdiv(b_min, 2), SUB))
    b_pad = _round_up(b_min, tile_b)
    grid = (b_pad // tile_b,)

    # Per-call host prep: a single pad + cast of the activations.
    x_p = jnp.pad(x2d.astype(jnp.bfloat16),
                  ((0, b_pad - batch), (0, k_pad - obs_size)))

    out_itemsize = jnp.dtype(out_dtype).itemsize
    weight_bytes = _nbytes(prep["w1"]) + _nbytes(prep["w2"]) + _nbytes(prep["w3"])
    bias_bytes = _nbytes(prep["b1"]) + _nbytes(prep["b2"]) + _nbytes(prep["b3"])

    flops = 2 * b_pad * (k_pad * hidden + hidden * hidden + hidden * n_pad)
    bytes_accessed = (b_pad * k_pad * 2 + weight_bytes + bias_bytes
                      + b_pad * n_pad * out_itemsize)

    # VMEM estimate: double-buffered x/out tiles + (double-buffered) resident
    # weights + f32 intermediates; clamp well below the 64 MiB v7x per-TC VMEM.
    vmem_est = (2 * weight_bytes + 2 * bias_bytes
                + 2 * tile_b * k_pad * 2
                + 2 * tile_b * n_pad * out_itemsize
                + 4 * tile_b * hidden * 4)
    vmem_limit = int(min(48 * 2**20, max(16 * 2**20, int(1.5 * vmem_est))))

    out_p = pl.pallas_call(
        mlp_kernel,
        out_shape=jax.ShapeDtypeStruct((b_pad, n_pad), out_dtype),
        grid=grid,
        in_specs=[
            pl.BlockSpec((tile_b, k_pad), lambda i: (i, 0)),    # x: batch-tiled
            pl.BlockSpec((k_pad, hidden), lambda i: (0, 0)),    # w1: resident
            pl.BlockSpec((1, hidden), lambda i: (0, 0)),        # b1: resident
            pl.BlockSpec((hidden, hidden), lambda i: (0, 0)),   # w2: resident
            pl.BlockSpec((1, hidden), lambda i: (0, 0)),        # b2: resident
            pl.BlockSpec((hidden, n_pad), lambda i: (0, 0)),    # w3: resident
            pl.BlockSpec((1, n_pad), lambda i: (0, 0)),         # b3: resident
        ],
        out_specs=pl.BlockSpec((tile_b, n_pad), lambda i: (i, 0)),
        compiler_params=pltpu.CompilerParams(
            dimension_semantics=("parallel",),      # megacore split on v7x
            vmem_limit_bytes=vmem_limit,
        ),
        cost_estimate=pl.CostEstimate(
            flops=flops, transcendentals=0, bytes_accessed=bytes_accessed),
    )(x_p, prep["w1"], prep["b1"], prep["w2"], prep["b2"],
      prep["w3"], prep["b3"])

    # TODO(synk): for tight RL rollout loops, hide the per-call ~2.5 MiB weight
    # HBM->VMEM reload via cross-pallas_call prefetch or a persistent kernel.

    # Drop batch / lane padding.
    return out_p[:batch, :action]


# ----------------------------------------------------------------------------
# Params + reference
# ----------------------------------------------------------------------------
def init_params(key, obs_size, action_size, hidden_size):
    """Deterministic synthetic init (PyTorch-Linear-like uniform bounds)."""
    ks = jax.random.split(key, 6)

    def linear(kw, kb, fan_in, fan_out):
        bound = 1.0 / jnp.sqrt(fan_in)
        w = jax.random.uniform(kw, (fan_in, fan_out), jnp.float32, -bound, bound)
        b = jax.random.uniform(kb, (1, fan_out), jnp.float32, -bound, bound)
        return w, b

    w1, b1 = linear(ks[0], ks[1], obs_size, hidden_size)
    w2, b2 = linear(ks[2], ks[3], hidden_size, hidden_size)
    w3, b3 = linear(ks[4], ks[5], hidden_size, action_size)
    return (w1, b1, w2, b2, w3, b3)


def ref_forward(x2d, params, epilogue_dtype):
    """Pure-JAX reference on the same bf16-weight / f32-accumulate path.

    Note: bf16 weights/activations (and optionally a bf16 epilogue) are an
    intentional precision trade-off vs. the f32 PyTorch module.
    """
    w1, b1, w2, b2, w3, b3 = params

    def hidden_layer(h, w, b):
        y = jnp.dot(h.astype(jnp.bfloat16), w.astype(jnp.bfloat16),
                    preferred_element_type=jnp.float32)
        y = jnp.maximum(y.astype(epilogue_dtype) + b.astype(epilogue_dtype), 0.0)
        return y.astype(jnp.bfloat16)

    h = hidden_layer(x2d, w1, b1)
    h = hidden_layer(h, w2, b2)
    return jnp.dot(h, w3.astype(jnp.bfloat16),
                   preferred_element_type=jnp.float32) + b3.astype(jnp.float32)


if __name__ == "__main__":
    key = jax.random.PRNGKey(0)
    k_x, k_p = jax.random.split(key)

    # Small demo shapes: obs in NCHW-like form (2, 4, 4, 4) -> obs_size = 64.
    batch, C, H, W = 2, 4, 4, 4
    obs_size = C * H * W          # 64
    hidden_size = 1024            # module default
    action_size = 8

    x = jax.random.normal(k_x, (batch, C, H, W), jnp.float32)
    params = init_params(k_p, obs_size, action_size, hidden_size)

    epilogue_dtype = _default_epilogue_dtype()
    prep = prepare_params(params, obs_size, epilogue_dtype=epilogue_dtype)

    out = mlp_forward(x, prep)
    out = jax.block_until_ready(out)

    ref = ref_forward(x.reshape(-1, obs_size), params, epilogue_dtype)
    assert out.shape == (batch, action_size)
    err = float(jnp.max(jnp.abs(out.astype(jnp.float32) - ref)))
    assert err < 2e-3, err

    # TODO(synk): MLP.sample_action (epsilon-greedy argmax) is host-side
    # control logic and is intentionally left outside the kernel.
    print("KERNEL_OK")
</pallas_src>

<mosaic_0001>
module attributes {stable_mosaic.version = 11 : i64} {
  func.func @mlp_kernel(%arg0: i32, %arg1: memref<16x128xbf16, #tpu.memory_space<vmem>>, %arg2: memref<128x1024xbf16, #tpu.memory_space<vmem>>, %arg3: memref<1x1024xbf16, #tpu.memory_space<vmem>>, %arg4: memref<1024x1024xbf16, #tpu.memory_space<vmem>>, %arg5: memref<1x1024xbf16, #tpu.memory_space<vmem>>, %arg6: memref<1024x128xbf16, #tpu.memory_space<vmem>>, %arg7: memref<1x128xf32, #tpu.memory_space<vmem>>, %arg8: memref<16x128xf32, #tpu.memory_space<vmem>>) attributes {dimension_semantics = [#tpu.dimension_semantics<parallel>], iteration_bounds = array<i64: 1>, scalar_prefetch = 0 : i64, scratch_operands = 0 : i64, tpu.core_type = #tpu.core_type<tc>, window_params = [{transform_indices = @transform_0, window_bounds = array<i64: 16, 128>}, {pipeline_mode = #tpu.pipeline_mode<synchronous>, transform_indices = @transform_1, window_bounds = array<i64: 128, 1024>}, {pipeline_mode = #tpu.pipeline_mode<synchronous>, transform_indices = @transform_2, window_bounds = array<i64: 1, 1024>}, {pipeline_mode = #tpu.pipeline_mode<synchronous>, transform_indices = @transform_3, window_bounds = array<i64: 1024, 1024>}, {pipeline_mode = #tpu.pipeline_mode<synchronous>, transform_indices = @transform_4, window_bounds = array<i64: 1, 1024>}, {pipeline_mode = #tpu.pipeline_mode<synchronous>, transform_indices = @transform_5, window_bounds = array<i64: 1024, 128>}, {pipeline_mode = #tpu.pipeline_mode<synchronous>, transform_indices = @transform_6, window_bounds = array<i64: 1, 128>}, {transform_indices = @transform_7, window_bounds = array<i64: 16, 128>}]} {
    %c0 = arith.constant 0 : index
    %c0_0 = arith.constant 0 : index
    %0 = vector.load %arg1[%c0, %c0_0] : memref<16x128xbf16, #tpu.memory_space<vmem>>, vector<16x128xbf16>
    %c0_1 = arith.constant 0 : index
    %c0_2 = arith.constant 0 : index
    %1 = vector.load %arg2[%c0_1, %c0_2] : memref<128x1024xbf16, #tpu.memory_space<vmem>>, vector<128x1024xbf16>
    %cst = arith.constant dense<0.000000e+00> : vector<16x1024xf32>
    %2 = tpu.matmul %0, %1, %cst {dimension_numbers = #tpu.dot_dimension_numbers<[1], [0], [0], [1], [0, 0, 1, 1], [], []>} : vector<16x128xbf16>, vector<128x1024xbf16>, vector<16x1024xf32> -> vector<16x1024xf32>
    %3 = arith.truncf %2 : vector<16x1024xf32> to vector<16x1024xbf16>
    %c0_3 = arith.constant 0 : index
    %c0_4 = arith.constant 0 : index
    %4 = vector.load %arg3[%c0_3, %c0_4] : memref<1x1024xbf16, #tpu.memory_space<vmem>>, vector<1x1024xbf16>
    %5 = vector.broadcast %4 : vector<1x1024xbf16> to vector<16x1024xbf16>
    %6 = arith.addf %3, %5 : vector<16x1024xbf16>
    %cst_5 = arith.constant 0.000000e+00 : bf16
    %7 = vector.broadcast %cst_5 : bf16 to vector<16x1024xbf16>
    %8 = arith.maximumf %6, %7 : vector<16x1024xbf16>
    %c0_6 = arith.constant 0 : index
    %c0_7 = arith.constant 0 : index
    %9 = vector.load %arg4[%c0_6, %c0_7] : memref<1024x1024xbf16, #tpu.memory_space<vmem>>, vector<1024x1024xbf16>
    %cst_8 = arith.constant dense<0.000000e+00> : vector<16x1024xf32>
    %10 = tpu.matmul %8, %9, %cst_8 {dimension_numbers = #tpu.dot_dimension_numbers<[1], [0], [0], [1], [0, 0, 1, 1], [], []>} : vector<16x1024xbf16>, vector<1024x1024xbf16>, vector<16x1024xf32> -> vector<16x1024xf32>
    %11 = arith.truncf %10 : vector<16x1024xf32> to vector<16x1024xbf16>
    %c0_9 = arith.constant 0 : index
    %c0_10 = arith.constant 0 : index
    %12 = vector.load %arg5[%c0_9, %c0_10] : memref<1x1024xbf16, #tpu.memory_space<vmem>>, vector<1x1024xbf16>
    %13 = vector.broadcast %12 : vector<1x1024xbf16> to vector<16x1024xbf16>
    %14 = arith.addf %11, %13 : vector<16x1024xbf16>
    %cst_11 = arith.constant 0.000000e+00 : bf16
    %15 = vector.broadcast %cst_11 : bf16 to vector<16x1024xbf16>
    %16 = arith.maximumf %14, %15 : vector<16x1024xbf16>
    %c0_12 = arith.constant 0 : index
    %c0_13 = arith.constant 0 : index
    %17 = vector.load %arg6[%c0_12, %c0_13] : memref<1024x128xbf16, #tpu.memory_space<vmem>>, vector<1024x128xbf16>
    %cst_14 = arith.constant dense<0.000000e+00> : vector<16x128xf32>
    %18 = tpu.matmul %16, %17, %cst_14 {dimension_numbers = #tpu.dot_dimension_numbers<[1], [0], [0], [1], [0, 0, 1, 1], [], []>} : vector<16x1024xbf16>, vector<1024x128xbf16>, vector<16x128xf32> -> vector<16x128xf32>
    %c0_15 = arith.constant 0 : index
    %c0_16 = arith.constant 0 : index
    %19 = vector.load %arg7[%c0_15, %c0_16] : memref<1x128xf32, #tpu.memory_space<vmem>>, vector<1x128xf32>
    %20 = vector.broadcast %19 : vector<1x128xf32> to vector<16x128xf32>
    %21 = arith.addf %18, %20 : vector<16x128xf32>
    %c0_17 = arith.constant 0 : index
    %c0_18 = arith.constant 0 : index
    %22 = vector.load %arg8[%c0_17, %c0_18] : memref<16x128xf32, #tpu.memory_space<vmem>>, vector<16x128xf32>
    tpu.vector_store %arg8[%c0_17, %c0_18], %21 {strides = array<i32>} : memref<16x128xf32, #tpu.memory_space<vmem>>, vector<16x128xf32>,
    return
  }
  func.func @transform_0(%arg0: i32) -> (i32, i32) {
    %c0_i32 = arith.constant 0 : i32
    %c0_i32_0 = arith.constant 0 : i32
    return %arg0, %c0_i32 : i32, i32
  }
  func.func @transform_1(%arg0: i32) -> (i32, i32) {
    %c0_i32 = arith.constant 0 : i32
    %c0_i32_0 = arith.constant 0 : i32
    %c0_i32_1 = arith.constant 0 : i32
    return %c0_i32, %c0_i32_0 : i32, i32
  }
  func.func @transform_2(%arg0: i32) -> (i32, i32) {
    %c0_i32 = arith.constant 0 : i32
    %c0_i32_0 = arith.constant 0 : i32
    %c0_i32_1 = arith.constant 0 : i32
    return %c0_i32, %c0_i32_0 : i32, i32
  }
  func.func @transform_3(%arg0: i32) -> (i32, i32) {
    %c0_i32 = arith.constant 0 : i32
    %c0_i32_0 = arith.constant 0 : i32
    %c0_i32_1 = arith.constant 0 : i32
    return %c0_i32, %c0_i32_0 : i32, i32
  }
  func.func @transform_4(%arg0: i32) -> (i32, i32) {
    %c0_i32 = arith.constant 0 : i32
    %c0_i32_0 = arith.constant 0 : i32
    %c0_i32_1 = arith.constant 0 : i32
    return %c0_i32, %c0_i32_0 : i32, i32
  }
  func.func @transform_5(%arg0: i32) -> (i32, i32) {
    %c0_i32 = arith.constant 0 : i32
    %c0_i32_0 = arith.constant 0 : i32
    %c0_i32_1 = arith.constant 0 : i32
    return %c0_i32, %c0_i32_0 : i32, i32
  }
  func.func @transform_6(%arg0: i32) -> (i32, i32) {
    %c0_i32 = arith.constant 0 : i32
    %c0_i32_0 = arith.constant 0 : i32
    %c0_i32_1 = arith.constant 0 : i32
    return %c0_i32, %c0_i32_0 : i32, i32
  }
  func.func @transform_7(%arg0: i32) -> (i32, i32) {
    %c0_i32 = arith.constant 0 : i32
    %c0_i32_0 = arith.constant 0 : i32
    return %arg0, %c0_i32 : i32, i32
  }
}

</mosaic_0001>

<bundles_post_ra>
// kernel: tpu_custom_call.1
= control target key start
LH: loop header
LB: loop body
LE: loop exit
PB: predicated region body
PF: predicated region fallthrough
CT: control target
= control target key end

     0   :  { %12 = vsyncpa [#allocation3], 0  ;;  %s6709_s0 = inlined_call_operand.hbm [shape: bf16[16,128], index: 0, kind: input, shape index: {}]   ;;  %s6710_s1 = inlined_call_operand.hbm [shape: bf16[128,1024], index: 1, kind: input, shape index: {}]   ;;  %s6711_s2 = inlined_call_operand.hbm [shape: bf16[1,1024], index: 2, kind: input, shape index: {}]   ;;  %s6712_s3 = inlined_call_operand.hbm [shape: bf16[1024,1024], index: 3, kind: input, shape index: {}]   ;;  %s6713_s4 = inlined_call_operand.hbm [shape: bf16[1,1024], index: 4, kind: input, shape index: {}]   ;;  %s6714_s5 = inlined_call_operand.hbm [shape: bf16[1024,128], index: 5, kind: input, shape index: {}]   ;;  %s6715_s6 = inlined_call_operand.hbm [shape: f32[1,128], index: 6, kind: input, shape index: {}]   ;;  %s6716_s7 = inlined_call_operand.hbm [shape: f32[16,128], index: 7, kind: output, shape index: {}]  }
   0x1   :  { %13 = vsyncpa [#allocation6], 0 }
   0x2   :  { %14 = vsyncpa [#allocation9], 0 }
   0x3   :  { %15 = vsyncpa [#allocation12], 0 }
   0x4   :  { %16 = vsyncpa [#allocation4], 0  ;;  %s6391_s24 = smov [#allocation5]  }
   0x5   :  { %s34_s25 = sshll.u32 %s6391_s24, 4  ;;  %s35_s25 = int_to_ptr.vmem [resolvable:$true] %s34_s25 }
   0x6   :  { %s6229_s26 = scalar_lea.vmem %s35_s25, 8192  ;;  %p6234_p1 = scmp.lt.s32.totalorder %s35_s25, %s35_s25 }
   0x7   :  { %p6230_p0 = scmp.ne.s32.totalorder %s35_s25, %s6229_s26  ;;  %p6235_p2 = scmp.lt.s32.totalorder %s6229_s26, %s6229_s26 }
   0x9   :  { %p6236_p3 = por %p6235_p2, %p6234_p1 }
   0xb   :  { %p6237_p4 = pnand %p6236_p3, %p6230_p0 }
   0xd   :  { %6240 = shalt.err (!%p6237_p4)
}
   0xe   :  { %s6392_s27 = smov 512   ;;  %s6393_s28 = smov 32  }
   0xf   :  { %40 = dma.hbm_to_vmem [thread:$0]  %s6710_s1, 8192, %s35_s25, [#allocation6], %s6392_s27, %s6392_s27, %s6393_s28  }
  0x10   :  { %s6394_s8 = smov [#allocation8]  }
  0x11   :  { %s56_s9 = sshll.u32 %s6394_s8, 4  ;;  %s57_s9 = int_to_ptr.vmem [resolvable:$true] %s56_s9 }
  0x12   :  { %s6249_s10 = scalar_lea.vmem %s57_s9, 65536  ;;  %p6254_p6 = scmp.lt.s32.totalorder %s57_s9, %s57_s9 }
  0x13   :  { %p6250_p5 = scmp.ne.s32.totalorder %s57_s9, %s6249_s10  ;;  %p6255_p7 = scmp.lt.s32.totalorder %s6249_s10, %s6249_s10 }
  0x15   :  { %p6256_p8 = por %p6255_p7, %p6254_p6 }
  0x17   :  { %p6257_p9 = pnand %p6256_p8, %p6250_p5 }
  0x19   :  { %6260 = shalt.err (!%p6257_p9)
}
  0x1a   :  { %62 = dma.hbm_to_vmem [thread:$0]  %s6712_s3, 65536, %s57_s9, [#allocation9], %s6392_s27, %s6392_s27, %s6393_s28  }
  0x1b   :  { %s6395_s13 = smov [#allocation11]   ;;  %s6396_s15 = smov [#allocation2]  }
  0x1c   :  { %s78_s14 = sshll.u32 %s6395_s13, 4  ;;  %s22_s16 = sshll.u32 %s6396_s15, 4  ;;  %s79_s14 = int_to_ptr.vmem [resolvable:$true] %s78_s14  ;;  %s23_s16 = int_to_ptr.vmem [resolvable:$true] %s22_s16 }
  0x1d   :  { %s6269_s1 = scalar_lea.vmem %s79_s14, 8192  ;;  %p6274_p11 = scmp.lt.s32.totalorder %s79_s14, %s79_s14 }
  0x1e   :  { %p6270_p10 = scmp.ne.s32.totalorder %s79_s14, %s6269_s1  ;;  %p6275_p12 = scmp.lt.s32.totalorder %s6269_s1, %s6269_s1 }
  0x20   :  { %p6276_p13 = por %p6275_p12, %p6274_p11 }
  0x22   :  { %p6277_p0 = pnand %p6276_p13, %p6270_p10 }
  0x24   :  { %6280 = shalt.err (!%p6277_p0)
}
  0x25   :  { %s6397_s17 = smov 64   ;;  %s6398_s18 = smov 4  }
  0x26   :  { %84 = dma.hbm_to_vmem [thread:$0]  %s6714_s5, 8192, %s79_s14, [#allocation12], %s6397_s17, %s6397_s17, %s6398_s18  }
  0x27   :  { %s6289_s3 = scalar_lea.vmem %s23_s16, 128  ;;  %p6294_p2 = scmp.lt.s32.totalorder %s23_s16, %s23_s16 }
  0x28   :  { %p6290_p1 = scmp.ne.s32.totalorder %s23_s16, %s6289_s3  ;;  %p6295_p3 = scmp.lt.s32.totalorder %s6289_s3, %s6289_s3 }
  0x2a   :  { %p6296_p4 = por %p6295_p3, %p6294_p2 }
  0x2c   :  { %p6297_p5 = pnand %p6296_p4, %p6290_p1 }
  0x2e   :  { %6300 = shalt.err (!%p6297_p5)
}
  0x2f   :  { %28 = dma.hbm_to_vmem [thread:$0]  %s6709_s0, 128, %s23_s16, [#allocation3], %s6397_s17, %s6397_s17, %s6398_s18  }
  0x30   :  { %s6399_s23 = smov [#allocation7]   ;;  %s6400_s25 = smov [#allocation10]  }
  0x31   :  { %s47_s24 = sshll.u32 %s6399_s23, 4  ;;  %s69_s26 = sshll.u32 %s6400_s25, 4  ;;  %s48_s24 = int_to_ptr.vmem [resolvable:$true] %s47_s24  ;;  %s70_s26 = int_to_ptr.vmem [resolvable:$true] %s69_s26 }
  0x32   :  { %s6309_s27 = scalar_lea.vmem %s48_s24, 128  ;;  %p6314_p7 = scmp.lt.s32.totalorder %s48_s24, %s48_s24 }
  0x33   :  { %p6310_p6 = scmp.ne.s32.totalorder %s48_s24, %s6309_s27  ;;  %p6315_p8 = scmp.lt.s32.totalorder %s6309_s27, %s6309_s27 }
  0x35   :  { %p6316_p9 = por %p6315_p8, %p6314_p7 }
  0x37   :  { %p6317_p10 = pnand %p6316_p9, %p6310_p6 }
  0x39   :  { %6320 = shalt.err (!%p6317_p10)
}
  0x3a   :  { %50 = dma.hbm_to_vmem [thread:$0]  %s6711_s2, 128, %s48_s24, [#allocation6]  }
  0x3b   :  { %s6329_s29 = scalar_lea.vmem %s70_s26, 128  ;;  %p6334_p12 = scmp.lt.s32.totalorder %s70_s26, %s70_s26 }
  0x3c   :  { %p6330_p11 = scmp.ne.s32.totalorder %s70_s26, %s6329_s29  ;;  %p6335_p13 = scmp.lt.s32.totalorder %s6329_s29, %s6329_s29 }
  0x3e   :  { %p6336_p0 = por %p6335_p13, %p6334_p12 }
  0x40   :  { %p6337_p1 = pnand %p6336_p0, %p6330_p11 }
  0x42   :  { %6340 = shalt.err (!%p6337_p1)
}
  0x43   :  { %72 = dma.hbm_to_vmem [thread:$0]  %s6713_s4, 128, %s70_s26, [#allocation9]  }
  0x44   :  { %s6401_s8 = smov [#allocation13]  }
  0x45   :  { %s91_s9 = sshll.u32 %s6401_s8, 4  ;;  %s92_s9 = int_to_ptr.vmem [resolvable:$true] %s91_s9 }
  0x46   :  { %s6349_s10 = scalar_lea.vmem %s92_s9, 16  ;;  %s6353_s11 = scalar_lea.vmem %s92_s9, 32 }
  0x47   :  { %p6350_p2 = scmp.ne.s32.totalorder %s92_s9, %s6349_s10  ;;  %p6354_p3 = scmp.lt.s32.totalorder %s92_s9, %s92_s9 }
  0x48   :  { %p6355_p4 = scmp.lt.s32.totalorder %s6353_s11, %s6349_s10 }
  0x4a   :  { %p6356_p5 = por %p6355_p4, %p6354_p3 }
  0x4c   :  { %p6357_p6 = pnand %p6356_p5, %p6350_p2 }
  0x4e   :  { %6360 = shalt.err (!%p6357_p6)
}
  0x4f   :  { %94 = dma.hbm_to_vmem [thread:$0]  %s6715_s6, 16, %s92_s9, [#allocation12]  }
  0x50   :  { %6381 = dma.done.wait [#allocation3], 128  }
  0x51   :  { %6382 = vsyncadd [#allocation3], 4294967168 }
  0x52   :  { %6383 = dma.done.wait [#allocation6], 8320  }
  0x53   :  { %6384 = vsyncadd [#allocation6], 4294958976 }
  0x54   :  { %6385 = dma.done.wait [#allocation9], 65664  }
  0x55   :  { %6386 = vsyncadd [#allocation9], 4294901632 }
  0x56   :  { %6387 = dma.done.wait [#allocation12], 8208  }
  0x57   :  { %6388 = vsyncadd [#allocation12], 4294959088  ;;  %v6402_v0 = vmov 0   ;;  %v175_v1 = vld [vmem:[#allocation5 + $0x1c0] sm:$0xff]  ;;  %v176_v3 = vld [vmem:[#allocation5 + $0x1c8] sm:$0xff]  ;;  %s6404_s4 = smov [#allocation14]  }
  0x58   :  { %541 = vmatprep.mubr.bf16.mxu0 %v6402_v0  ;;  %584 = vmatprep.mubr.bf16.mxu1 %v6402_v0  ;;  %v179_v2 = vld [vmem:[#allocation5 + $0x1e0] sm:$0xff]  ;;  %v180_v5 = vld [vmem:[#allocation5 + $0x1e8] sm:$0xff]  ;;  %v177_v63 = vld [vmem:[#allocation5 + $0x1d0] sm:$0xff]  ;;  %s5393_s6 = sshll.u32 %s6404_s4, 4  ;;  %s5394_s6 = int_to_ptr.vmem [resolvable:$true] %s5393_s6 }
  0x59   :  { %v5466_v4 = vcombine.high %v175_v1, %v179_v2  ;;  %v5465_v6 = vcombine.low %v175_v1, %v179_v2  ;;  %v167_v7 = vld [vmem:[#allocation5 + $0x180] sm:$0xff]  ;;  %v5468_v9 = vcombine.high %v176_v3, %v180_v5  ;;  %v5467_v10 = vcombine.low %v176_v3, %v180_v5  ;;  %v168_v12 = vld [vmem:[#allocation5 + $0x188] sm:$0xff]  ;;  %v181_v1 = vld [vmem:[#allocation5 + $0x1f0] sm:$0xff]  ;;  %s6361_s13 = scalar_lea.vmem %s5394_s6, 256  ;;  %p6366_p8 = scmp.lt.s32.totalorder %s5394_s6, %s5394_s6 }
  0x5a   :  { %v171_v8 = vld [vmem:[#allocation5 + $0x1a0] sm:$0xff]  ;;  %v172_v13 = vld [vmem:[#allocation5 + $0x1a8] sm:$0xff]  ;;  %v178_v2 = vld [vmem:[#allocation5 + $0x1d8] sm:$0xff]  ;;  %p6362_p7 = scmp.ne.s32.totalorder %s5394_s6, %s6361_s13  ;;  %p6367_p9 = scmp.lt.s32.totalorder %s6361_s13, %s6361_s13 }
  0x5b   :  { %v5458_v11 = vcombine.high %v167_v7, %v171_v8  ;;  %v159_v14 = vld [vmem:[#allocation5 + $0x140] sm:$0xff]  ;;  %509 = vmatprep.subr.bf16.mxu0 %v5466_v4  ;;  %v5460_v15 = vcombine.high %v168_v12, %v172_v13  ;;  %v160_v17 = vld [vmem:[#allocation5 + $0x148] sm:$0xff]  ;;  %552 = vmatprep.subr.bf16.mxu1 %v5468_v9  ;;  %v5457_v19 = vcombine.low %v167_v7, %v171_v8  ;;  %v182_v3 = vld [vmem:[#allocation5 + $0x1f8] sm:$0xff] }
  0x5c   :  { %v163_v16 = vld [vmem:[#allocation5 + $0x160] sm:$0xff]  ;;  %v164_v18 = vld [vmem:[#allocation5 + $0x168] sm:$0xff]  ;;  %510 = vmatpush1.bf16.msra.mxu0 %v5465_v6  ;;  %553 = vmatpush1.bf16.msra.mxu1 %v5467_v10  ;;  %v5459_v20 = vcombine.low %v168_v12, %v172_v13  ;;  %v5470_v6 = vcombine.high %v177_v63, %v181_v1  ;;  %v5472_v7 = vcombine.high %v178_v2, %v182_v3  ;;  %v169_v8 = vld [vmem:[#allocation5 + $0x190] sm:$0xff]  ;;  %p6368_p10 = por %p6367_p9, %p6366_p8 }
  0x5d   :  { %511 = vmatprep.subr.bf16.mxu0 %v5458_v11  ;;  %v5450_v21 = vcombine.high %v159_v14, %v163_v16  ;;  %554 = vmatprep.subr.bf16.mxu1 %v5460_v15  ;;  %v5452_v22 = vcombine.high %v160_v17, %v164_v18  ;;  %v151_v23 = vld [vmem:[#allocation5 + $0x100] sm:$0xff]  ;;  %v152_v25 = vld [vmem:[#allocation5 + $0x108] sm:$0xff]  ;;  %v5449_v27 = vcombine.low %v159_v14, %v163_v16  ;;  %v173_v9 = vld [vmem:[#allocation5 + $0x1b0] sm:$0xff] }
  0x5e   :  { %v155_v24 = vld [vmem:[#allocation5 + $0x120] sm:$0xff]  ;;  %v156_v26 = vld [vmem:[#allocation5 + $0x128] sm:$0xff]  ;;  %v5451_v28 = vcombine.low %v160_v17, %v164_v18  ;;  %v6470_v10 = vld [vmem:[#allocation2] sm:$0xff]   ;;  %v5469_v13 = vcombine.low %v177_v63, %v181_v1  ;;  %v5471_v14 = vcombine.low %v178_v2, %v182_v3  ;;  %v5462_v15 = vcombine.high %v169_v8, %v173_v9  ;;  %p6369_p11 = pnand %p6368_p10, %p6362_p7 }
  0x5f   :  { %v5442_v29 = vcombine.high %v151_v23, %v155_v24  ;;  %v5444_v30 = vcombine.high %v152_v25, %v156_v26  ;;  %v143_v31 = vld [vmem:[#allocation5 + $0xc0] sm:$0xff]  ;;  %v144_v33 = vld [vmem:[#allocation5 + $0xc8] sm:$0xff]  ;;  %v5441_v35 = vcombine.low %v151_v23, %v155_v24  ;;  %v5443_v36 = vcombine.low %v152_v25, %v156_v26  ;;  %v170_v11 = vld [vmem:[#allocation5 + $0x198] sm:$0xff] }
  0x60   :  { %512 = vmatpush1.bf16.msra.mxu0 %v5457_v19  ;;  %555 = vmatpush1.bf16.msra.mxu1 %v5459_v20  ;;  %v147_v32 = vld [vmem:[#allocation5 + $0xe0] sm:$0xff]  ;;  %v148_v34 = vld [vmem:[#allocation5 + $0xe8] sm:$0xff]  ;;  %v174_v12 = vld [vmem:[#allocation5 + $0x1b8] sm:$0xff] }
  0x61   :  { %513 = vmatprep.subr.bf16.mxu0 %v5450_v21  ;;  %556 = vmatprep.subr.bf16.mxu1 %v5452_v22  ;;  %v5434_v37 = vcombine.high %v143_v31, %v147_v32  ;;  %v5436_v38 = vcombine.high %v144_v33, %v148_v34  ;;  %v135_v39 = vld [vmem:[#allocation5 + $0x80] sm:$0xff]  ;;  %v136_v41 = vld [vmem:[#allocation5 + $0x88] sm:$0xff]  ;;  %v5433_v43 = vcombine.low %v143_v31, %v147_v32  ;;  %v161_v17 = vld [vmem:[#allocation5 + $0x150] sm:$0xff] }
  0x62   :  { %v139_v40 = vld [vmem:[#allocation5 + $0xa0] sm:$0xff]  ;;  %v140_v42 = vld [vmem:[#allocation5 + $0xa8] sm:$0xff]  ;;  %v5435_v44 = vcombine.low %v144_v33, %v148_v34  ;;  %v5464_v16 = vcombine.high %v170_v11, %v174_v12  ;;  %v165_v18 = vld [vmem:[#allocation5 + $0x170] sm:$0xff]  ;;  %v5461_v21 = vcombine.low %v169_v8, %v173_v9  ;;  %v5463_v22 = vcombine.low %v170_v11, %v174_v12 }
  0x63   :  { %v5426_v45 = vcombine.high %v135_v39, %v139_v40  ;;  %v5428_v46 = vcombine.high %v136_v41, %v140_v42  ;;  %v127_v47 = vld [vmem:[#allocation5 + $0x40] sm:$0xff]  ;;  %v128_v49 = vld [vmem:[#allocation5 + $0x48] sm:$0xff]  ;;  %v5425_v51 = vcombine.low %v135_v39, %v139_v40  ;;  %v5427_v52 = vcombine.low %v136_v41, %v140_v42  ;;  %v162_v19 = vld [vmem:[#allocation5 + $0x158] sm:$0xff] }
  0x64   :  { %514 = vmatpush1.bf16.msra.mxu0 %v5449_v27  ;;  %557 = vmatpush1.bf16.msra.mxu1 %v5451_v28  ;;  %v131_v48 = vld [vmem:[#allocation5 + $0x60] sm:$0xff]  ;;  %v132_v50 = vld [vmem:[#allocation5 + $0x68] sm:$0xff]  ;;  %v166_v20 = vld [vmem:[#allocation5 + $0x178] sm:$0xff]  ;;  %v5454_v23 = vcombine.high %v161_v17, %v165_v18 }
  0x65   :  { %515 = vmatprep.subr.bf16.mxu0 %v5442_v29  ;;  %558 = vmatprep.subr.bf16.mxu1 %v5444_v30  ;;  %v5418_v53 = vcombine.high %v127_v47, %v131_v48  ;;  %v5420_v54 = vcombine.high %v128_v49, %v132_v50  ;;  %v119_v55 = vld [vmem:[#allocation5] sm:$0xff]  ;;  %v120_v57 = vld [vmem:[#allocation5 + $0x8] sm:$0xff]  ;;  %v5417_v59 = vcombine.low %v127_v47, %v131_v48  ;;  %v153_v25 = vld [vmem:[#allocation5 + $0x110] sm:$0xff] }
  0x66   :  { %v123_v56 = vld [vmem:[#allocation5 + $0x20] sm:$0xff]  ;;  %v124_v58 = vld [vmem:[#allocation5 + $0x28] sm:$0xff]  ;;  %v5419_v60 = vcombine.low %v128_v49, %v132_v50  ;;  %v5456_v24 = vcombine.high %v162_v19, %v166_v20  ;;  %v157_v26 = vld [vmem:[#allocation5 + $0x130] sm:$0xff]  ;;  %v5453_v29 = vcombine.low %v161_v17, %v165_v18  ;;  %v5455_v32 = vcombine.low %v162_v19, %v166_v20 }
  0x67   :  { %v5410_v61 = vcombine.high %v119_v55, %v123_v56  ;;  %v5412_v62 = vcombine.high %v120_v57, %v124_v58  ;;  %v5409_v4 = vcombine.low %v119_v55, %v123_v56  ;;  %v5411_v5 = vcombine.low %v120_v57, %v124_v58  ;;  %v154_v27 = vld [vmem:[#allocation5 + $0x118] sm:$0xff]  ;;  %v145_v30 = vld [vmem:[#allocation5 + $0xd0] sm:$0xff]  ;;  %v872_v63 = vld [vmem:[#allocation8 + $0x1e0] sm:$0xff] }
  0x68   :  { %516 = vmatpush1.bf16.msra.mxu0 %v5441_v35  ;;  %559 = vmatpush1.bf16.msra.mxu1 %v5443_v36  ;;  %v158_v28 = vld [vmem:[#allocation5 + $0x138] sm:$0xff]  ;;  %v149_v31 = vld [vmem:[#allocation5 + $0xf0] sm:$0xff]  ;;  %v5446_v33 = vcombine.high %v153_v25, %v157_v26  ;;  %v996_v3 = vld [vmem:[#allocation8 + $0x5c0] sm:$0xff] }
  0x69   :  { %517 = vmatprep.subr.bf16.mxu0 %v5434_v37  ;;  %560 = vmatprep.subr.bf16.mxu1 %v5436_v38  ;;  %v146_v34 = vld [vmem:[#allocation5 + $0xd8] sm:$0xff]  ;;  %v5448_v36 = vcombine.high %v154_v27, %v158_v28  ;;  %v5445_v37 = vcombine.low %v153_v25, %v157_v26  ;;  %v137_v38 = vld [vmem:[#allocation5 + $0x90] sm:$0xff]  ;;  %v5447_v40 = vcombine.low %v154_v27, %v158_v28  ;;  %v864_v8 = vld [vmem:[#allocation8 + $0x1a0] sm:$0xff] }
  0x6a   :  { %v150_v35 = vld [vmem:[#allocation5 + $0xf8] sm:$0xff]  ;;  %v141_v39 = vld [vmem:[#allocation5 + $0xb0] sm:$0xff]  ;;  %v5438_v41 = vcombine.high %v145_v30, %v149_v31  ;;  %v988_v12 = vld [vmem:[#allocation8 + $0x580] sm:$0xff] }
  0x6b   :  { %v138_v42 = vld [vmem:[#allocation5 + $0x98] sm:$0xff]  ;;  %v133_v47 = vld [vmem:[#allocation5 + $0x70] sm:$0xff]  ;;  %v5439_v48 = vcombine.low %v146_v34, %v150_v35  ;;  %v5430_v49 = vcombine.high %v137_v38, %v141_v39  ;;  %v856_v17 = vld [vmem:[#allocation8 + $0x160] sm:$0xff] }
  0x6c   :  { %518 = vmatpush1.bf16.msra.mxu0 %v5433_v43  ;;  %561 = vmatpush1.bf16.msra.mxu1 %v5435_v44  ;;  %v142_v43 = vld [vmem:[#allocation5 + $0xb8] sm:$0xff]  ;;  %v5440_v44 = vcombine.high %v146_v34, %v150_v35  ;;  %v125_v55 = vld [vmem:[#allocation5 + $0x30] sm:$0xff]  ;;  %v980_v20 = vld [vmem:[#allocation8 + $0x540] sm:$0xff] }
  0x6d   :  { %519 = vmatprep.subr.bf16.mxu0 %v5426_v45  ;;  %562 = vmatprep.subr.bf16.mxu1 %v5428_v46  ;;  %v5437_v45 = vcombine.low %v145_v30, %v149_v31  ;;  %v129_v46 = vld [vmem:[#allocation5 + $0x50] sm:$0xff]  ;;  %v130_v50 = vld [vmem:[#allocation5 + $0x58] sm:$0xff]  ;;  %v5431_v56 = vcombine.low %v138_v42, %v142_v43  ;;  %v848_v25 = vld [vmem:[#allocation8 + $0x120] sm:$0xff] }
  0x6e   :  { %v5422_v57 = vcombine.high %v129_v46, %v133_v47  ;;  %v122_v58 = vld [vmem:[#allocation5 + $0x18] sm:$0xff]  ;;  %v972_v28 = vld [vmem:[#allocation8 + $0x500] sm:$0xff] }
  0x6f   :  { %v964_v35 = vld [vmem:[#allocation8 + $0x4c0] sm:$0xff] }
  0x70   :  { %520 = vmatpush1.bf16.msra.mxu0 %v5425_v51  ;;  %563 = vmatpush1.bf16.msra.mxu1 %v5427_v52  ;;  %v134_v51 = vld [vmem:[#allocation5 + $0x78] sm:$0xff]  ;;  %v5432_v52 = vcombine.high %v138_v42, %v142_v43  ;;  %v956_v43 = vld [vmem:[#allocation8 + $0x480] sm:$0xff] }
  0x71   :  { %521 = vmatprep.subr.bf16.mxu0 %v5418_v53  ;;  %564 = vmatprep.subr.bf16.mxu1 %v5420_v54  ;;  %v5429_v53 = vcombine.low %v137_v38, %v141_v39  ;;  %v121_v54 = vld [vmem:[#allocation5 + $0x10] sm:$0xff]  ;;  %v5423_v1 = vcombine.low %v130_v50, %v134_v51  ;;  %v828_v39 = vld [vmem:[#allocation8 + $0x80] sm:$0xff] }
  0x72   :  { %v5414_v2 = vcombine.high %v121_v54, %v125_v55 }
  0x74   :  { %522 = vmatpush1.bf16.msra.mxu0 %v5417_v59  ;;  %565 = vmatpush1.bf16.msra.mxu1 %v5419_v60  ;;  %v126_v59 = vld [vmem:[#allocation5 + $0x38] sm:$0xff]  ;;  %v5424_v60 = vcombine.high %v130_v50, %v134_v51  ;;  %v820_v50 = vld [vmem:[#allocation8 + $0x40] sm:$0xff] }
  0x75   :  { %523 = vmatprep.subr.bf16.mxu0 %v5410_v61  ;;  %566 = vmatprep.subr.bf16.mxu1 %v5412_v62  ;;  %v5421_v61 = vcombine.low %v129_v46, %v133_v47  ;;  %v868_v62 = vld [vmem:[#allocation8 + $0x1c0] sm:$0xff]  ;;  %v5415_v9 = vcombine.low %v122_v58, %v126_v59 }
  0x76   :  { %v5530_v11 = vcombine.high %v868_v62, %v872_v63  ;;  %v824_v51 = vld [vmem:[#allocation8 + $0x60] sm:$0xff] }
  0x78   :  { %524 = vmatpush1.bf16.msra.mxu0 %v5409_v4  ;;  %567 = vmatpush1.bf16.msra.mxu1 %v5411_v5  ;;  %v1000_v4 = vld [vmem:[#allocation8 + $0x5e0] sm:$0xff]  ;;  %v5416_v5 = vcombine.high %v122_v58, %v126_v59 }
  0x79   :  { %595 = vmatprep.subr.bf16.mxu0 %v5470_v6  ;;  %638 = vmatprep.subr.bf16.mxu1 %v5472_v7  ;;  %v5413_v6 = vcombine.low %v121_v54, %v125_v55  ;;  %v860_v7 = vld [vmem:[#allocation8 + $0x180] sm:$0xff]  ;;  %v5657_v18 = vcombine.low %v996_v3, %v1000_v4 }
  0x7a   :  { %v5522_v19 = vcombine.high %v860_v7, %v864_v8  ;;  %v812_v58 = vld [vmem:[#allocation8] sm:$0xff] }
  0x7b   :  { %542 = vmatmul.mubr.bf16.vlgmr.msra.gmra.mxu0 %v6470_v10  ;;  %585 = vmatmul.mubr.bf16.vlgmr.msra.gmra.mxu1 %v6470_v10  ;;  %v816_v59 = vld [vmem:[#allocation8 + $0x20] sm:$0xff] }
  0x7c   :  { %596 = vmatpush1.bf16.msra.mxu0 %v5469_v13  ;;  %639 = vmatpush1.bf16.msra.mxu1 %v5471_v14  ;;  %v992_v13 = vld [vmem:[#allocation8 + $0x5a0] sm:$0xff]  ;;  %v5658_v14 = vcombine.high %v996_v3, %v1000_v4 }
  0x7d   :  { %597 = vmatprep.subr.bf16.mxu0 %v5462_v15  ;;  %640 = vmatprep.subr.bf16.mxu1 %v5464_v16  ;;  %v5529_v15 = vcombine.low %v868_v62, %v872_v63  ;;  %v852_v16 = vld [vmem:[#allocation8 + $0x140] sm:$0xff]  ;;  %v5649_v26 = vcombine.low %v988_v12, %v992_v13  ;;  %v5481_v62 = vcombine.low %v820_v50, %v824_v51 }
  0x7e   :  { %627 = vmatprep.mubr.bf16.mxu0 %v6402_v0  ;;  %670 = vmatprep.mubr.bf16.mxu1 %v6402_v0  ;;  %v5514_v27 = vcombine.high %v852_v16, %v856_v17  ;;  %v5513_v31 = vcombine.low %v852_v16, %v856_v17  ;;  %v932_v3 = vld [vmem:[#allocation8 + $0x3c0] sm:$0xff] }
  0x7f   :  { %v936_v4 = vld [vmem:[#allocation8 + $0x3e0] sm:$0xff] }
  0x80   :  { %598 = vmatpush1.bf16.msra.mxu0 %v5461_v21  ;;  %641 = vmatpush1.bf16.msra.mxu1 %v5463_v22  ;;  %v984_v21 = vld [vmem:[#allocation8 + $0x560] sm:$0xff]  ;;  %v5650_v22 = vcombine.high %v988_v12, %v992_v13  ;;  %v5593_v16 = vcombine.low %v932_v3, %v936_v4 }
  0x81   :  { %599 = vmatprep.subr.bf16.mxu0 %v5454_v23  ;;  %642 = vmatprep.subr.bf16.mxu1 %v5456_v24  ;;  %v5521_v23 = vcombine.low %v860_v7, %v864_v8  ;;  %v844_v24 = vld [vmem:[#allocation8 + $0x100] sm:$0xff]  ;;  %v5642_v30 = vcombine.high %v980_v20, %v984_v21  ;;  %v5641_v34 = vcombine.low %v980_v20, %v984_v21 }
  0x82   :  { %v5505_v38 = vcombine.low %v844_v24, %v848_v25  ;;  %v5473_v7 = vcombine.low %v812_v58, %v816_v59  ;;  %v924_v12 = vld [vmem:[#allocation8 + $0x380] sm:$0xff] }
  0x83   :  { %v928_v13 = vld [vmem:[#allocation8 + $0x3a0] sm:$0xff] }
  0x84   :  { %600 = vmatpush1.bf16.msra.mxu0 %v5453_v29  ;;  %643 = vmatpush1.bf16.msra.mxu1 %v5455_v32  ;;  %v976_v29 = vld [vmem:[#allocation8 + $0x520] sm:$0xff] }
  0x85   :  { %601 = vmatprep.subr.bf16.mxu0 %v5446_v33  ;;  %644 = vmatprep.subr.bf16.mxu1 %v5448_v36  ;;  %v836_v32 = vld [vmem:[#allocation8 + $0xc0] sm:$0xff] }
  0x86   :  { %v840_v33 = vld [vmem:[#allocation8 + $0xe0] sm:$0xff] }
  0x87   :  { %v968_v36 = vld [vmem:[#allocation8 + $0x4e0] sm:$0xff]  ;;  %v5498_v42 = vcombine.high %v836_v32, %v840_v33  ;;  %v5497_v46 = vcombine.low %v836_v32, %v840_v33 }
  0x88   :  { %602 = vmatpush1.bf16.msra.mxu0 %v5445_v37  ;;  %645 = vmatpush1.bf16.msra.mxu1 %v5447_v40  ;;  %v5634_v37 = vcombine.high %v972_v28, %v976_v29  ;;  %v832_v40 = vld [vmem:[#allocation8 + $0xa0] sm:$0xff]  ;;  %v5625_v47 = vcombine.low %v964_v35, %v968_v36 }
  0x89   :  { %603 = vmatprep.subr.bf16.mxu0 %v5438_v41  ;;  %646 = vmatprep.subr.bf16.mxu1 %v5440_v44  ;;  %v5633_v41 = vcombine.low %v972_v28, %v976_v29  ;;  %v960_v44 = vld [vmem:[#allocation8 + $0x4a0] sm:$0xff]  ;;  %v5489_v54 = vcombine.low %v828_v39, %v832_v40 }
  0x8a   :  { %v5617_v55 = vcombine.low %v956_v43, %v960_v44  ;;  %v916_v20 = vld [vmem:[#allocation8 + $0x340] sm:$0xff] }
  0x8b   :  { %v920_v21 = vld [vmem:[#allocation8 + $0x360] sm:$0xff] }
  0x8c   :  { %604 = vmatpush1.bf16.msra.mxu0 %v5437_v45  ;;  %647 = vmatpush1.bf16.msra.mxu1 %v5439_v48  ;;  %v5626_v45 = vcombine.high %v964_v35, %v968_v36  ;;  %v5490_v48 = vcombine.high %v828_v39, %v832_v40  ;;  %v908_v28 = vld [vmem:[#allocation8 + $0x300] sm:$0xff]  ;;  %v5577_v32 = vcombine.low %v916_v20, %v920_v21 }
  0x8d   :  { %605 = vmatprep.subr.bf16.mxu0 %v5430_v49  ;;  %648 = vmatprep.subr.bf16.mxu1 %v5432_v52  ;;  %v5618_v49 = vcombine.high %v956_v43, %v960_v44  ;;  %v948_v52 = vld [vmem:[#allocation8 + $0x440] sm:$0xff] }
  0x8e   :  { %v912_v29 = vld [vmem:[#allocation8 + $0x320] sm:$0xff] }
  0x8f   :  { %v900_v35 = vld [vmem:[#allocation8 + $0x2c0] sm:$0xff]  ;;  %v5569_v39 = vcombine.low %v908_v28, %v912_v29 }
  0x90   :  { %606 = vmatpush1.bf16.msra.mxu0 %v5429_v53  ;;  %649 = vmatpush1.bf16.msra.mxu1 %v5431_v56  ;;  %v952_v53 = vld [vmem:[#allocation8 + $0x460] sm:$0xff]  ;;  %v5482_v56 = vcombine.high %v820_v50, %v824_v51 }
  0x91   :  { %607 = vmatprep.subr.bf16.mxu0 %v5422_v57  ;;  %650 = vmatprep.subr.bf16.mxu1 %v5424_v60  ;;  %v5610_v57 = vcombine.high %v948_v52, %v952_v53  ;;  %v940_v60 = vld [vmem:[#allocation8 + $0x400] sm:$0xff]  ;;  %v5609_v63 = vcombine.low %v948_v52, %v952_v53 }
  0x92   :  { %v904_v36 = vld [vmem:[#allocation8 + $0x2e0] sm:$0xff] }
  0x93   :  { %v896_v43 = vld [vmem:[#allocation8 + $0x2a0] sm:$0xff]  ;;  %v5561_v51 = vcombine.low %v900_v35, %v904_v36 }
  0x94   :  { %608 = vmatpush1.bf16.msra.mxu0 %v5421_v61  ;;  %651 = vmatpush1.bf16.msra.mxu1 %v5423_v1  ;;  %v944_v61 = vld [vmem:[#allocation8 + $0x420] sm:$0xff]  ;;  %v5474_v1 = vcombine.high %v812_v58, %v816_v59 }
  0x95   :  { %609 = vmatprep.subr.bf16.mxu0 %v5414_v2  ;;  %652 = vmatprep.subr.bf16.mxu1 %v5416_v5  ;;  %v5602_v2 = vcombine.high %v940_v60, %v944_v61  ;;  %v1060_v5 = vld [vmem:[#allocation8 + $0x7c0] sm:$0xff]  ;;  %v5601_v8 = vcombine.low %v940_v60, %v944_v61 }
  0x96   :  { %v6484_v50 = vld [vmem:[#allocation8 + $0xde0] sm:$0xff] }
  0x97   :  { %v888_v58 = vld [vmem:[#allocation8 + $0x260] sm:$0xff] }
  0x98   :  { %610 = vmatpush1.bf16.msra.mxu0 %v5413_v6  ;;  %653 = vmatpush1.bf16.msra.mxu1 %v5415_v9  ;;  %v1064_v6 = vld [vmem:[#allocation8 + $0x7e0] sm:$0xff]  ;;  %v5594_v9 = vcombine.high %v932_v3, %v936_v4 }
  0x99   :  { %3884 = vmatprep.subr.bf16.mxu0 %v5530_v11  ;;  %3927 = vmatprep.subr.bf16.mxu1 %v5658_v14  ;;  %v5722_v11 = vcombine.high %v1060_v5, %v1064_v6  ;;  %v1052_v14 = vld [vmem:[#allocation8 + $0x780] sm:$0xff]  ;;  %v5721_v17 = vcombine.low %v1060_v5, %v1064_v6 }
  0x9a   :  { %v1012_v59 = vld [vmem:[#allocation8 + $0x640] sm:$0xff] }
  0x9b   :  { %628 = vmatmul.mubr.bf16.vlgmr.msra.gmra.mxu0 %v6470_v10  ;;  %671 = vmatmul.mubr.bf16.vlgmr.msra.gmra.mxu1 %v6470_v10  ;;  %v5506_v10 = vcombine.high %v844_v24, %v848_v25  ;;  %v5585_v24 = vcombine.low %v924_v12, %v928_v13  ;;  %v1016_v60 = vld [vmem:[#allocation8 + $0x660] sm:$0xff] }
  0x9c   :  { %3885 = vmatpush1.bf16.msra.mxu0 %v5529_v15  ;;  %3928 = vmatpush1.bf16.msra.mxu1 %v5657_v18  ;;  %v1056_v15 = vld [vmem:[#allocation8 + $0x7a0] sm:$0xff]  ;;  %v5586_v18 = vcombine.high %v924_v12, %v928_v13 }
  0x9d   :  { %3886 = vmatprep.subr.bf16.mxu0 %v5522_v19  ;;  %3929 = vmatprep.subr.bf16.mxu1 %v5650_v22  ;;  %v5714_v19 = vcombine.high %v1052_v14, %v1056_v15  ;;  %v1044_v22 = vld [vmem:[#allocation8 + $0x740] sm:$0xff]  ;;  %v5713_v25 = vcombine.low %v1052_v14, %v1056_v15  ;;  %v6403_v15 = vmov 1966171168  }
  0x9e   :  { %v880_v3 = vld [vmem:[#allocation8 + $0x220] sm:$0xff] }
  0x9f   :  { %v1004_v4 = vld [vmem:[#allocation8 + $0x600] sm:$0xff] }
  0xa0   :  { %3887 = vmatpush1.bf16.msra.mxu0 %v5521_v23  ;;  %3930 = vmatpush1.bf16.msra.mxu1 %v5649_v26  ;;  %v1048_v23 = vld [vmem:[#allocation8 + $0x760] sm:$0xff]  ;;  %v5578_v26 = vcombine.high %v916_v20, %v920_v21  ;;  %v6496_v21 = vld [vmem:[#allocation7] sm:$0xff] }
  0xa1   :  { %3888 = vmatprep.subr.bf16.mxu0 %v5514_v27  ;;  %3931 = vmatprep.subr.bf16.mxu1 %v5642_v30  ;;  %v5706_v27 = vcombine.high %v1044_v22, %v1048_v23  ;;  %v1036_v30 = vld [vmem:[#allocation8 + $0x700] sm:$0xff]  ;;  %v5705_v33 = vcombine.low %v1044_v22, %v1048_v23 }
  0xa2   :  { %v1008_v5 = vld [vmem:[#allocation8 + $0x620] sm:$0xff] }
  0xa3   :  { %v5665_v12 = vcombine.low %v1004_v4, %v1008_v5 }
  0xa4   :  { %3889 = vmatpush1.bf16.msra.mxu0 %v5513_v31  ;;  %3932 = vmatpush1.bf16.msra.mxu1 %v5641_v34  ;;  %v1040_v31 = vld [vmem:[#allocation8 + $0x720] sm:$0xff]  ;;  %v5570_v34 = vcombine.high %v908_v28, %v912_v29 }
  0xa5   :  { %3890 = vmatprep.subr.bf16.mxu0 %v5506_v10  ;;  %3933 = vmatprep.subr.bf16.mxu1 %v5634_v37  ;;  %v5698_v10 = vcombine.high %v1036_v30, %v1040_v31  ;;  %v1028_v37 = vld [vmem:[#allocation8 + $0x6c0] sm:$0xff]  ;;  %v5697_v40 = vcombine.low %v1036_v30, %v1040_v31 }
  0xa8   :  { %3891 = vmatpush1.bf16.msra.mxu0 %v5505_v38  ;;  %3934 = vmatpush1.bf16.msra.mxu1 %v5633_v41  ;;  %v1032_v38 = vld [vmem:[#allocation8 + $0x6e0] sm:$0xff]  ;;  %v5562_v41 = vcombine.high %v900_v35, %v904_v36 }
  0xa9   :  { %3892 = vmatprep.subr.bf16.mxu0 %v5498_v42  ;;  %3935 = vmatprep.subr.bf16.mxu1 %v5626_v45  ;;  %v892_v42 = vld [vmem:[#allocation8 + $0x280] sm:$0xff]  ;;  %v5690_v44 = vcombine.high %v1028_v37, %v1032_v38 }
  0xaa   :  { %v6478_v45 = vld [vmem:[#allocation8 + $0x9c0] sm:$0xff]  ;;  %v5553_v61 = vcombine.low %v892_v42, %v896_v43 }
  0xac   :  { %3893 = vmatpush1.bf16.msra.mxu0 %v5497_v46  ;;  %3936 = vmatpush1.bf16.msra.mxu1 %v5625_v47  ;;  %v6480_v46 = vld [vmem:[#allocation8 + $0x9e0] sm:$0xff] }
  0xad   :  { %3894 = vmatprep.subr.bf16.mxu0 %v5490_v48  ;;  %3937 = vmatprep.subr.bf16.mxu1 %v5618_v49  ;;  %v6482_v47 = vld [vmem:[#allocation8 + $0xdc0] sm:$0xff]  ;;  %v5785_v52 = vcombine.low %v6478_v45, %v6480_v46  ;;  %v5786_v13 = vcombine.high %v6478_v45, %v6480_v46 }
  0xae   :  { %v1020_v48 = vld [vmem:[#allocation8 + $0x680] sm:$0xff]  ;;  %v5913_v53 = vcombine.low %v6482_v47, %v6484_v50  ;;  %v5914_v14 = vcombine.high %v6482_v47, %v6484_v50 }
  0xaf   :  { %v1024_v49 = vld [vmem:[#allocation8 + $0x6a0] sm:$0xff] }
  0xb0   :  { %3895 = vmatpush1.bf16.msra.mxu0 %v5489_v54  ;;  %3938 = vmatpush1.bf16.msra.mxu1 %v5617_v55  ;;  %v5689_v54 = vcombine.low %v1028_v37, %v1032_v38  ;;  %v5554_v55 = vcombine.high %v892_v42, %v896_v43  ;;  %v1092_v50 = vld [vmem:[#allocation8 + $0x8c0] sm:$0xff] }
  0xb1   :  { %3896 = vmatprep.subr.bf16.mxu0 %v5482_v56  ;;  %3939 = vmatprep.subr.bf16.mxu1 %v5610_v57  ;;  %v5682_v56 = vcombine.high %v1020_v48, %v1024_v49  ;;  %v884_v57 = vld [vmem:[#allocation8 + $0x240] sm:$0xff] }
  0xb2   :  { %v5545_v6 = vcombine.low %v884_v57, %v888_v58 }
  0xb4   :  { %3897 = vmatpush1.bf16.msra.mxu0 %v5481_v62  ;;  %3940 = vmatpush1.bf16.msra.mxu1 %v5609_v63  ;;  %v5681_v62 = vcombine.low %v1020_v48, %v1024_v49  ;;  %v5546_v63 = vcombine.high %v884_v57, %v888_v58  ;;  %v1116_v57 = vld [vmem:[#allocation8 + $0x980] sm:$0xff] }
  0xb5   :  { %3898 = vmatprep.subr.bf16.mxu0 %v5474_v1  ;;  %3941 = vmatprep.subr.bf16.mxu1 %v5602_v2  ;;  %v5674_v1 = vcombine.high %v1012_v59, %v1016_v60  ;;  %v876_v2 = vld [vmem:[#allocation8 + $0x200] sm:$0xff] }
  0xb6   :  { %v1120_v58 = vld [vmem:[#allocation8 + $0x9a0] sm:$0xff] }
  0xb8   :  { %3899 = vmatpush1.bf16.msra.mxu0 %v5473_v7  ;;  %3942 = vmatpush1.bf16.msra.mxu1 %v5601_v8  ;;  %v5673_v7 = vcombine.low %v1012_v59, %v1016_v60  ;;  %v5538_v8 = vcombine.high %v876_v2, %v880_v3  ;;  %v1244_v60 = vld [vmem:[#allocation8 + $0xd80] sm:$0xff] }
  0xb9   :  { %3900 = vmatprep.subr.bf16.mxu0 %v5594_v9  ;;  %3943 = vmatprep.subr.bf16.mxu1 %v5722_v11  ;;  %v5666_v9 = vcombine.high %v1004_v4, %v1008_v5  ;;  %v5537_v11 = vcombine.low %v876_v2, %v880_v3  ;;  %v5778_v2 = vcombine.high %v1116_v57, %v1120_v58  ;;  %v1108_v5 = vld [vmem:[#allocation8 + $0x940] sm:$0xff] }
  0xbc   :  { %3901 = vmatpush2.bf16.msra.mxu0 %v5593_v16  ;;  %3944 = vmatpush2.bf16.msra.mxu1 %v5721_v17  ;;  %v693_v16 = vunpack.c.l.s4 %v6403_v15  ;;  %v695_v17 = vlaneseq  ;;  %v1100_v15 = vld [vmem:[#allocation8 + $0x900] sm:$0xff] }
  0xbd   :  { %3902 = vmatprep.subr.bf16.mxu0 %v5586_v18  ;;  %3945 = vmatprep.subr.bf16.mxu1 %v5714_v19 }
  0xbe   :  { %v694_v18 = vunpack.c.0.s8 %v693_v16  ;;  %v696_v19 = vshrl.u32 %v695_v17, 7  ;;  %v1104_v16 = vld [vmem:[#allocation8 + $0x920] sm:$0xff] }
  0xbf   :  { %v1228_v17 = vld [vmem:[#allocation8 + $0xd00] sm:$0xff] }
  0xc0   :  { %3903 = vmatpush2.bf16.msra.mxu0 %v5585_v24  ;;  %3946 = vmatpush2.bf16.msra.mxu1 %v5713_v25  ;;  %v6494_v20 = vsub.s32 %v694_v18, %v696_v19  ;;  %v6502_v30 = vsub.s32 0, %v696_v19  ;;  %v1232_v18 = vld [vmem:[#allocation8 + $0xd20] sm:$0xff] }
  0xc1   :  { %3904 = vmatprep.subr.bf16.mxu0 %v5578_v26  ;;  %3947 = vmatprep.subr.bf16.mxu1 %v5706_v27  ;;  %v5890_v47 = vcombine.high %v1228_v17, %v1232_v18 }
  0xc2   :  { %v698_v22 = vrot.slane %v6496_v21, %v6494_v20 }
  0xc4   :  { %3905 = vmatpush2.bf16.msra.mxu0 %v5577_v32  ;;  %3948 = vmatpush2.bf16.msra.mxu1 %v5705_v33  ;;  %v706_v23 = vcombine.high %v698_v22, %v698_v22  ;;  %v714_v24 = vrot.slane %v698_v22, %v6494_v20  ;;  %v1224_v22 = vld [vmem:[#allocation8 + $0xce0] sm:$0xff] }
  0xc5   :  { %3906 = vmatprep.subr.bf16.mxu0 %v5570_v34  ;;  %3949 = vmatprep.subr.bf16.mxu1 %v5698_v10 }
  0xc6   :  { %v728_v25 = vrot.slane %v706_v23, %v6494_v20  ;;  %v736_v26 = vcombine.high %v714_v24, %v714_v24  ;;  %v741_v29 = vpack.i.b16 %v714_v24, %v714_v24  ;;  %v5761_v24 = vcombine.low %v1100_v15, %v1104_v16 }
  0xc8   :  { %3907 = vmatpush2.bf16.msra.mxu0 %v5569_v39  ;;  %3950 = vmatpush2.bf16.msra.mxu1 %v5697_v40  ;;  %v738_v27 = vcombine.high %v728_v25, %v728_v25  ;;  %v755_v32 = vpack.i.b16 %v736_v26, %v736_v26  ;;  %v748_v33 = vpack.i.b16 %v728_v25, %v728_v25 }
  0xc9   :  { %3908 = vmatprep.subr.bf16.mxu0 %v5562_v41  ;;  %3951 = vmatprep.subr.bf16.mxu1 %v5690_v44  ;;  %v746_v37 = vrot.slane %v741_v29, %v6502_v30  ;;  %v5889_v25 = vcombine.low %v1228_v17, %v1232_v18  ;;  %v1088_v29 = vld [vmem:[#allocation8 + $0x8a0] sm:$0xff] }
  0xca   :  { %v762_v10 = vpack.i.b16 %v738_v27, %v738_v27  ;;  %v760_v40 = vrot.slane %v755_v32, %v6502_v30  ;;  %v753_v41 = vrot.slane %v748_v33, %v6502_v30  ;;  %v1216_v32 = vld [vmem:[#allocation8 + $0xca0] sm:$0xff] }
  0xcc   :  { %3909 = vmatpush2.bf16.msra.mxu0 %v5561_v51  ;;  %3952 = vmatpush2.bf16.msra.mxu1 %v5689_v54  ;;  %v767_v44 = vrot.slane %v762_v10, %v6502_v30 }
  0xcd   :  { %3910 = vmatprep.subr.bf16.mxu0 %v5554_v55  ;;  %3953 = vmatprep.subr.bf16.mxu1 %v5682_v56 }
  0xd0   :  { %3911 = vmatpush2.bf16.msra.mxu0 %v5553_v61  ;;  %3954 = vmatpush2.bf16.msra.mxu1 %v5681_v62  ;;  %v1248_v61 = vld [vmem:[#allocation8 + $0xda0] sm:$0xff] }
  0xd1   :  { %3912 = vmatprep.subr.bf16.mxu0 %v5546_v63  ;;  %3955 = vmatprep.subr.bf16.mxu1 %v5674_v1  ;;  %v5906_v4 = vcombine.high %v1244_v60, %v1248_v61 }
  0xd4   :  { %3913 = vmatpush2.bf16.msra.mxu0 %v5545_v6  ;;  %3956 = vmatpush2.bf16.msra.mxu1 %v5673_v7  ;;  %v1112_v6 = vld [vmem:[#allocation8 + $0x960] sm:$0xff] }
  0xd5   :  { %3914 = vmatprep.subr.bf16.mxu0 %v5538_v8  ;;  %3957 = vmatprep.subr.bf16.mxu1 %v5666_v9  ;;  %v1236_v7 = vld [vmem:[#allocation8 + $0xd40] sm:$0xff]  ;;  %v691_v9 = vcombine.high %v6496_v21, %v6496_v21  ;;  %v5769_v45 = vcombine.low %v1108_v5, %v1112_v6 }
  0xd6   :  { %v1240_v8 = vld [vmem:[#allocation8 + $0xd60] sm:$0xff] }
  0xd7   :  { %v6533_v19 = vrot.slane %v691_v9, %v6494_v20  ;;  %v5897_v46 = vcombine.low %v1236_v7, %v1240_v8  ;;  %v1220_v21 = vld [vmem:[#allocation8 + $0xcc0] sm:$0xff] }
  0xd8   :  { %3915 = vmatpush2.bf16.msra.mxu0 %v5537_v11  ;;  %3958 = vmatpush2.bf16.msra.mxu1 %v5665_v12  ;;  %v5777_v11 = vcombine.low %v1116_v57, %v1120_v58  ;;  %v5905_v12 = vcombine.low %v1244_v60, %v1248_v61  ;;  %v5882_v27 = vcombine.high %v1220_v21, %v1224_v22  ;;  %v1196_v57 = vld [vmem:[#allocation8 + $0xc00] sm:$0xff] }
  0xd9   :  { %3970 = vmatprep.subr.bf16.mxu0 %v5786_v13  ;;  %4013 = vmatprep.subr.bf16.mxu1 %v5914_v14  ;;  %v5770_v13 = vcombine.high %v1108_v5, %v1112_v6  ;;  %v5898_v14 = vcombine.high %v1236_v7, %v1240_v8  ;;  %v707_v23 = vcombine.high %v6533_v19, %v6533_v19  ;;  %v1200_v58 = vld [vmem:[#allocation8 + $0xc20] sm:$0xff] }
  0xda   :  { %v5881_v10 = vcombine.low %v1220_v21, %v1224_v22  ;;  %v5858_v7 = vcombine.high %v1196_v57, %v1200_v58  ;;  %v1188_v8 = vld [vmem:[#allocation8 + $0xbc0] sm:$0xff] }
  0xdb   :  { %v735_v33 = vrot.slane %v707_v23, %v6494_v20  ;;  %v1192_v9 = vld [vmem:[#allocation8 + $0xbe0] sm:$0xff] }
  0xdc   :  { %v1184_v21 = vld [vmem:[#allocation8 + $0xba0] sm:$0xff] }
  0xdd   :  { %v1308_v23 = vld [vmem:[#allocation8 + $0xf80] sm:$0xff] }
 0x13b   :  { %v543_v28 = vpop.f32.mrf.mxu0  ;;  %v586_v31 = vpop.f32.mrf.mxu1 }
 0x13d   :  { %v545_v34 = vpop.f32.mrf.mxu0  ;;  %v588_v35 = vpop.f32.mrf.mxu1 }
 0x13f   :  { %v547_v36 = vpop.f32.mrf.mxu0  ;;  %v590_v39 = vpop.f32.mrf.mxu1 }
 0x140   :  { %v681_v38 = vpack.c.bf16 %v547_v36, %v543_v28  ;;  %v683_v42 = vpack.c.bf16 %v590_v39, %v586_v31  ;;  %v1084_v28 = vld [vmem:[#allocation8 + $0x880] sm:$0xff] }
 0x141   :  { %v549_v43 = vpop.f32.mrf.mxu0  ;;  %v592_v49 = vpop.f32.mrf.mxu1  ;;  %v1212_v31 = vld [vmem:[#allocation8 + $0xc80] sm:$0xff] }
 0x142   :  { %v682_v48 = vpack.c.bf16 %v549_v43, %v545_v34  ;;  %v796_v51 = vadd.bf16 %v746_v37, %v681_v38  ;;  %v684_v54 = vpack.c.bf16 %v592_v49, %v588_v35  ;;  %v798_v55 = vadd.bf16 %v760_v40, %v683_v42  ;;  %v1076_v37 = vld [vmem:[#allocation8 + $0x840] sm:$0xff] }
 0x143   :  { %v5746_v35 = vcombine.high %v1084_v28, %v1088_v29  ;;  %v5874_v36 = vcombine.high %v1212_v31, %v1216_v32  ;;  %v1080_v38 = vld [vmem:[#allocation8 + $0x860] sm:$0xff]  ;;  %v5745_v42 = vcombine.low %v1084_v28, %v1088_v29  ;;  %v5873_v43 = vcombine.low %v1212_v31, %v1216_v32 }
 0x144   :  { %v797_v56 = vadd.bf16 %v753_v41, %v682_v48  ;;  %v799_v59 = vadd.bf16 %v767_v44, %v684_v54  ;;  %v6512_v63 = vmax.bf16 %v6402_v0, %v796_v51  ;;  %v6518_v3 = vmax.bf16 %v6402_v0, %v798_v55  ;;  %v1204_v39 = vld [vmem:[#allocation8 + $0xc40] sm:$0xff] }
 0x145   :  { %v1208_v40 = vld [vmem:[#allocation8 + $0xc60] sm:$0xff]  ;;  %v739_v41 = vcombine.high %v735_v33, %v735_v33  ;;  %v5738_v44 = vcombine.high %v1076_v37, %v1080_v38  ;;  %v5737_v61 = vcombine.low %v1076_v37, %v1080_v38 }
 0x146   :  { %v6509_v62 = vmax.bf16 %v6402_v0, %v797_v56  ;;  %v6515_v1 = vmax.bf16 %v6402_v0, %v799_v59  ;;  %v5866_v49 = vcombine.high %v1204_v39, %v1208_v40  ;;  %v1068_v51 = vld [vmem:[#allocation8 + $0x800] sm:$0xff]  ;;  %v776_v56 = vpack.i.b16 %v735_v33, %v735_v33 }
 0x147   :  { %v1072_v54 = vld [vmem:[#allocation8 + $0x820] sm:$0xff]  ;;  %v790_v60 = vpack.i.b16 %v739_v41, %v739_v41 }
 0x148   :  { %3916 = vmatprep.mubr.bf16.mxu0 %v6509_v62  ;;  %3959 = vmatprep.mubr.bf16.mxu1 %v6515_v1  ;;  %v5730_v5 = vcombine.high %v1068_v51, %v1072_v54  ;;  %v5729_v17 = vcombine.low %v1068_v51, %v1072_v54  ;;  %v1172_v33 = vld [vmem:[#allocation8 + $0xb40] sm:$0xff] }
 0x149   :  { %3917 = vmatmul.mubr.bf16.vlgmr.msra.gmra.mxu0 %v6512_v63  ;;  %3960 = vmatmul.mubr.bf16.vlgmr.msra.gmra.mxu1 %v6518_v3  ;;  %v1168_v41 = vld [vmem:[#allocation8 + $0xb20] sm:$0xff] }
 0x14a   :  { %3971 = vmatpush1.bf16.msra.mxu0 %v5785_v52  ;;  %4014 = vmatpush1.bf16.msra.mxu1 %v5913_v53  ;;  %v5762_v52 = vcombine.high %v1100_v15, %v1104_v16  ;;  %v1096_v53 = vld [vmem:[#allocation8 + $0x8e0] sm:$0xff]  ;;  %v795_v16 = vrot.slane %v790_v60, %v6502_v30 }
 0x14b   :  { %3972 = vmatprep.subr.bf16.mxu0 %v5778_v2  ;;  %4015 = vmatprep.subr.bf16.mxu1 %v5906_v4  ;;  %v5754_v26 = vcombine.high %v1092_v50, %v1096_v53  ;;  %v5753_v34 = vcombine.low %v1092_v50, %v1096_v53  ;;  %v5865_v4 = vcombine.low %v1204_v39, %v1208_v40  ;;  %v1180_v53 = vld [vmem:[#allocation8 + $0xb80] sm:$0xff] }
 0x14c   :  { %v5842_v29 = vcombine.high %v1180_v53, %v1184_v21  ;;  %v1164_v40 = vld [vmem:[#allocation8 + $0xb00] sm:$0xff] }
 0x14d   :  { %v5826_v51 = vcombine.high %v1164_v40, %v1168_v41  ;;  %v5825_v60 = vcombine.low %v1164_v40, %v1168_v41  ;;  %v1001_v40 = vld [vmem:[#allocation8 + $0x5e8] sm:$0xff] }
 0x14e   :  { %3973 = vmatpush1.bf16.msra.mxu0 %v5777_v11  ;;  %4016 = vmatpush1.bf16.msra.mxu1 %v5905_v12  ;;  %v781_v11 = vrot.slane %v776_v56, %v6502_v30  ;;  %v1156_v56 = vld [vmem:[#allocation8 + $0xac0] sm:$0xff] }
 0x14f   :  { %3974 = vmatprep.subr.bf16.mxu0 %v5770_v13  ;;  %4017 = vmatprep.subr.bf16.mxu1 %v5898_v14  ;;  %v1316_v13 = vld [vmem:[#allocation8 + $0xfc0] sm:$0xff] }
 0x150   :  { %v1320_v14 = vld [vmem:[#allocation8 + $0xfe0] sm:$0xff] }
 0x151   :  { %v5978_v50 = vcombine.high %v1316_v13, %v1320_v14  ;;  %v5977_v28 = vcombine.low %v1316_v13, %v1320_v14 }
 0x152   :  { %3975 = vmatpush1.bf16.msra.mxu0 %v5769_v45  ;;  %4018 = vmatpush1.bf16.msra.mxu1 %v5897_v46  ;;  %v5857_v46 = vcombine.low %v1196_v57, %v1200_v58  ;;  %v1160_v57 = vld [vmem:[#allocation8 + $0xae0] sm:$0xff] }
 0x153   :  { %3976 = vmatprep.subr.bf16.mxu0 %v5762_v52  ;;  %4019 = vmatprep.subr.bf16.mxu1 %v5890_v47  ;;  %v5850_v52 = vcombine.high %v1188_v8, %v1192_v9  ;;  %v1284_v58 = vld [vmem:[#allocation8 + $0xec0] sm:$0xff]  ;;  %v5817_v13 = vcombine.low %v1156_v56, %v1160_v57 }
 0x156   :  { %3977 = vmatpush1.bf16.msra.mxu0 %v5761_v24  ;;  %4020 = vmatpush1.bf16.msra.mxu1 %v5889_v25  ;;  %v1312_v24 = vld [vmem:[#allocation8 + $0xfa0] sm:$0xff] }
 0x157   :  { %3978 = vmatprep.subr.bf16.mxu0 %v5754_v26  ;;  %4021 = vmatprep.subr.bf16.mxu1 %v5882_v27  ;;  %v5849_v26 = vcombine.low %v1188_v8, %v1192_v9  ;;  %v5970_v32 = vcombine.high %v1308_v23, %v1312_v24  ;;  %v5969_v37 = vcombine.low %v1308_v23, %v1312_v24  ;;  %v1152_v8 = vld [vmem:[#allocation8 + $0xaa0] sm:$0xff] }
 0x158   :  { %v1276_v9 = vld [vmem:[#allocation8 + $0xe80] sm:$0xff] }
 0x159   :  { %v1132_v23 = vld [vmem:[#allocation8 + $0xa00] sm:$0xff] }
 0x15a   :  { %3979 = vmatpush1.bf16.msra.mxu0 %v5753_v34  ;;  %4022 = vmatpush1.bf16.msra.mxu1 %v5881_v10  ;;  %v1176_v34 = vld [vmem:[#allocation8 + $0xb60] sm:$0xff] }
 0x15b   :  { %3980 = vmatprep.subr.bf16.mxu0 %v5746_v35  ;;  %v6538_v48 = vpop.f32.mrf.mxu0  ;;  %4023 = vmatprep.subr.bf16.mxu1 %v5874_v36  ;;  %v6540_v55 = vpop.f32.mrf.mxu1  ;;  %v1300_v10 = vld [vmem:[#allocation8 + $0xf40] sm:$0xff]  ;;  %v5841_v36 = vcombine.low %v1180_v53, %v1184_v21  ;;  %v5834_v38 = vcombine.high %v1172_v33, %v1176_v34 }
 0x15c   :  { %v1304_v35 = vld [vmem:[#allocation8 + $0xf60] sm:$0xff] }
 0x15d   :  { %v631_v59 = vpop.f32.mrf.mxu0  ;;  %v674_v2 = vpop.f32.mrf.mxu1  ;;  %v5962_v39 = vcombine.high %v1300_v10, %v1304_v35  ;;  %v1136_v24 = vld [vmem:[#allocation8 + $0xa20] sm:$0xff] }
 0x15e   :  { %3981 = vmatpush1.bf16.msra.mxu0 %v5745_v42  ;;  %4024 = vmatpush1.bf16.msra.mxu1 %v5873_v43  ;;  %v1292_v42 = vld [vmem:[#allocation8 + $0xf00] sm:$0xff]  ;;  %v5793_v41 = vcombine.low %v1132_v23, %v1136_v24 }
 0x15f   :  { %3982 = vmatprep.subr.bf16.mxu0 %v5738_v44  ;;  %v6542_v6 = vpop.f32.mrf.mxu0  ;;  %4025 = vmatprep.subr.bf16.mxu1 %v5866_v49  ;;  %v6545_v12 = vpop.f32.mrf.mxu1  ;;  %v1296_v43 = vld [vmem:[#allocation8 + $0xf20] sm:$0xff]  ;;  %v5833_v44 = vcombine.low %v1172_v33, %v1176_v34  ;;  %v5961_v49 = vcombine.low %v1300_v10, %v1304_v35  ;;  %v5794_v34 = vcombine.high %v1132_v23, %v1136_v24  ;;  %v829_v24 = vld [vmem:[#allocation8 + $0x88] sm:$0xff] }
 0x160   :  { %v5954_v54 = vcombine.high %v1292_v42, %v1296_v43  ;;  %v687_v10 = vpack.c.bf16 %v6545_v12, %v6540_v55  ;;  %v865_v55 = vld [vmem:[#allocation8 + $0x1a8] sm:$0xff] }
 0x161   :  { %v635_v15 = vpop.f32.mrf.mxu0  ;;  %v678_v45 = vpop.f32.mrf.mxu1 }
 0x162   :  { %3983 = vmatpush1.bf16.msra.mxu0 %v5737_v61  ;;  %v686_v18 = vpack.c.bf16 %v635_v15, %v631_v59  ;;  %4026 = vmatpush1.bf16.msra.mxu1 %v5865_v4  ;;  %v688_v47 = vpack.c.bf16 %v678_v45, %v674_v2  ;;  %v1288_v59 = vld [vmem:[#allocation8 + $0xee0] sm:$0xff]  ;;  %v5953_v61 = vcombine.low %v1292_v42, %v1296_v43 }
 0x163   :  { %3984 = vmatprep.subr.bf16.mxu0 %v5730_v5  ;;  %4027 = vmatprep.subr.bf16.mxu1 %v5858_v7  ;;  %v5818_v2 = vcombine.high %v1156_v56, %v1160_v57  ;;  %v5946_v4 = vcombine.high %v1284_v58, %v1288_v59  ;;  %v721_v5 = vrot.slane %v6533_v19, %v6494_v20  ;;  %v1148_v7 = vld [vmem:[#allocation8 + $0xa80] sm:$0xff] }
 0x164   :  { %v801_v22 = vadd.bf16 %v781_v11, %v686_v18  ;;  %v803_v25 = vadd.bf16 %v795_v16, %v688_v47  ;;  %v1280_v11 = vld [vmem:[#allocation8 + $0xea0] sm:$0xff]  ;;  %v5945_v14 = vcombine.low %v1284_v58, %v1288_v59  ;;  %v5810_v15 = vcombine.high %v1148_v7, %v1152_v8 }
 0x165   :  { %v737_v16 = vcombine.high %v721_v5, %v721_v5  ;;  %v1140_v18 = vld [vmem:[#allocation8 + $0xa40] sm:$0xff]  ;;  %v769_v47 = vpack.i.b16 %v721_v5, %v721_v5  ;;  %v5809_v19 = vcombine.low %v1148_v7, %v1152_v8  ;;  %v985_v5 = vld [vmem:[#allocation8 + $0x568] sm:$0xff] }
 0x166   :  { %3985 = vmatpush1.bf16.msra.mxu0 %v5729_v17  ;;  %v6549_v27 = vmax.bf16 %v6402_v0, %v801_v22  ;;  %4028 = vmatpush1.bf16.msra.mxu1 %v5857_v46  ;;  %v6552_v31 = vmax.bf16 %v6402_v0, %v803_v25  ;;  %v5938_v17 = vcombine.high %v1276_v9, %v1280_v11  ;;  %v1144_v45 = vld [vmem:[#allocation8 + $0xa60] sm:$0xff] }
 0x167   :  { %3986 = vmatprep.subr.bf16.mxu0 %v5850_v52  ;;  %4029 = vmatprep.subr.bf16.mxu1 %v5978_v50  ;;  %v1268_v46 = vld [vmem:[#allocation8 + $0xe40] sm:$0xff]  ;;  %v5937_v50 = vcombine.low %v1276_v9, %v1280_v11  ;;  %v5802_v53 = vcombine.high %v1140_v18, %v1144_v45  ;;  %v783_v21 = vpack.i.b16 %v737_v16, %v737_v16  ;;  %v977_v16 = vld [vmem:[#allocation8 + $0x528] sm:$0xff] }
 0x168   :  { %4002 = vmatprep.mubr.bf16.mxu0 %v6549_v27  ;;  %4045 = vmatprep.mubr.bf16.mxu1 %v6552_v31  ;;  %v1272_v52 = vld [vmem:[#allocation8 + $0xe60] sm:$0xff] }
 0x169   :  { %v5930_v22 = vcombine.high %v1268_v46, %v1272_v52  ;;  %v1260_v25 = vld [vmem:[#allocation8 + $0xe00] sm:$0xff]  ;;  %v5929_v33 = vcombine.low %v1268_v46, %v1272_v52  ;;  %v788_v35 = vrot.slane %v783_v21, %v6502_v30  ;;  %v837_v52 = vld [vmem:[#allocation8 + $0xc8] sm:$0xff] }
 0x16a   :  { %3987 = vmatpush2.bf16.msra.mxu0 %v5849_v26  ;;  %4030 = vmatpush2.bf16.msra.mxu1 %v5977_v28  ;;  %v1264_v26 = vld [vmem:[#allocation8 + $0xe20] sm:$0xff]  ;;  %v774_v28 = vrot.slane %v769_v47, %v6502_v30  ;;  %v841_v47 = vld [vmem:[#allocation8 + $0xe8] sm:$0xff] }
 0x16b   :  { %3988 = vmatprep.subr.bf16.mxu0 %v5842_v29  ;;  %4031 = vmatprep.subr.bf16.mxu1 %v5970_v32  ;;  %v5801_v29 = vcombine.low %v1140_v18, %v1144_v45  ;;  %v685_v32 = vpack.c.bf16 %v6542_v6, %v6538_v48  ;;  %v5921_v48 = vcombine.low %v1260_v25, %v1264_v26 }
 0x16c   :  { %v802_v43 = vadd.bf16 %v788_v35, %v687_v10  ;;  %v821_v10 = vld [vmem:[#allocation8 + $0x48] sm:$0xff] }
 0x16d   :  { %v800_v42 = vadd.bf16 %v774_v28, %v685_v32  ;;  %v961_v28 = vld [vmem:[#allocation8 + $0x4a8] sm:$0xff] }
 0x16e   :  { %3989 = vmatpush2.bf16.msra.mxu0 %v5841_v36  ;;  %4032 = vmatpush2.bf16.msra.mxu1 %v5969_v37  ;;  %v5922_v36 = vcombine.high %v1260_v25, %v1264_v26  ;;  %v869_v37 = vld [vmem:[#allocation8 + $0x1c8] sm:$0xff]  ;;  %v6568_v58 = vmax.bf16 %v6402_v0, %v802_v43 }
 0x16f   :  { %3990 = vmatprep.subr.bf16.mxu0 %v5834_v38  ;;  %4033 = vmatprep.subr.bf16.mxu1 %v5962_v39  ;;  %v873_v38 = vld [vmem:[#allocation8 + $0x1e8] sm:$0xff]  ;;  %v6565_v56 = vmax.bf16 %v6402_v0, %v800_v42 }
 0x170   :  { %v997_v39 = vld [vmem:[#allocation8 + $0x5c8] sm:$0xff]  ;;  %v5532_v6 = vcombine.high %v869_v37, %v873_v38  ;;  %v5531_v12 = vcombine.low %v869_v37, %v873_v38 }
 0x171   :  { %v5659_v57 = vcombine.low %v997_v39, %v1001_v40  ;;  %v833_v25 = vld [vmem:[#allocation8 + $0xa8] sm:$0xff] }
 0x172   :  { %3991 = vmatpush2.bf16.msra.mxu0 %v5833_v44  ;;  %4034 = vmatpush2.bf16.msra.mxu1 %v5961_v49  ;;  %v5660_v44 = vcombine.high %v997_v39, %v1001_v40  ;;  %v861_v49 = vld [vmem:[#allocation8 + $0x188] sm:$0xff]  ;;  %v5491_v38 = vcombine.low %v829_v24, %v833_v25 }
 0x173   :  { %3992 = vmatprep.subr.bf16.mxu0 %v5826_v51  ;;  %4035 = vmatprep.subr.bf16.mxu1 %v5954_v54  ;;  %v989_v51 = vld [vmem:[#allocation8 + $0x588] sm:$0xff]  ;;  %v5524_v59 = vcombine.high %v861_v49, %v865_v55  ;;  %v5523_v7 = vcombine.low %v861_v49, %v865_v55 }
 0x174   :  { %v993_v54 = vld [vmem:[#allocation8 + $0x5a8] sm:$0xff] }
 0x175   :  { %v5651_v8 = vcombine.low %v989_v51, %v993_v54  ;;  %v957_v26 = vld [vmem:[#allocation8 + $0x488] sm:$0xff] }
 0x176   :  { %3993 = vmatpush2.bf16.msra.mxu0 %v5825_v60  ;;  %4036 = vmatpush2.bf16.msra.mxu1 %v5953_v61  ;;  %v853_v60 = vld [vmem:[#allocation8 + $0x148] sm:$0xff]  ;;  %v5619_v39 = vcombine.low %v957_v26, %v961_v28 }
 0x177   :  { %3994 = vmatprep.subr.bf16.mxu0 %v5818_v2  ;;  %4037 = vmatprep.subr.bf16.mxu1 %v5946_v4  ;;  %v857_v61 = vld [vmem:[#allocation8 + $0x168] sm:$0xff]  ;;  %v5652_v2 = vcombine.high %v989_v51, %v993_v54 }
 0x178   :  { %v981_v4 = vld [vmem:[#allocation8 + $0x548] sm:$0xff]  ;;  %v5516_v9 = vcombine.high %v853_v60, %v857_v61 }
 0x179   :  { %v5644_v11 = vcombine.high %v981_v4, %v985_v5  ;;  %v5643_v18 = vcombine.low %v981_v4, %v985_v5  ;;  %v825_v35 = vld [vmem:[#allocation8 + $0x68] sm:$0xff] }
 0x17a   :  { %3995 = vmatpush2.bf16.msra.mxu0 %v5817_v13  ;;  %4038 = vmatpush2.bf16.msra.mxu1 %v5945_v14  ;;  %v845_v13 = vld [vmem:[#allocation8 + $0x108] sm:$0xff]  ;;  %v5484_v40 = vcombine.high %v821_v10, %v825_v35 }
 0x17b   :  { %3996 = vmatprep.subr.bf16.mxu0 %v5810_v15  ;;  %4039 = vmatprep.subr.bf16.mxu1 %v5938_v17  ;;  %v849_v14 = vld [vmem:[#allocation8 + $0x128] sm:$0xff]  ;;  %v5515_v17 = vcombine.low %v853_v60, %v857_v61 }
 0x17c   :  { %v973_v15 = vld [vmem:[#allocation8 + $0x508] sm:$0xff]  ;;  %v5508_v45 = vcombine.high %v845_v13, %v849_v14 }
 0x17d   :  { %v5636_v46 = vcombine.high %v973_v15, %v977_v16  ;;  %v5635_v21 = vcombine.low %v973_v15, %v977_v16  ;;  %v953_v37 = vld [vmem:[#allocation8 + $0x468] sm:$0xff] }
 0x17e   :  { %3997 = vmatpush2.bf16.msra.mxu0 %v5809_v19  ;;  %4040 = vmatpush2.bf16.msra.mxu1 %v5937_v50  ;;  %v965_v19 = vld [vmem:[#allocation8 + $0x4c8] sm:$0xff] }
 0x17f   :  { %3998 = vmatprep.subr.bf16.mxu0 %v5802_v53  ;;  %4041 = vmatprep.subr.bf16.mxu1 %v5930_v22  ;;  %v969_v50 = vld [vmem:[#allocation8 + $0x4e8] sm:$0xff]  ;;  %v5507_v53 = vcombine.low %v845_v13, %v849_v14  ;;  %v5500_v22 = vcombine.high %v837_v52, %v841_v47 }
 0x180   :  { %v5628_v23 = vcombine.high %v965_v19, %v969_v50  ;;  %v5627_v32 = vcombine.low %v965_v19, %v969_v50  ;;  %v813_v42 = vld [vmem:[#allocation8 + $0x8] sm:$0xff] }
 0x181   :  { %v945_v43 = vld [vmem:[#allocation8 + $0x428] sm:$0xff] }
 0x182   :  { %3999 = vmatpush2.bf16.msra.mxu0 %v5801_v29  ;;  %4042 = vmatpush2.bf16.msra.mxu1 %v5929_v33  ;;  %v5499_v29 = vcombine.low %v837_v52, %v841_v47  ;;  %v5492_v33 = vcombine.high %v829_v24, %v833_v25  ;;  %v933_v51 = vld [vmem:[#allocation8 + $0x3c8] sm:$0xff] }
 0x183   :  { %4000 = vmatprep.subr.bf16.mxu0 %v5794_v34  ;;  %4043 = vmatprep.subr.bf16.mxu1 %v5922_v36  ;;  %v5620_v34 = vcombine.high %v957_v26, %v961_v28  ;;  %v949_v36 = vld [vmem:[#allocation8 + $0x448] sm:$0xff] }
 0x184   :  { %v5611_v49 = vcombine.low %v949_v36, %v953_v37  ;;  %v937_v54 = vld [vmem:[#allocation8 + $0x3e8] sm:$0xff] }
 0x185   :  { %v925_v5 = vld [vmem:[#allocation8 + $0x388] sm:$0xff] }
 0x186   :  { %4001 = vmatpush2.bf16.msra.mxu0 %v5793_v41  ;;  %4044 = vmatpush2.bf16.msra.mxu1 %v5921_v48  ;;  %v5612_v41 = vcombine.high %v949_v36, %v953_v37  ;;  %v817_v48 = vld [vmem:[#allocation8 + $0x28] sm:$0xff] }
 0x187   :  { %4056 = vmatprep.subr.bf16.mxu0 %v5532_v6  ;;  %4099 = vmatprep.subr.bf16.mxu1 %v5660_v44  ;;  %v941_v6 = vld [vmem:[#allocation8 + $0x408] sm:$0xff]  ;;  %v5483_v44 = vcombine.low %v821_v10, %v825_v35  ;;  %v5476_v55 = vcombine.high %v813_v42, %v817_v48  ;;  %v5475_v60 = vcombine.low %v813_v42, %v817_v48 }
 0x188   :  { %v5603_v61 = vcombine.low %v941_v6, %v945_v43  ;;  %v917_v16 = vld [vmem:[#allocation8 + $0x348] sm:$0xff] }
 0x189   :  { %4003 = vmatmul.mubr.bf16.vlgmr.msra.gmra.mxu0 %v6565_v56  ;;  %4046 = vmatmul.mubr.bf16.vlgmr.msra.gmra.mxu1 %v6568_v58  ;;  %v909_v50 = vld [vmem:[#allocation8 + $0x308] sm:$0xff] }
 0x18a   :  { %4057 = vmatpush1.bf16.msra.mxu0 %v5531_v12  ;;  %4088 = vmatprep.mubr.bf16.mxu0 %v6509_v62  ;;  %v5604_v12 = vcombine.high %v941_v6, %v945_v43  ;;  %v901_v28 = vld [vmem:[#allocation8 + $0x2c8] sm:$0xff] }
 0x18b   :  { %4100 = vmatpush1.bf16.msra.mxu1 %v5659_v57  ;;  %4131 = vmatprep.mubr.bf16.mxu1 %v6515_v1  ;;  %v1061_v57 = vld [vmem:[#allocation8 + $0x7c8] sm:$0xff] }
 0x18c   :  { %4058 = vmatprep.subr.bf16.mxu0 %v5524_v59  ;;  %4101 = vmatprep.subr.bf16.mxu1 %v5652_v2  ;;  %v1065_v59 = vld [vmem:[#allocation8 + $0x7e8] sm:$0xff]  ;;  %v5596_v2 = vcombine.high %v933_v51, %v937_v54 }
 0x18d   :  { %v5724_v4 = vcombine.high %v1061_v57, %v1065_v59  ;;  %v5723_v13 = vcombine.low %v1061_v57, %v1065_v59  ;;  %v893_v37 = vld [vmem:[#allocation8 + $0x288] sm:$0xff] }
 0x18e   :  { %4059 = vmatpush1.bf16.msra.mxu0 %v5523_v7  ;;  %v929_v7 = vld [vmem:[#allocation8 + $0x3a8] sm:$0xff] }
 0x18f   :  { %4102 = vmatpush1.bf16.msra.mxu1 %v5651_v8  ;;  %4060 = vmatprep.subr.bf16.mxu0 %v5516_v9  ;;  %v1053_v8 = vld [vmem:[#allocation8 + $0x788] sm:$0xff]  ;;  %v5588_v14 = vcombine.high %v925_v5, %v929_v7 }
 0x190   :  { %4103 = vmatprep.subr.bf16.mxu1 %v5644_v11  ;;  %v1057_v9 = vld [vmem:[#allocation8 + $0x7a8] sm:$0xff]  ;;  %v5595_v11 = vcombine.low %v933_v51, %v937_v54 }
 0x191   :  { %v5716_v15 = vcombine.high %v1053_v8, %v1057_v9  ;;  %v5715_v52 = vcombine.low %v1053_v8, %v1057_v9  ;;  %v885_v43 = vld [vmem:[#allocation8 + $0x248] sm:$0xff] }
 0x192   :  { %4061 = vmatpush1.bf16.msra.mxu0 %v5515_v17  ;;  %v921_v17 = vld [vmem:[#allocation8 + $0x368] sm:$0xff] }
 0x193   :  { %4104 = vmatpush1.bf16.msra.mxu1 %v5643_v18  ;;  %4062 = vmatprep.subr.bf16.mxu0 %v5508_v45  ;;  %v1045_v18 = vld [vmem:[#allocation8 + $0x748] sm:$0xff]  ;;  %v5580_v47 = vcombine.high %v917_v16, %v921_v17 }
 0x194   :  { %4105 = vmatprep.subr.bf16.mxu1 %v5636_v46  ;;  %v1049_v45 = vld [vmem:[#allocation8 + $0x768] sm:$0xff]  ;;  %v5587_v46 = vcombine.low %v925_v5, %v929_v7 }
 0x195   :  { %v5708_v19 = vcombine.high %v1045_v18, %v1049_v45  ;;  %v5707_v24 = vcombine.low %v1045_v18, %v1049_v45  ;;  %v877_v59 = vld [vmem:[#allocation8 + $0x208] sm:$0xff] }
 0x196   :  { %4063 = vmatpush1.bf16.msra.mxu0 %v5507_v53  ;;  %v913_v53 = vld [vmem:[#allocation8 + $0x328] sm:$0xff] }
 0x197   :  { %4106 = vmatpush1.bf16.msra.mxu1 %v5635_v21  ;;  %4064 = vmatprep.subr.bf16.mxu0 %v5500_v22  ;;  %v1037_v21 = vld [vmem:[#allocation8 + $0x708] sm:$0xff]  ;;  %v5572_v25 = vcombine.high %v909_v50, %v913_v53 }
 0x198   :  { %4107 = vmatprep.subr.bf16.mxu1 %v5628_v23  ;;  %v1041_v22 = vld [vmem:[#allocation8 + $0x728] sm:$0xff]  ;;  %v5579_v23 = vcombine.low %v917_v16, %v921_v17 }
 0x199   :  { %v5700_v26 = vcombine.high %v1037_v21, %v1041_v22  ;;  %v5699_v10 = vcombine.low %v1037_v21, %v1041_v22  ;;  %v1125_v9 = vld [vmem:[#allocation8 + $0x9c8] sm:$0xff] }
 0x19a   :  { %4065 = vmatpush1.bf16.msra.mxu0 %v5499_v29  ;;  %v905_v29 = vld [vmem:[#allocation8 + $0x2e8] sm:$0xff] }
 0x19b   :  { %4108 = vmatpush1.bf16.msra.mxu1 %v5627_v32  ;;  %4066 = vmatprep.subr.bf16.mxu0 %v5492_v33  ;;  %v1029_v32 = vld [vmem:[#allocation8 + $0x6c8] sm:$0xff]  ;;  %v5564_v35 = vcombine.high %v901_v28, %v905_v29 }
 0x19c   :  { %4109 = vmatprep.subr.bf16.mxu1 %v5620_v34  ;;  %v1033_v33 = vld [vmem:[#allocation8 + $0x6e8] sm:$0xff]  ;;  %v5571_v34 = vcombine.low %v909_v50, %v913_v53 }
 0x19d   :  { %v5692_v36 = vcombine.high %v1029_v32, %v1033_v33  ;;  %v5691_v42 = vcombine.low %v1029_v32, %v1033_v33  ;;  %v1117_v45 = vld [vmem:[#allocation8 + $0x988] sm:$0xff] }
 0x19e   :  { %4067 = vmatpush1.bf16.msra.mxu0 %v5491_v38  ;;  %v897_v38 = vld [vmem:[#allocation8 + $0x2a8] sm:$0xff] }
 0x19f   :  { %4110 = vmatpush1.bf16.msra.mxu1 %v5619_v39  ;;  %4068 = vmatprep.subr.bf16.mxu0 %v5484_v40  ;;  %v1021_v39 = vld [vmem:[#allocation8 + $0x688] sm:$0xff]  ;;  %v5556_v48 = vcombine.high %v893_v37, %v897_v38 }
 0x1a0   :  { %4111 = vmatprep.subr.bf16.mxu1 %v5612_v41  ;;  %v1025_v40 = vld [vmem:[#allocation8 + $0x6a8] sm:$0xff]  ;;  %v5563_v41 = vcombine.low %v901_v28, %v905_v29 }
 0x1a1   :  { %v5684_v6 = vcombine.high %v1021_v39, %v1025_v40  ;;  %v5683_v51 = vcombine.low %v1021_v39, %v1025_v40  ;;  %v1109_v21 = vld [vmem:[#allocation8 + $0x948] sm:$0xff] }
 0x1a2   :  { %4069 = vmatpush1.bf16.msra.mxu0 %v5483_v44  ;;  %v889_v44 = vld [vmem:[#allocation8 + $0x268] sm:$0xff] }
 0x1a3   :  { %4112 = vmatpush1.bf16.msra.mxu1 %v5611_v49  ;;  %4070 = vmatprep.subr.bf16.mxu0 %v5476_v55  ;;  %v1013_v49 = vld [vmem:[#allocation8 + $0x648] sm:$0xff]  ;;  %v5548_v54 = vcombine.high %v885_v43, %v889_v44 }
 0x1a4   :  { %4113 = vmatprep.subr.bf16.mxu1 %v5604_v12  ;;  %v1017_v55 = vld [vmem:[#allocation8 + $0x668] sm:$0xff]  ;;  %v5555_v12 = vcombine.low %v893_v37, %v897_v38 }
 0x1a5   :  { %v5676_v57 = vcombine.high %v1013_v49, %v1017_v55  ;;  %v5675_v5 = vcombine.low %v1013_v49, %v1017_v55  ;;  %v1113_v22 = vld [vmem:[#allocation8 + $0x968] sm:$0xff] }
 0x1a6   :  { %4071 = vmatpush1.bf16.msra.mxu0 %v5475_v60  ;;  %v881_v60 = vld [vmem:[#allocation8 + $0x228] sm:$0xff]  ;;  %v5772_v29 = vcombine.high %v1109_v21, %v1113_v22 }
 0x1a7   :  { %4114 = vmatpush1.bf16.msra.mxu1 %v5603_v61  ;;  %4072 = vmatprep.subr.bf16.mxu0 %v5596_v2  ;;  %v1005_v61 = vld [vmem:[#allocation8 + $0x608] sm:$0xff]  ;;  %v5540_v7 = vcombine.high %v877_v59, %v881_v60 }
 0x1a8   :  { %4115 = vmatprep.subr.bf16.mxu1 %v5724_v4  ;;  %v1009_v2 = vld [vmem:[#allocation8 + $0x628] sm:$0xff]  ;;  %v5547_v4 = vcombine.low %v885_v43, %v889_v44 }
 0x1a9   :  { %v5668_v8 = vcombine.high %v1005_v61, %v1009_v2  ;;  %v5667_v16 = vcombine.low %v1005_v61, %v1009_v2  ;;  %v1101_v33 = vld [vmem:[#allocation8 + $0x908] sm:$0xff] }
 0x1aa   :  { %4073 = vmatpush2.bf16.msra.mxu0 %v5595_v11  ;;  %v1129_v11 = vld [vmem:[#allocation8 + $0x9e8] sm:$0xff] }
 0x1ab   :  { %4116 = vmatpush2.bf16.msra.mxu1 %v5723_v13  ;;  %4074 = vmatprep.subr.bf16.mxu0 %v5588_v14  ;;  %v1253_v13 = vld [vmem:[#allocation8 + $0xdc8] sm:$0xff]  ;;  %v5788_v17 = vcombine.high %v1125_v9, %v1129_v11 }
 0x1ac   :  { %4117 = vmatprep.subr.bf16.mxu1 %v5716_v15  ;;  %v1257_v14 = vld [vmem:[#allocation8 + $0xde8] sm:$0xff]  ;;  %v5539_v15 = vcombine.low %v877_v59, %v881_v60 }
 0x1ad   :  { %v5916_v18 = vcombine.high %v1253_v13, %v1257_v14  ;;  %v5915_v50 = vcombine.low %v1253_v13, %v1257_v14  ;;  %v1093_v40 = vld [vmem:[#allocation8 + $0x8c8] sm:$0xff] }
 0x1ae   :  { %4075 = vmatpush2.bf16.msra.mxu0 %v5587_v46  ;;  %v1121_v46 = vld [vmem:[#allocation8 + $0x9a8] sm:$0xff] }
 0x1af   :  { %4118 = vmatpush2.bf16.msra.mxu1 %v5715_v52  ;;  %4076 = vmatprep.subr.bf16.mxu0 %v5580_v47  ;;  %v5787_v52 = vcombine.low %v1125_v9, %v1129_v11  ;;  %v1245_v47 = vld [vmem:[#allocation8 + $0xd88] sm:$0xff]  ;;  %v5780_v53 = vcombine.high %v1117_v45, %v1121_v46 }
 0x1b0   :  { %4119 = vmatprep.subr.bf16.mxu1 %v5708_v19  ;;  %v1249_v19 = vld [vmem:[#allocation8 + $0xda8] sm:$0xff] }
 0x1b1   :  { %v5907_v28 = vcombine.low %v1245_v47, %v1249_v19  ;;  %v1085_v55 = vld [vmem:[#allocation8 + $0x888] sm:$0xff] }
 0x1b2   :  { %4077 = vmatpush2.bf16.msra.mxu0 %v5579_v23  ;;  %v5908_v23 = vcombine.high %v1245_v47, %v1249_v19  ;;  %v1077_v2 = vld [vmem:[#allocation8 + $0x848] sm:$0xff] }
 0x1b3   :  { %4120 = vmatpush2.bf16.msra.mxu1 %v5707_v24  ;;  %4078 = vmatprep.subr.bf16.mxu0 %v5572_v25  ;;  %v1237_v24 = vld [vmem:[#allocation8 + $0xd48] sm:$0xff] }
 0x1b4   :  { %4121 = vmatprep.subr.bf16.mxu1 %v5700_v26  ;;  %v1241_v25 = vld [vmem:[#allocation8 + $0xd68] sm:$0xff]  ;;  %v5779_v26 = vcombine.low %v1117_v45, %v1121_v46 }
 0x1b5   :  { %v5900_v32 = vcombine.high %v1237_v24, %v1241_v25  ;;  %v5899_v37 = vcombine.low %v1237_v24, %v1241_v25  ;;  %v1069_v14 = vld [vmem:[#allocation8 + $0x808] sm:$0xff] }
 0x1b6   :  { %4079 = vmatpush2.bf16.msra.mxu0 %v5571_v34  ;;  %v1105_v34 = vld [vmem:[#allocation8 + $0x928] sm:$0xff] }
 0x1b7   :  { %4122 = vmatpush2.bf16.msra.mxu1 %v5699_v10  ;;  %4080 = vmatprep.subr.bf16.mxu0 %v5564_v35  ;;  %v1229_v10 = vld [vmem:[#allocation8 + $0xd08] sm:$0xff]  ;;  %v5764_v38 = vcombine.high %v1101_v33, %v1105_v34 }
 0x1b8   :  { %4123 = vmatprep.subr.bf16.mxu1 %v5692_v36  ;;  %v1233_v35 = vld [vmem:[#allocation8 + $0xd28] sm:$0xff]  ;;  %v5771_v36 = vcombine.low %v1109_v21, %v1113_v22 }
 0x1b9   :  { %v5892_v39 = vcombine.high %v1229_v10, %v1233_v35  ;;  %v5891_v43 = vcombine.low %v1229_v10, %v1233_v35  ;;  %v1189_v47 = vld [vmem:[#allocation8 + $0xbc8] sm:$0xff] }
 0x1ba   :  { %4081 = vmatpush2.bf16.msra.mxu0 %v5563_v41  ;;  %v1097_v41 = vld [vmem:[#allocation8 + $0x8e8] sm:$0xff] }
 0x1bb   :  { %4124 = vmatpush2.bf16.msra.mxu1 %v5691_v42  ;;  %4082 = vmatprep.subr.bf16.mxu0 %v5556_v48  ;;  %v1221_v42 = vld [vmem:[#allocation8 + $0xcc8] sm:$0xff]  ;;  %v5756_v44 = vcombine.high %v1093_v40, %v1097_v41 }
 0x1bc   :  { %4125 = vmatprep.subr.bf16.mxu1 %v5684_v6  ;;  %v1225_v48 = vld [vmem:[#allocation8 + $0xce8] sm:$0xff]  ;;  %v5763_v6 = vcombine.low %v1101_v33, %v1105_v34 }
 0x1bd   :  { %v5884_v49 = vcombine.high %v1221_v42, %v1225_v48  ;;  %v5883_v59 = vcombine.low %v1221_v42, %v1225_v48  ;;  %v1193_v19 = vld [vmem:[#allocation8 + $0xbe8] sm:$0xff] }
 0x1be   :  { %4083 = vmatpush2.bf16.msra.mxu0 %v5555_v12  ;;  %v1089_v12 = vld [vmem:[#allocation8 + $0x8a8] sm:$0xff] }
 0x1bf   :  { %4126 = vmatpush2.bf16.msra.mxu1 %v5683_v51  ;;  %4084 = vmatprep.subr.bf16.mxu0 %v5548_v54  ;;  %v1213_v51 = vld [vmem:[#allocation8 + $0xc88] sm:$0xff]  ;;  %v5748_v60 = vcombine.high %v1085_v55, %v1089_v12 }
 0x1c0   :  { %4127 = vmatprep.subr.bf16.mxu1 %v5676_v57  ;;  %v1217_v54 = vld [vmem:[#allocation8 + $0xca8] sm:$0xff]  ;;  %v5755_v57 = vcombine.low %v1093_v40, %v1097_v41 }
 0x1c1   :  { %v5876_v61 = vcombine.high %v1213_v51, %v1217_v54  ;;  %v5875_v9 = vcombine.low %v1213_v51, %v1217_v54  ;;  %v1181_v25 = vld [vmem:[#allocation8 + $0xb88] sm:$0xff] }
 0x1c2   :  { %4085 = vmatpush2.bf16.msra.mxu0 %v5547_v4  ;;  %v1081_v4 = vld [vmem:[#allocation8 + $0x868] sm:$0xff] }
 0x1c3   :  { %4128 = vmatpush2.bf16.msra.mxu1 %v5675_v5  ;;  %4086 = vmatprep.subr.bf16.mxu0 %v5540_v7  ;;  %v1205_v5 = vld [vmem:[#allocation8 + $0xc48] sm:$0xff]  ;;  %v5740_v11 = vcombine.high %v1077_v2, %v1081_v4 }
 0x1c4   :  { %4129 = vmatprep.subr.bf16.mxu1 %v5668_v8  ;;  %v1209_v7 = vld [vmem:[#allocation8 + $0xc68] sm:$0xff]  ;;  %v5747_v8 = vcombine.low %v1085_v55, %v1089_v12 }
 0x1c5   :  { %v5868_v13 = vcombine.high %v1205_v5, %v1209_v7  ;;  %v5867_v45 = vcombine.low %v1205_v5, %v1209_v7  ;;  %v1173_v35 = vld [vmem:[#allocation8 + $0xb48] sm:$0xff] }
 0x1c6   :  { %4087 = vmatpush2.bf16.msra.mxu0 %v5539_v15  ;;  %v1073_v15 = vld [vmem:[#allocation8 + $0x828] sm:$0xff] }
 0x1c7   :  { %4130 = vmatpush2.bf16.msra.mxu1 %v5667_v16  ;;  %4142 = vmatprep.subr.bf16.mxu0 %v5788_v17  ;;  %v1197_v16 = vld [vmem:[#allocation8 + $0xc08] sm:$0xff]  ;;  %v5732_v46 = vcombine.high %v1069_v14, %v1073_v15  ;;  %v5731_v21 = vcombine.low %v1069_v14, %v1073_v15 }
 0x1c8   :  { %4185 = vmatprep.subr.bf16.mxu1 %v5916_v18  ;;  %v1201_v17 = vld [vmem:[#allocation8 + $0xc28] sm:$0xff]  ;;  %v5739_v18 = vcombine.low %v1077_v2, %v1081_v4 }
 0x1c9   :  { %4089 = vmatmul.mubr.bf16.vlgmr.msra.gmra.mxu0 %v6512_v63  ;;  %v5859_v22 = vcombine.low %v1197_v16, %v1201_v17  ;;  %v1165_v48 = vld [vmem:[#allocation8 + $0xb08] sm:$0xff] }
 0x1ca   :  { %4132 = vmatmul.mubr.bf16.vlgmr.msra.gmra.mxu1 %v6518_v3  ;;  %4143 = vmatpush1.bf16.msra.mxu0 %v5787_v52  ;;  %v5860_v52 = vcombine.high %v1197_v16, %v1201_v17  ;;  %v1157_v54 = vld [vmem:[#allocation8 + $0xac8] sm:$0xff] }
 0x1cb   :  { %4174 = vmatprep.mubr.bf16.mxu0 %v6549_v27  ;;  %4186 = vmatpush1.bf16.msra.mxu1 %v5915_v50  ;;  %v1317_v50 = vld [vmem:[#allocation8 + $0xfc8] sm:$0xff] }
 0x1cc   :  { %4217 = vmatprep.mubr.bf16.mxu1 %v6552_v31  ;;  %4144 = vmatprep.subr.bf16.mxu0 %v5780_v53  ;;  %v1321_v53 = vld [vmem:[#allocation8 + $0xfe8] sm:$0xff] }
 0x1cd   :  { %4187 = vmatprep.subr.bf16.mxu1 %v5908_v23  ;;  %v5852_v23 = vcombine.high %v1189_v47, %v1193_v19  ;;  %v5980_v24 = vcombine.high %v1317_v50, %v1321_v53  ;;  %v5979_v33 = vcombine.low %v1317_v50, %v1321_v53  ;;  %v1149_v7 = vld [vmem:[#allocation8 + $0xa88] sm:$0xff] }
 0x1ce   :  { %4145 = vmatpush1.bf16.msra.mxu0 %v5779_v26  ;;  %v1185_v26 = vld [vmem:[#allocation8 + $0xba8] sm:$0xff] }
 0x1cf   :  { %4188 = vmatpush1.bf16.msra.mxu1 %v5907_v28  ;;  %4146 = vmatprep.subr.bf16.mxu0 %v5772_v29  ;;  %v1309_v28 = vld [vmem:[#allocation8 + $0xf88] sm:$0xff]  ;;  %v5844_v34 = vcombine.high %v1181_v25, %v1185_v26 }
 0x1d0   :  { %4189 = vmatprep.subr.bf16.mxu1 %v5900_v32  ;;  %v1313_v29 = vld [vmem:[#allocation8 + $0xfa8] sm:$0xff]  ;;  %v5851_v32 = vcombine.low %v1189_v47, %v1193_v19 }
 0x1d1   :  { %v5972_v10 = vcombine.high %v1309_v28, %v1313_v29  ;;  %v5971_v40 = vcombine.low %v1309_v28, %v1313_v29  ;;  %v1141_v17 = vld [vmem:[#allocation8 + $0xa48] sm:$0xff]  ;;  %v870_v29 = vld [vmem:[#allocation8 + $0x1d0] sm:$0xff] }
 0x1d2   :  { %4147 = vmatpush1.bf16.msra.mxu0 %v5771_v36  ;;  %v1177_v36 = vld [vmem:[#allocation8 + $0xb68] sm:$0xff] }
 0x1d3   :  { %4190 = vmatpush1.bf16.msra.mxu1 %v5899_v37  ;;  %4148 = vmatprep.subr.bf16.mxu0 %v5764_v38  ;;  %v1301_v37 = vld [vmem:[#allocation8 + $0xf48] sm:$0xff]  ;;  %v5836_v41 = vcombine.high %v1173_v35, %v1177_v36 }
 0x1d4   :  { %4191 = vmatprep.subr.bf16.mxu1 %v5892_v39  ;;  %v1305_v38 = vld [vmem:[#allocation8 + $0xf68] sm:$0xff]  ;;  %v5843_v39 = vcombine.low %v1181_v25, %v1185_v26 }
 0x1d5   :  { %v5964_v42 = vcombine.high %v1301_v37, %v1305_v38  ;;  %v5963_v55 = vcombine.low %v1301_v37, %v1305_v38  ;;  %v1133_v53 = vld [vmem:[#allocation8 + $0xa08] sm:$0xff]  ;;  %v862_v38 = vld [vmem:[#allocation8 + $0x190] sm:$0xff] }
 0x1d6   :  { %4149 = vmatpush1.bf16.msra.mxu0 %v5763_v6  ;;  %v1169_v6 = vld [vmem:[#allocation8 + $0xb28] sm:$0xff] }
 0x1d7   :  { %4192 = vmatpush1.bf16.msra.mxu1 %v5891_v43  ;;  %4150 = vmatprep.subr.bf16.mxu0 %v5756_v44  ;;  %v1293_v43 = vld [vmem:[#allocation8 + $0xf08] sm:$0xff]  ;;  %v5828_v12 = vcombine.high %v1165_v48, %v1169_v6 }
 0x1d8   :  { %4193 = vmatprep.subr.bf16.mxu1 %v5884_v49  ;;  %v1297_v44 = vld [vmem:[#allocation8 + $0xf28] sm:$0xff]  ;;  %v5835_v49 = vcombine.low %v1173_v35, %v1177_v36 }
 0x1d9   :  { %v5956_v51 = vcombine.high %v1293_v43, %v1297_v44  ;;  %v5955_v2 = vcombine.low %v1293_v43, %v1297_v44  ;;  %v854_v43 = vld [vmem:[#allocation8 + $0x150] sm:$0xff] }
 0x1da   :  { %4151 = vmatpush1.bf16.msra.mxu0 %v5755_v57  ;;  %v1161_v57 = vld [vmem:[#allocation8 + $0xae8] sm:$0xff]  ;;  %v858_v44 = vld [vmem:[#allocation8 + $0x170] sm:$0xff] }
 0x1db   :  { %4194 = vmatpush1.bf16.msra.mxu1 %v5883_v59  ;;  %4152 = vmatprep.subr.bf16.mxu0 %v5748_v60  ;;  %v1285_v59 = vld [vmem:[#allocation8 + $0xec8] sm:$0xff]  ;;  %v5820_v4 = vcombine.high %v1157_v54, %v1161_v57 }
 0x1dc   :  { %4195 = vmatprep.subr.bf16.mxu1 %v5876_v61  ;;  %v1289_v60 = vld [vmem:[#allocation8 + $0xee8] sm:$0xff]  ;;  %v5827_v61 = vcombine.low %v1165_v48, %v1169_v6 }
 0x1dd   :  { %v5948_v5 = vcombine.high %v1285_v59, %v1289_v60  ;;  %v5947_v14 = vcombine.low %v1285_v59, %v1289_v60  ;;  %v846_v60 = vld [vmem:[#allocation8 + $0x110] sm:$0xff] }
 0x1de   :  { %4153 = vmatpush1.bf16.msra.mxu0 %v5747_v8  ;;  %v1153_v8 = vld [vmem:[#allocation8 + $0xaa8] sm:$0xff] }
 0x1df   :  { %4196 = vmatpush1.bf16.msra.mxu1 %v5875_v9  ;;  %4154 = vmatprep.subr.bf16.mxu0 %v5740_v11  ;;  %v1277_v9 = vld [vmem:[#allocation8 + $0xe88] sm:$0xff]  ;;  %v5812_v15 = vcombine.high %v1149_v7, %v1153_v8 }
 0x1e0   :  { %4197 = vmatprep.subr.bf16.mxu1 %v5868_v13  ;;  %v1281_v11 = vld [vmem:[#allocation8 + $0xea8] sm:$0xff]  ;;  %v5819_v13 = vcombine.low %v1157_v54, %v1161_v57  ;;  %v5518_v57 = vcombine.high %v854_v43, %v858_v44 }
 0x1e1   :  { %v5940_v16 = vcombine.high %v1277_v9, %v1281_v11  ;;  %v5939_v47 = vcombine.low %v1277_v9, %v1281_v11  ;;  %v838_v11 = vld [vmem:[#allocation8 + $0xd0] sm:$0xff] }
 0x1e2   :  { %4155 = vmatpush1.bf16.msra.mxu0 %v5739_v18  ;;  %v1145_v18 = vld [vmem:[#allocation8 + $0xa68] sm:$0xff] }
 0x1e3   :  { %4198 = vmatpush1.bf16.msra.mxu1 %v5867_v45  ;;  %4156 = vmatprep.subr.bf16.mxu0 %v5732_v46  ;;  %v1269_v45 = vld [vmem:[#allocation8 + $0xe48] sm:$0xff]  ;;  %v5804_v19 = vcombine.high %v1141_v17, %v1145_v18 }
 0x1e4   :  { %4199 = vmatprep.subr.bf16.mxu1 %v5860_v52  ;;  %v1273_v46 = vld [vmem:[#allocation8 + $0xe68] sm:$0xff]  ;;  %v5811_v52 = vcombine.low %v1149_v7, %v1153_v8 }
 0x1e5   :  { %v5932_v50 = vcombine.high %v1269_v45, %v1273_v46  ;;  %v5931_v25 = vcombine.low %v1269_v45, %v1273_v46  ;;  %v830_v46 = vld [vmem:[#allocation8 + $0x90] sm:$0xff] }
 0x1e6   :  { %4157 = vmatpush1.bf16.msra.mxu0 %v5731_v21  ;;  %v1137_v21 = vld [vmem:[#allocation8 + $0xa28] sm:$0xff] }
 0x1e7   :  { %4200 = vmatpush1.bf16.msra.mxu1 %v5859_v22  ;;  %4158 = vmatprep.subr.bf16.mxu0 %v5852_v23  ;;  %v1261_v22 = vld [vmem:[#allocation8 + $0xe08] sm:$0xff]  ;;  %v5796_v26 = vcombine.high %v1133_v53, %v1137_v21 }
 0x1e8   :  { %4201 = vmatprep.subr.bf16.mxu1 %v5980_v24  ;;  %v1265_v23 = vld [vmem:[#allocation8 + $0xe28] sm:$0xff]  ;;  %v5803_v24 = vcombine.low %v1141_v17, %v1145_v18 }
 0x1e9   :  { %v5924_v28 = vcombine.high %v1261_v22, %v1265_v23  ;;  %v5923_v35 = vcombine.low %v1261_v22, %v1265_v23  ;;  %v822_v23 = vld [vmem:[#allocation8 + $0x50] sm:$0xff] }
 0x1ea   :  { %4159 = vmatpush2.bf16.msra.mxu0 %v5851_v32  ;;  %v874_v32 = vld [vmem:[#allocation8 + $0x1f0] sm:$0xff] }
 0x1eb   :  { %4202 = vmatpush2.bf16.msra.mxu1 %v5979_v33  ;;  %4160 = vmatprep.subr.bf16.mxu0 %v5844_v34  ;;  %v998_v33 = vld [vmem:[#allocation8 + $0x5d0] sm:$0xff]  ;;  %v5534_v36 = vcombine.high %v870_v29, %v874_v32 }
 0x1ec   :  { %4203 = vmatprep.subr.bf16.mxu1 %v5972_v10  ;;  %v1002_v34 = vld [vmem:[#allocation8 + $0x5f0] sm:$0xff]  ;;  %v5795_v10 = vcombine.low %v1133_v53, %v1137_v21 }
 0x1ed   :  { %v5662_v37 = vcombine.high %v998_v33, %v1002_v34  ;;  %v5661_v48 = vcombine.low %v998_v33, %v1002_v34  ;;  %v814_v34 = vld [vmem:[#allocation8 + $0x10] sm:$0xff] }
 0x1ee   :  { %4161 = vmatpush2.bf16.msra.mxu0 %v5843_v39  ;;  %v866_v39 = vld [vmem:[#allocation8 + $0x1b0] sm:$0xff] }
 0x1ef   :  { %4204 = vmatpush2.bf16.msra.mxu1 %v5971_v40  ;;  %4162 = vmatprep.subr.bf16.mxu0 %v5836_v41  ;;  %v5533_v40 = vcombine.low %v870_v29, %v874_v32  ;;  %v990_v41 = vld [vmem:[#allocation8 + $0x590] sm:$0xff]  ;;  %v5526_v6 = vcombine.high %v862_v38, %v866_v39 }
 0x1f0   :  { %4205 = vmatprep.subr.bf16.mxu1 %v5964_v42  ;;  %v994_v42 = vld [vmem:[#allocation8 + $0x5b0] sm:$0xff] }
 0x1f1   :  { %v5653_v54 = vcombine.low %v990_v41, %v994_v42 }
 0x1f2   :  { %4163 = vmatpush2.bf16.msra.mxu0 %v5835_v49  ;;  %v5654_v49 = vcombine.high %v990_v41, %v994_v42  ;;  %v934_v41 = vld [vmem:[#allocation8 + $0x3d0] sm:$0xff] }
 0x1f3   :  { %4206 = vmatpush2.bf16.msra.mxu1 %v5963_v55  ;;  %4164 = vmatprep.subr.bf16.mxu0 %v5828_v12  ;;  %v982_v55 = vld [vmem:[#allocation8 + $0x550] sm:$0xff] }
 0x1f4   :  { %4207 = vmatprep.subr.bf16.mxu1 %v5956_v51  ;;  %v986_v12 = vld [vmem:[#allocation8 + $0x570] sm:$0xff]  ;;  %v5525_v51 = vcombine.low %v862_v38, %v866_v39 }
 0x1f5   :  { %v5646_v59 = vcombine.high %v982_v55, %v986_v12  ;;  %v5645_v7 = vcombine.low %v982_v55, %v986_v12  ;;  %v938_v42 = vld [vmem:[#allocation8 + $0x3f0] sm:$0xff] }
 0x1f6   :  { %4165 = vmatpush2.bf16.msra.mxu0 %v5827_v61  ;;  %v850_v61 = vld [vmem:[#allocation8 + $0x130] sm:$0xff] }
 0x1f7   :  { %4208 = vmatpush2.bf16.msra.mxu1 %v5955_v2  ;;  %4166 = vmatprep.subr.bf16.mxu0 %v5820_v4  ;;  %v974_v2 = vld [vmem:[#allocation8 + $0x510] sm:$0xff]  ;;  %v5510_v8 = vcombine.high %v846_v60, %v850_v61 }
 0x1f8   :  { %4209 = vmatprep.subr.bf16.mxu1 %v5948_v5  ;;  %v978_v4 = vld [vmem:[#allocation8 + $0x530] sm:$0xff]  ;;  %v5517_v5 = vcombine.low %v854_v43, %v858_v44 }
 0x1f9   :  { %v5638_v9 = vcombine.high %v974_v2, %v978_v4  ;;  %v5637_v17 = vcombine.low %v974_v2, %v978_v4  ;;  %v926_v12 = vld [vmem:[#allocation8 + $0x390] sm:$0xff] }
 0x1fa   :  { %4167 = vmatpush2.bf16.msra.mxu0 %v5819_v13  ;;  %v842_v13 = vld [vmem:[#allocation8 + $0xf0] sm:$0xff] }
 0x1fb   :  { %4210 = vmatpush2.bf16.msra.mxu1 %v5947_v14  ;;  %4168 = vmatprep.subr.bf16.mxu0 %v5812_v15  ;;  %v966_v14 = vld [vmem:[#allocation8 + $0x4d0] sm:$0xff]  ;;  %v5502_v18 = vcombine.high %v838_v11, %v842_v13 }
 0x1fc   :  { %4211 = vmatprep.subr.bf16.mxu1 %v5940_v16  ;;  %v970_v15 = vld [vmem:[#allocation8 + $0x4f0] sm:$0xff]  ;;  %v5509_v16 = vcombine.low %v846_v60, %v850_v61 }
 0x1fd   :  { %v5630_v45 = vcombine.high %v966_v14, %v970_v15  ;;  %v5629_v53 = vcombine.low %v966_v14, %v970_v15  ;;  %v918_v4 = vld [vmem:[#allocation8 + $0x350] sm:$0xff] }
 0x1fe   :  { %4169 = vmatpush2.bf16.msra.mxu0 %v5811_v52  ;;  %v834_v52 = vld [vmem:[#allocation8 + $0xb0] sm:$0xff] }
 0x1ff   :  { %4212 = vmatpush2.bf16.msra.mxu1 %v5939_v47  ;;  %4170 = vmatprep.subr.bf16.mxu0 %v5804_v19  ;;  %v958_v47 = vld [vmem:[#allocation8 + $0x490] sm:$0xff]  ;;  %v5494_v21 = vcombine.high %v830_v46, %v834_v52 }
 0x200   :  { %4213 = vmatprep.subr.bf16.mxu1 %v5932_v50  ;;  %v962_v19 = vld [vmem:[#allocation8 + $0x4b0] sm:$0xff]  ;;  %v5501_v50 = vcombine.low %v838_v11, %v842_v13 }
 0x201   :  { %v5622_v22 = vcombine.high %v958_v47, %v962_v19  ;;  %v5621_v29 = vcombine.low %v958_v47, %v962_v19  ;;  %v910_v15 = vld [vmem:[#allocation8 + $0x310] sm:$0xff] }
 0x202   :  { %4171 = vmatpush2.bf16.msra.mxu0 %v5803_v24  ;;  %v826_v24 = vld [vmem:[#allocation8 + $0x70] sm:$0xff] }
 0x203   :  { %4214 = vmatpush2.bf16.msra.mxu1 %v5931_v25  ;;  %4172 = vmatprep.subr.bf16.mxu0 %v5796_v26  ;;  %v950_v25 = vld [vmem:[#allocation8 + $0x450] sm:$0xff]  ;;  %v5486_v32 = vcombine.high %v822_v23, %v826_v24 }
 0x204   :  { %4215 = vmatprep.subr.bf16.mxu1 %v5924_v28  ;;  %v954_v26 = vld [vmem:[#allocation8 + $0x470] sm:$0xff]  ;;  %v5493_v28 = vcombine.low %v830_v46, %v834_v52 }
 0x205   :  { %v5614_v33 = vcombine.high %v950_v25, %v954_v26  ;;  %v5613_v38 = vcombine.low %v950_v25, %v954_v26  ;;  %v902_v19 = vld [vmem:[#allocation8 + $0x2d0] sm:$0xff] }
 0x206   :  { %4173 = vmatpush2.bf16.msra.mxu0 %v5795_v10  ;;  %v818_v10 = vld [vmem:[#allocation8 + $0x30] sm:$0xff] }
 0x207   :  { %4216 = vmatpush2.bf16.msra.mxu1 %v5923_v35  ;;  %4228 = vmatprep.subr.bf16.mxu0 %v5534_v36  ;;  %v942_v35 = vld [vmem:[#allocation8 + $0x410] sm:$0xff]  ;;  %v5478_v39 = vcombine.high %v814_v34, %v818_v10  ;;  %v5477_v43 = vcombine.low %v814_v34, %v818_v10 }
 0x208   :  { %4271 = vmatprep.subr.bf16.mxu1 %v5662_v37  ;;  %v946_v36 = vld [vmem:[#allocation8 + $0x430] sm:$0xff]  ;;  %v5485_v37 = vcombine.low %v822_v23, %v826_v24 }
 0x209   :  { %4175 = vmatmul.mubr.bf16.vlgmr.msra.gmra.mxu0 %v6565_v56  ;;  %v5605_v44 = vcombine.low %v942_v35, %v946_v36  ;;  %v894_v26 = vld [vmem:[#allocation8 + $0x290] sm:$0xff] }
 0x20a   :  { %4218 = vmatmul.mubr.bf16.vlgmr.msra.gmra.mxu1 %v6568_v58  ;;  %4229 = vmatpush1.bf16.msra.mxu0 %v5533_v40  ;;  %v5606_v40 = vcombine.high %v942_v35, %v946_v36  ;;  %v886_v36 = vld [vmem:[#allocation8 + $0x250] sm:$0xff] }
 0x20b   :  { %4260 = vmatprep.mubr.bf16.mxu0 %v6509_v62  ;;  %4272 = vmatpush1.bf16.msra.mxu1 %v5661_v48  ;;  %v1062_v48 = vld [vmem:[#allocation8 + $0x7d0] sm:$0xff] }
 0x20c   :  { %4303 = vmatprep.mubr.bf16.mxu1 %v6515_v1  ;;  %4230 = vmatprep.subr.bf16.mxu0 %v5526_v6  ;;  %v1066_v6 = vld [vmem:[#allocation8 + $0x7f0] sm:$0xff] }
 0x20d   :  { %4273 = vmatprep.subr.bf16.mxu1 %v5654_v49  ;;  %v5598_v49 = vcombine.high %v934_v41, %v938_v42  ;;  %v5726_v55 = vcombine.high %v1062_v48, %v1066_v6  ;;  %v5725_v60 = vcombine.low %v1062_v48, %v1066_v6  ;;  %v878_v6 = vld [vmem:[#allocation8 + $0x210] sm:$0xff] }
 0x20e   :  { %4231 = vmatpush1.bf16.msra.mxu0 %v5525_v51  ;;  %v930_v51 = vld [vmem:[#allocation8 + $0x3b0] sm:$0xff] }
 0x20f   :  { %4274 = vmatpush1.bf16.msra.mxu1 %v5653_v54  ;;  %4232 = vmatprep.subr.bf16.mxu0 %v5518_v57  ;;  %v1054_v54 = vld [vmem:[#allocation8 + $0x790] sm:$0xff]  ;;  %v5590_v61 = vcombine.high %v926_v12, %v930_v51 }
 0x210   :  { %4275 = vmatprep.subr.bf16.mxu1 %v5646_v59  ;;  %v1058_v57 = vld [vmem:[#allocation8 + $0x7b0] sm:$0xff]  ;;  %v5597_v59 = vcombine.low %v934_v41, %v938_v42 }
 0x211   :  { %v5718_v2 = vcombine.high %v1054_v54, %v1058_v57  ;;  %v5717_v11 = vcombine.low %v1054_v54, %v1058_v57  ;;  %v1126_v57 = vld [vmem:[#allocation8 + $0x9d0] sm:$0xff] }
 0x212   :  { %4233 = vmatpush1.bf16.msra.mxu0 %v5517_v5  ;;  %v922_v5 = vld [vmem:[#allocation8 + $0x370] sm:$0xff] }
 0x213   :  { %4276 = vmatpush1.bf16.msra.mxu1 %v5645_v7  ;;  %4234 = vmatprep.subr.bf16.mxu0 %v5510_v8  ;;  %v1046_v7 = vld [vmem:[#allocation8 + $0x750] sm:$0xff]  ;;  %v5582_v13 = vcombine.high %v918_v4, %v922_v5 }
 0x214   :  { %4277 = vmatprep.subr.bf16.mxu1 %v5638_v9  ;;  %v1050_v8 = vld [vmem:[#allocation8 + $0x770] sm:$0xff]  ;;  %v5589_v9 = vcombine.low %v926_v12, %v930_v51 }
 0x215   :  { %v5710_v14 = vcombine.high %v1046_v7, %v1050_v8  ;;  %v5709_v46 = vcombine.low %v1046_v7, %v1050_v8  ;;  %v1118_v8 = vld [vmem:[#allocation8 + $0x990] sm:$0xff] }
 0x216   :  { %4235 = vmatpush1.bf16.msra.mxu0 %v5509_v16  ;;  %v914_v16 = vld [vmem:[#allocation8 + $0x330] sm:$0xff] }
 0x217   :  { %4278 = vmatpush1.bf16.msra.mxu1 %v5637_v17  ;;  %4236 = vmatprep.subr.bf16.mxu0 %v5502_v18  ;;  %v1038_v17 = vld [vmem:[#allocation8 + $0x710] sm:$0xff]  ;;  %v5574_v52 = vcombine.high %v910_v15, %v914_v16 }
 0x218   :  { %4279 = vmatprep.subr.bf16.mxu1 %v5630_v45  ;;  %v1042_v18 = vld [vmem:[#allocation8 + $0x730] sm:$0xff]  ;;  %v5581_v45 = vcombine.low %v918_v4, %v922_v5 }
 0x219   :  { %v5702_v47 = vcombine.high %v1038_v17, %v1042_v18  ;;  %v5701_v23 = vcombine.low %v1038_v17, %v1042_v18  ;;  %v1110_v17 = vld [vmem:[#allocation8 + $0x950] sm:$0xff] }
 0x21a   :  { %4237 = vmatpush1.bf16.msra.mxu0 %v5501_v50  ;;  %v906_v50 = vld [vmem:[#allocation8 + $0x2f0] sm:$0xff] }
 0x21b   :  { %4280 = vmatpush1.bf16.msra.mxu1 %v5629_v53  ;;  %4238 = vmatprep.subr.bf16.mxu0 %v5494_v21  ;;  %v1030_v53 = vld [vmem:[#allocation8 + $0x6d0] sm:$0xff]  ;;  %v5566_v24 = vcombine.high %v902_v19, %v906_v50 }
 0x21c   :  { %4281 = vmatprep.subr.bf16.mxu1 %v5622_v22  ;;  %v1034_v21 = vld [vmem:[#allocation8 + $0x6f0] sm:$0xff]  ;;  %v5573_v22 = vcombine.low %v910_v15, %v914_v16 }
 0x21d   :  { %v5694_v25 = vcombine.high %v1030_v53, %v1034_v21  ;;  %v5693_v34 = vcombine.low %v1030_v53, %v1034_v21  ;;  %v1114_v18 = vld [vmem:[#allocation8 + $0x970] sm:$0xff] }
 0x21e   :  { %4239 = vmatpush1.bf16.msra.mxu0 %v5493_v28  ;;  %v898_v28 = vld [vmem:[#allocation8 + $0x2b0] sm:$0xff] }
 0x21f   :  { %4282 = vmatpush1.bf16.msra.mxu1 %v5621_v29  ;;  %4240 = vmatprep.subr.bf16.mxu0 %v5486_v32  ;;  %v1022_v29 = vld [vmem:[#allocation8 + $0x690] sm:$0xff]  ;;  %v5558_v10 = vcombine.high %v894_v26, %v898_v28 }
 0x220   :  { %4283 = vmatprep.subr.bf16.mxu1 %v5614_v33  ;;  %v1026_v32 = vld [vmem:[#allocation8 + $0x6b0] sm:$0xff]  ;;  %v5565_v33 = vcombine.low %v902_v19, %v906_v50  ;;  %v5774_v50 = vcombine.high %v1110_v17, %v1114_v18 }
 0x221   :  { %v5686_v35 = vcombine.high %v1022_v29, %v1026_v32  ;;  %v5685_v41 = vcombine.low %v1022_v29, %v1026_v32  ;;  %v1102_v21 = vld [vmem:[#allocation8 + $0x910] sm:$0xff] }
 0x222   :  { %4241 = vmatpush1.bf16.msra.mxu0 %v5485_v37  ;;  %v890_v37 = vld [vmem:[#allocation8 + $0x270] sm:$0xff] }
 0x223   :  { %4284 = vmatpush1.bf16.msra.mxu1 %v5613_v38  ;;  %4242 = vmatprep.subr.bf16.mxu0 %v5478_v39  ;;  %v1014_v38 = vld [vmem:[#allocation8 + $0x650] sm:$0xff]  ;;  %v5550_v42 = vcombine.high %v886_v36, %v890_v37 }
 0x224   :  { %4285 = vmatprep.subr.bf16.mxu1 %v5606_v40  ;;  %v1018_v39 = vld [vmem:[#allocation8 + $0x670] sm:$0xff]  ;;  %v5557_v40 = vcombine.low %v894_v26, %v898_v28 }
 0x225   :  { %v5678_v48 = vcombine.high %v1014_v38, %v1018_v39  ;;  %v5677_v12 = vcombine.low %v1014_v38, %v1018_v39  ;;  %v1094_v32 = vld [vmem:[#allocation8 + $0x8d0] sm:$0xff] }
 0x226   :  { %4243 = vmatpush1.bf16.msra.mxu0 %v5477_v43  ;;  %v882_v43 = vld [vmem:[#allocation8 + $0x230] sm:$0xff] }
 0x227   :  { %4286 = vmatpush1.bf16.msra.mxu1 %v5605_v44  ;;  %4244 = vmatprep.subr.bf16.mxu0 %v5598_v49  ;;  %v1006_v44 = vld [vmem:[#allocation8 + $0x610] sm:$0xff]  ;;  %v5542_v51 = vcombine.high %v878_v6, %v882_v43 }
 0x228   :  { %4287 = vmatprep.subr.bf16.mxu1 %v5726_v55  ;;  %v1010_v49 = vld [vmem:[#allocation8 + $0x630] sm:$0xff]  ;;  %v5549_v55 = vcombine.low %v886_v36, %v890_v37 }
 0x229   :  { %v5670_v54 = vcombine.high %v1006_v44, %v1010_v49  ;;  %v5669_v4 = vcombine.low %v1006_v44, %v1010_v49  ;;  %v1086_v39 = vld [vmem:[#allocation8 + $0x890] sm:$0xff] }
 0x22a   :  { %4245 = vmatpush2.bf16.msra.mxu0 %v5597_v59  ;;  %v1130_v59 = vld [vmem:[#allocation8 + $0x9f0] sm:$0xff] }
 0x22b   :  { %4288 = vmatpush2.bf16.msra.mxu1 %v5725_v60  ;;  %4246 = vmatprep.subr.bf16.mxu0 %v5590_v61  ;;  %v1254_v60 = vld [vmem:[#allocation8 + $0xdd0] sm:$0xff]  ;;  %v5790_v5 = vcombine.high %v1126_v57, %v1130_v59 }
 0x22c   :  { %4289 = vmatprep.subr.bf16.mxu1 %v5718_v2  ;;  %v1258_v61 = vld [vmem:[#allocation8 + $0xdf0] sm:$0xff]  ;;  %v5541_v2 = vcombine.low %v878_v6, %v882_v43 }
 0x22d   :  { %v5918_v7 = vcombine.high %v1254_v60, %v1258_v61  ;;  %v5917_v15 = vcombine.low %v1254_v60, %v1258_v61  ;;  %v1078_v49 = vld [vmem:[#allocation8 + $0x850] sm:$0xff] }
 0x22e   :  { %4247 = vmatpush2.bf16.msra.mxu0 %v5589_v9  ;;  %v1122_v9 = vld [vmem:[#allocation8 + $0x9b0] sm:$0xff] }
 0x22f   :  { %4290 = vmatpush2.bf16.msra.mxu1 %v5717_v11  ;;  %4248 = vmatprep.subr.bf16.mxu0 %v5582_v13  ;;  %v5789_v11 = vcombine.low %v1126_v57, %v1130_v59  ;;  %v1246_v13 = vld [vmem:[#allocation8 + $0xd90] sm:$0xff]  ;;  %v5782_v16 = vcombine.high %v1118_v8, %v1122_v9 }
 0x230   :  { %4291 = vmatprep.subr.bf16.mxu1 %v5710_v14  ;;  %v1250_v14 = vld [vmem:[#allocation8 + $0xdb0] sm:$0xff] }
 0x231   :  { %v5909_v19 = vcombine.low %v1246_v13, %v1250_v14  ;;  %v1070_v61 = vld [vmem:[#allocation8 + $0x810] sm:$0xff] }
 0x232   :  { %4249 = vmatpush2.bf16.msra.mxu0 %v5581_v45  ;;  %v5910_v45 = vcombine.high %v1246_v13, %v1250_v14  ;;  %v1190_v13 = vld [vmem:[#allocation8 + $0xbd0] sm:$0xff] }
 0x233   :  { %4292 = vmatpush2.bf16.msra.mxu1 %v5709_v46  ;;  %4250 = vmatprep.subr.bf16.mxu0 %v5574_v52  ;;  %v1238_v46 = vld [vmem:[#allocation8 + $0xd50] sm:$0xff] }
 0x234   :  { %4293 = vmatprep.subr.bf16.mxu1 %v5702_v47  ;;  %v1242_v52 = vld [vmem:[#allocation8 + $0xd70] sm:$0xff]  ;;  %v5781_v47 = vcombine.low %v1118_v8, %v1122_v9 }
 0x235   :  { %v5902_v53 = vcombine.high %v1238_v46, %v1242_v52  ;;  %v5901_v26 = vcombine.low %v1238_v46, %v1242_v52  ;;  %v1194_v14 = vld [vmem:[#allocation8 + $0xbf0] sm:$0xff] }
 0x236   :  { %4251 = vmatpush2.bf16.msra.mxu0 %v5573_v22  ;;  %v1106_v22 = vld [vmem:[#allocation8 + $0x930] sm:$0xff] }
 0x237   :  { %4294 = vmatpush2.bf16.msra.mxu1 %v5701_v23  ;;  %4252 = vmatprep.subr.bf16.mxu0 %v5566_v24  ;;  %v1230_v23 = vld [vmem:[#allocation8 + $0xd10] sm:$0xff]  ;;  %v5766_v28 = vcombine.high %v1102_v21, %v1106_v22 }
 0x238   :  { %4295 = vmatprep.subr.bf16.mxu1 %v5694_v25  ;;  %v1234_v24 = vld [vmem:[#allocation8 + $0xd30] sm:$0xff]  ;;  %v5773_v25 = vcombine.low %v1110_v17, %v1114_v18 }
 0x239   :  { %v5894_v29 = vcombine.high %v1230_v23, %v1234_v24  ;;  %v5893_v36 = vcombine.low %v1230_v23, %v1234_v24  ;;  %v1182_v52 = vld [vmem:[#allocation8 + $0xb90] sm:$0xff] }
 0x23a   :  { %4253 = vmatpush2.bf16.msra.mxu0 %v5565_v33  ;;  %v1098_v33 = vld [vmem:[#allocation8 + $0x8f0] sm:$0xff] }
 0x23b   :  { %4296 = vmatpush2.bf16.msra.mxu1 %v5693_v34  ;;  %4254 = vmatprep.subr.bf16.mxu0 %v5558_v10  ;;  %v1222_v34 = vld [vmem:[#allocation8 + $0xcd0] sm:$0xff]  ;;  %v5758_v37 = vcombine.high %v1094_v32, %v1098_v33 }
 0x23c   :  { %4297 = vmatprep.subr.bf16.mxu1 %v5686_v35  ;;  %v1226_v10 = vld [vmem:[#allocation8 + $0xcf0] sm:$0xff]  ;;  %v5765_v35 = vcombine.low %v1102_v21, %v1106_v22 }
 0x23d   :  { %v5886_v38 = vcombine.high %v1222_v34, %v1226_v10  ;;  %v5885_v6 = vcombine.low %v1222_v34, %v1226_v10  ;;  %v1174_v24 = vld [vmem:[#allocation8 + $0xb50] sm:$0xff] }
 0x23e   :  { %4255 = vmatpush2.bf16.msra.mxu0 %v5557_v40  ;;  %v1090_v40 = vld [vmem:[#allocation8 + $0x8b0] sm:$0xff] }
 0x23f   :  { %4298 = vmatpush2.bf16.msra.mxu1 %v5685_v41  ;;  %4256 = vmatprep.subr.bf16.mxu0 %v5550_v42  ;;  %v1214_v41 = vld [vmem:[#allocation8 + $0xc90] sm:$0xff]  ;;  %v5750_v43 = vcombine.high %v1086_v39, %v1090_v40 }
 0x240   :  { %4299 = vmatprep.subr.bf16.mxu1 %v5678_v48  ;;  %v1218_v42 = vld [vmem:[#allocation8 + $0xcb0] sm:$0xff]  ;;  %v5757_v48 = vcombine.low %v1094_v32, %v1098_v33 }
 0x241   :  { %v5878_v44 = vcombine.high %v1214_v41, %v1218_v42  ;;  %v5877_v57 = vcombine.low %v1214_v41, %v1218_v42  ;;  %v1166_v10 = vld [vmem:[#allocation8 + $0xb10] sm:$0xff] }
 0x242   :  { %4257 = vmatpush2.bf16.msra.mxu0 %v5549_v55  ;;  %v1082_v55 = vld [vmem:[#allocation8 + $0x870] sm:$0xff] }
 0x243   :  { %4300 = vmatpush2.bf16.msra.mxu1 %v5677_v12  ;;  %4258 = vmatprep.subr.bf16.mxu0 %v5542_v51  ;;  %v1206_v12 = vld [vmem:[#allocation8 + $0xc50] sm:$0xff]  ;;  %v5742_v59 = vcombine.high %v1078_v49, %v1082_v55 }
 0x244   :  { %4301 = vmatprep.subr.bf16.mxu1 %v5670_v54  ;;  %v1210_v51 = vld [vmem:[#allocation8 + $0xc70] sm:$0xff]  ;;  %v5749_v54 = vcombine.low %v1086_v39, %v1090_v40 }
 0x245   :  { %v5870_v60 = vcombine.high %v1206_v12, %v1210_v51  ;;  %v5869_v8 = vcombine.low %v1206_v12, %v1210_v51  ;;  %v1158_v42 = vld [vmem:[#allocation8 + $0xad0] sm:$0xff] }
 0x246   :  { %4259 = vmatpush2.bf16.msra.mxu0 %v5541_v2  ;;  %v1074_v2 = vld [vmem:[#allocation8 + $0x830] sm:$0xff] }
 0x247   :  { %4302 = vmatpush2.bf16.msra.mxu1 %v5669_v4  ;;  %4314 = vmatprep.subr.bf16.mxu0 %v5790_v5  ;;  %v1198_v4 = vld [vmem:[#allocation8 + $0xc10] sm:$0xff]  ;;  %v5734_v9 = vcombine.high %v1070_v61, %v1074_v2  ;;  %v5733_v17 = vcombine.low %v1070_v61, %v1074_v2 }
 0x248   :  { %4357 = vmatprep.subr.bf16.mxu1 %v5918_v7  ;;  %v1202_v5 = vld [vmem:[#allocation8 + $0xc30] sm:$0xff]  ;;  %v5741_v7 = vcombine.low %v1078_v49, %v1082_v55 }
 0x249   :  { %4261 = vmatmul.mubr.bf16.vlgmr.msra.gmra.mxu0 %v6512_v63  ;;  %v5861_v18 = vcombine.low %v1198_v4, %v1202_v5  ;;  %v1150_v51 = vld [vmem:[#allocation8 + $0xa90] sm:$0xff] }
 0x24a   :  { %4304 = vmatmul.mubr.bf16.vlgmr.msra.gmra.mxu1 %v6518_v3  ;;  %4315 = vmatpush1.bf16.msra.mxu0 %v5789_v11  ;;  %v5862_v11 = vcombine.high %v1198_v4, %v1202_v5  ;;  %v1142_v5 = vld [vmem:[#allocation8 + $0xa50] sm:$0xff] }
 0x24b   :  { %4346 = vmatprep.mubr.bf16.mxu0 %v6549_v27  ;;  %4358 = vmatpush1.bf16.msra.mxu1 %v5917_v15  ;;  %v1318_v15 = vld [vmem:[#allocation8 + $0xfd0] sm:$0xff] }
 0x24c   :  { %4389 = vmatprep.mubr.bf16.mxu1 %v6552_v31  ;;  %4316 = vmatprep.subr.bf16.mxu0 %v5782_v16  ;;  %v1322_v16 = vld [vmem:[#allocation8 + $0xff0] sm:$0xff] }
 0x24d   :  { %4359 = vmatprep.subr.bf16.mxu1 %v5910_v45  ;;  %v5854_v45 = vcombine.high %v1190_v13, %v1194_v14  ;;  %v5982_v46 = vcombine.high %v1318_v15, %v1322_v16  ;;  %v5981_v21 = vcombine.low %v1318_v15, %v1322_v16  ;;  %v1134_v16 = vld [vmem:[#allocation8 + $0xa10] sm:$0xff] }
 0x24e   :  { %4317 = vmatpush1.bf16.msra.mxu0 %v5781_v47  ;;  %v1186_v47 = vld [vmem:[#allocation8 + $0xbb0] sm:$0xff] }
 0x24f   :  { %4360 = vmatpush1.bf16.msra.mxu1 %v5909_v19  ;;  %4318 = vmatprep.subr.bf16.mxu0 %v5774_v50  ;;  %v1310_v19 = vld [vmem:[#allocation8 + $0xf90] sm:$0xff]  ;;  %v5846_v22 = vcombine.high %v1182_v52, %v1186_v47 }
 0x250   :  { %4361 = vmatprep.subr.bf16.mxu1 %v5902_v53  ;;  %v1314_v50 = vld [vmem:[#allocation8 + $0xfb0] sm:$0xff]  ;;  %v5853_v53 = vcombine.low %v1190_v13, %v1194_v14 }
 0x251   :  { %v5974_v23 = vcombine.high %v1310_v19, %v1314_v50  ;;  %v5973_v32 = vcombine.low %v1310_v19, %v1314_v50  ;;  %v871_v50 = vld [vmem:[#allocation8 + $0x1d8] sm:$0xff] }
 0x252   :  { %4319 = vmatpush1.bf16.msra.mxu0 %v5773_v25  ;;  %v1178_v25 = vld [vmem:[#allocation8 + $0xb70] sm:$0xff] }
 0x253   :  { %4362 = vmatpush1.bf16.msra.mxu1 %v5901_v26  ;;  %4320 = vmatprep.subr.bf16.mxu0 %v5766_v28  ;;  %v1302_v26 = vld [vmem:[#allocation8 + $0xf50] sm:$0xff]  ;;  %v5838_v33 = vcombine.high %v1174_v24, %v1178_v25 }
 0x254   :  { %4363 = vmatprep.subr.bf16.mxu1 %v5894_v29  ;;  %v1306_v28 = vld [vmem:[#allocation8 + $0xf70] sm:$0xff]  ;;  %v5845_v29 = vcombine.low %v1182_v52, %v1186_v47 }
 0x255   :  { %v5966_v34 = vcombine.high %v1302_v26, %v1306_v28  ;;  %v5965_v39 = vcombine.low %v1302_v26, %v1306_v28  ;;  %v863_v28 = vld [vmem:[#allocation8 + $0x198] sm:$0xff] }
 0x256   :  { %4321 = vmatpush1.bf16.msra.mxu0 %v5765_v35  ;;  %v1170_v35 = vld [vmem:[#allocation8 + $0xb30] sm:$0xff] }
 0x257   :  { %4364 = vmatpush1.bf16.msra.mxu1 %v5893_v36  ;;  %4322 = vmatprep.subr.bf16.mxu0 %v5758_v37  ;;  %v1294_v36 = vld [vmem:[#allocation8 + $0xf10] sm:$0xff]  ;;  %v5830_v40 = vcombine.high %v1166_v10, %v1170_v35 }
 0x258   :  { %4365 = vmatprep.subr.bf16.mxu1 %v5886_v38  ;;  %v1298_v37 = vld [vmem:[#allocation8 + $0xf30] sm:$0xff]  ;;  %v5837_v38 = vcombine.low %v1174_v24, %v1178_v25 }
 0x259   :  { %v5958_v41 = vcombine.high %v1294_v36, %v1298_v37  ;;  %v5957_v49 = vcombine.low %v1294_v36, %v1298_v37  ;;  %v855_v36 = vld [vmem:[#allocation8 + $0x158] sm:$0xff] }
 0x25a   :  { %4323 = vmatpush1.bf16.msra.mxu0 %v5757_v48  ;;  %v1162_v48 = vld [vmem:[#allocation8 + $0xaf0] sm:$0xff]  ;;  %v859_v37 = vld [vmem:[#allocation8 + $0x178] sm:$0xff] }
 0x25b   :  { %4366 = vmatpush1.bf16.msra.mxu1 %v5885_v6  ;;  %4324 = vmatprep.subr.bf16.mxu0 %v5750_v43  ;;  %v1286_v6 = vld [vmem:[#allocation8 + $0xed0] sm:$0xff]  ;;  %v5822_v55 = vcombine.high %v1158_v42, %v1162_v48 }
 0x25c   :  { %4367 = vmatprep.subr.bf16.mxu1 %v5878_v44  ;;  %v1290_v43 = vld [vmem:[#allocation8 + $0xef0] sm:$0xff]  ;;  %v5829_v44 = vcombine.low %v1166_v10, %v1170_v35 }
 0x25d   :  { %v5950_v12 = vcombine.high %v1286_v6, %v1290_v43  ;;  %v5949_v61 = vcombine.low %v1286_v6, %v1290_v43  ;;  %v847_v43 = vld [vmem:[#allocation8 + $0x118] sm:$0xff] }
 0x25e   :  { %4325 = vmatpush1.bf16.msra.mxu0 %v5749_v54  ;;  %v1154_v54 = vld [vmem:[#allocation8 + $0xab0] sm:$0xff] }
 0x25f   :  { %4368 = vmatpush1.bf16.msra.mxu1 %v5877_v57  ;;  %4326 = vmatprep.subr.bf16.mxu0 %v5742_v59  ;;  %v1278_v57 = vld [vmem:[#allocation8 + $0xe90] sm:$0xff]  ;;  %v5814_v2 = vcombine.high %v1150_v51, %v1154_v54 }
 0x260   :  { %4369 = vmatprep.subr.bf16.mxu1 %v5870_v60  ;;  %v1282_v59 = vld [vmem:[#allocation8 + $0xeb0] sm:$0xff]  ;;  %v5821_v60 = vcombine.low %v1158_v42, %v1162_v48  ;;  %v5520_v48 = vcombine.high %v855_v36, %v859_v37 }
 0x261   :  { %v5942_v4 = vcombine.high %v1278_v57, %v1282_v59  ;;  %v5941_v13 = vcombine.low %v1278_v57, %v1282_v59  ;;  %v839_v57 = vld [vmem:[#allocation8 + $0xd8] sm:$0xff] }
 0x262   :  { %4327 = vmatpush1.bf16.msra.mxu0 %v5741_v7  ;;  %v1146_v7 = vld [vmem:[#allocation8 + $0xa70] sm:$0xff]  ;;  %v843_v59 = vld [vmem:[#allocation8 + $0xf8] sm:$0xff] }
 0x263   :  { %4370 = vmatpush1.bf16.msra.mxu1 %v5869_v8  ;;  %4328 = vmatprep.subr.bf16.mxu0 %v5734_v9  ;;  %v1270_v8 = vld [vmem:[#allocation8 + $0xe50] sm:$0xff]  ;;  %v5806_v14 = vcombine.high %v1142_v5, %v1146_v7 }
 0x264   :  { %4371 = vmatprep.subr.bf16.mxu1 %v5862_v11  ;;  %v1274_v9 = vld [vmem:[#allocation8 + $0xe70] sm:$0xff]  ;;  %v5813_v11 = vcombine.low %v1150_v51, %v1154_v54 }
 0x265   :  { %v5934_v15 = vcombine.high %v1270_v8, %v1274_v9  ;;  %v5933_v52 = vcombine.low %v1270_v8, %v1274_v9  ;;  %v835_v8 = vld [vmem:[#allocation8 + $0xb8] sm:$0xff] }
 0x266   :  { %4329 = vmatpush1.bf16.msra.mxu0 %v5733_v17  ;;  %v1138_v17 = vld [vmem:[#allocation8 + $0xa30] sm:$0xff]  ;;  %v959_v9 = vld [vmem:[#allocation8 + $0x498] sm:$0xff] }
 0x267   :  { %4372 = vmatpush1.bf16.msra.mxu1 %v5861_v18  ;;  %4330 = vmatprep.subr.bf16.mxu0 %v5854_v45  ;;  %v1262_v18 = vld [vmem:[#allocation8 + $0xe10] sm:$0xff]  ;;  %v5798_v47 = vcombine.high %v1134_v16, %v1138_v17 }
 0x268   :  { %4373 = vmatprep.subr.bf16.mxu1 %v5982_v46  ;;  %v1266_v45 = vld [vmem:[#allocation8 + $0xe30] sm:$0xff]  ;;  %v5805_v46 = vcombine.low %v1142_v5, %v1146_v7  ;;  %v831_v7 = vld [vmem:[#allocation8 + $0x98] sm:$0xff] }
 0x269   :  { %v5926_v19 = vcombine.high %v1262_v18, %v1266_v45  ;;  %v5925_v24 = vcombine.low %v1262_v18, %v1266_v45  ;;  %v827_v18 = vld [vmem:[#allocation8 + $0x78] sm:$0xff] }
 0x26a   :  { %4331 = vmatpush2.bf16.msra.mxu0 %v5853_v53  ;;  %v875_v53 = vld [vmem:[#allocation8 + $0x1f8] sm:$0xff] }
 0x26b   :  { %4374 = vmatpush2.bf16.msra.mxu1 %v5981_v21  ;;  %4332 = vmatprep.subr.bf16.mxu0 %v5846_v22  ;;  %v999_v21 = vld [vmem:[#allocation8 + $0x5d8] sm:$0xff]  ;;  %v5536_v25 = vcombine.high %v871_v50, %v875_v53 }
 0x26c   :  { %4375 = vmatprep.subr.bf16.mxu1 %v5974_v23  ;;  %v1003_v22 = vld [vmem:[#allocation8 + $0x5f8] sm:$0xff]  ;;  %v5797_v23 = vcombine.low %v1134_v16, %v1138_v17 }
 0x26d   :  { %v5664_v26 = vcombine.high %v999_v21, %v1003_v22  ;;  %v5663_v10 = vcombine.low %v999_v21, %v1003_v22  ;;  %v823_v17 = vld [vmem:[#allocation8 + $0x58] sm:$0xff] }
 0x26e   :  { %4333 = vmatpush2.bf16.msra.mxu0 %v5845_v29  ;;  %v867_v29 = vld [vmem:[#allocation8 + $0x1b8] sm:$0xff] }
 0x26f   :  { %4376 = vmatpush2.bf16.msra.mxu1 %v5973_v32  ;;  %4334 = vmatprep.subr.bf16.mxu0 %v5838_v33  ;;  %v5535_v32 = vcombine.low %v871_v50, %v875_v53  ;;  %v991_v33 = vld [vmem:[#allocation8 + $0x598] sm:$0xff]  ;;  %v5528_v35 = vcombine.high %v863_v28, %v867_v29 }
 0x270   :  { %4377 = vmatprep.subr.bf16.mxu1 %v5966_v34  ;;  %v995_v34 = vld [vmem:[#allocation8 + $0x5b8] sm:$0xff] }
 0x271   :  { %v5655_v42 = vcombine.low %v991_v33, %v995_v34  ;;  %v951_v45 = vld [vmem:[#allocation8 + $0x458] sm:$0xff] }
 0x272   :  { %4335 = vmatpush2.bf16.msra.mxu0 %v5837_v38  ;;  %v5656_v38 = vcombine.high %v991_v33, %v995_v34  ;;  %v815_v53 = vld [vmem:[#allocation8 + $0x18] sm:$0xff] }
 0x273   :  { %4378 = vmatpush2.bf16.msra.mxu1 %v5965_v39  ;;  %4336 = vmatprep.subr.bf16.mxu0 %v5830_v40  ;;  %v983_v39 = vld [vmem:[#allocation8 + $0x558] sm:$0xff] }
 0x274   :  { %4379 = vmatprep.subr.bf16.mxu1 %v5958_v41  ;;  %v987_v40 = vld [vmem:[#allocation8 + $0x578] sm:$0xff]  ;;  %v5527_v41 = vcombine.low %v863_v28, %v867_v29 }
 0x275   :  { %v5648_v6 = vcombine.high %v983_v39, %v987_v40  ;;  %v5647_v51 = vcombine.low %v983_v39, %v987_v40  ;;  %v819_v21 = vld [vmem:[#allocation8 + $0x38] sm:$0xff] }
 0x276   :  { %4337 = vmatpush2.bf16.msra.mxu0 %v5829_v44  ;;  %v851_v44 = vld [vmem:[#allocation8 + $0x138] sm:$0xff] }
 0x277   :  { %4380 = vmatpush2.bf16.msra.mxu1 %v5957_v49  ;;  %4338 = vmatprep.subr.bf16.mxu0 %v5822_v55  ;;  %v975_v49 = vld [vmem:[#allocation8 + $0x518] sm:$0xff]  ;;  %v5512_v54 = vcombine.high %v847_v43, %v851_v44 }
 0x278   :  { %4381 = vmatprep.subr.bf16.mxu1 %v5950_v12  ;;  %v979_v55 = vld [vmem:[#allocation8 + $0x538] sm:$0xff]  ;;  %v5519_v12 = vcombine.low %v855_v36, %v859_v37 }
 0x279   :  { %v943_v22 = vld [vmem:[#allocation8 + $0x418] sm:$0xff] }
 0x27a   :  { %4339 = vmatpush2.bf16.msra.mxu0 %v5821_v60  ;;  %v967_v60 = vld [vmem:[#allocation8 + $0x4d8] sm:$0xff] }
 0x27b   :  { %4382 = vmatpush2.bf16.msra.mxu1 %v5949_v61  ;;  %4340 = vmatprep.subr.bf16.mxu0 %v5814_v2  ;;  %v971_v61 = vld [vmem:[#allocation8 + $0x4f8] sm:$0xff]  ;;  %v5639_v2 = vcombine.low %v975_v49, %v979_v55 }
 0x27c   :  { %4383 = vmatprep.subr.bf16.mxu1 %v5942_v4  ;;  %v5504_v4 = vcombine.high %v839_v57, %v843_v59  ;;  %v5632_v5 = vcombine.high %v967_v60, %v971_v61  ;;  %v935_v29 = vld [vmem:[#allocation8 + $0x3d8] sm:$0xff] }
 0x27d   :  { %v1063_v33 = vld [vmem:[#allocation8 + $0x7d8] sm:$0xff] }
 0x27e   :  { %4341 = vmatpush2.bf16.msra.mxu0 %v5813_v11  ;;  %v963_v11 = vld [vmem:[#allocation8 + $0x4b8] sm:$0xff] }
 0x27f   :  { %4384 = vmatpush2.bf16.msra.mxu1 %v5941_v13  ;;  %4342 = vmatprep.subr.bf16.mxu0 %v5806_v14  ;;  %v5503_v13 = vcombine.low %v839_v57, %v843_v59  ;;  %v5631_v14 = vcombine.low %v967_v60, %v971_v61  ;;  %v5624_v16 = vcombine.high %v959_v9, %v963_v11  ;;  %v1067_v34 = vld [vmem:[#allocation8 + $0x7f8] sm:$0xff] }
 0x280   :  { %4385 = vmatprep.subr.bf16.mxu1 %v5934_v15  ;;  %v5496_v15 = vcombine.high %v831_v7, %v835_v8  ;;  %v5728_v37 = vcombine.high %v1063_v33, %v1067_v34  ;;  %v931_v39 = vld [vmem:[#allocation8 + $0x3b8] sm:$0xff] }
 0x281   :  { %v1055_v40 = vld [vmem:[#allocation8 + $0x798] sm:$0xff] }
 0x282   :  { %4343 = vmatpush2.bf16.msra.mxu0 %v5805_v46  ;;  %v955_v46 = vld [vmem:[#allocation8 + $0x478] sm:$0xff] }
 0x283   :  { %4386 = vmatpush2.bf16.msra.mxu1 %v5933_v52  ;;  %4344 = vmatprep.subr.bf16.mxu0 %v5798_v47  ;;  %v5495_v52 = vcombine.low %v831_v7, %v835_v8  ;;  %v5623_v47 = vcombine.low %v959_v9, %v963_v11  ;;  %v5616_v50 = vcombine.high %v951_v45, %v955_v46  ;;  %v911_v59 = vld [vmem:[#allocation8 + $0x318] sm:$0xff] }
 0x284   :  { %4387 = vmatprep.subr.bf16.mxu1 %v5926_v19  ;;  %v5488_v19 = vcombine.high %v823_v17, %v827_v18  ;;  %v915_v60 = vld [vmem:[#allocation8 + $0x338] sm:$0xff] }
 0x285   :  { %v1039_v61 = vld [vmem:[#allocation8 + $0x718] sm:$0xff] }
 0x286   :  { %4345 = vmatpush2.bf16.msra.mxu0 %v5797_v23  ;;  %v947_v23 = vld [vmem:[#allocation8 + $0x438] sm:$0xff] }
 0x287   :  { %4388 = vmatpush2.bf16.msra.mxu1 %v5925_v24  ;;  %4400 = vmatprep.subr.bf16.mxu0 %v5536_v25  ;;  %v5487_v24 = vcombine.low %v823_v17, %v827_v18  ;;  %v5615_v25 = vcombine.low %v951_v45, %v955_v46  ;;  %v5608_v28 = vcombine.high %v943_v22, %v947_v23  ;;  %v903_v8 = vld [vmem:[#allocation8 + $0x2d8] sm:$0xff] }
 0x288   :  { %4443 = vmatprep.subr.bf16.mxu1 %v5664_v26  ;;  %v5480_v26 = vcombine.high %v815_v53, %v819_v21  ;;  %v907_v9 = vld [vmem:[#allocation8 + $0x2f8] sm:$0xff] }
 0x289   :  { %4347 = vmatmul.mubr.bf16.vlgmr.msra.gmra.mxu0 %v6565_v56  ;;  %v1031_v11 = vld [vmem:[#allocation8 + $0x6d8] sm:$0xff] }
 0x28a   :  { %4390 = vmatmul.mubr.bf16.vlgmr.msra.gmra.mxu1 %v6568_v58  ;;  %4401 = vmatpush1.bf16.msra.mxu0 %v5535_v32  ;;  %v939_v32 = vld [vmem:[#allocation8 + $0x3f8] sm:$0xff] }
 0x28b   :  { %4432 = vmatprep.mubr.bf16.mxu0 %v6509_v62  ;;  %4444 = vmatpush1.bf16.msra.mxu1 %v5663_v10  ;;  %v5640_v62 = vcombine.high %v975_v49, %v979_v55  ;;  %v5479_v10 = vcombine.low %v815_v53, %v819_v21  ;;  %v5600_v36 = vcombine.high %v935_v29, %v939_v32  ;;  %v923_v49 = vld [vmem:[#allocation8 + $0x378] sm:$0xff] }
 0x28c   :  { %4475 = vmatprep.mubr.bf16.mxu1 %v6515_v1  ;;  %4402 = vmatprep.subr.bf16.mxu0 %v5528_v35  ;;  %v5511_v1 = vcombine.low %v847_v43, %v851_v44  ;;  %v5607_v35 = vcombine.low %v943_v22, %v947_v23  ;;  %v919_v44 = vld [vmem:[#allocation8 + $0x358] sm:$0xff] }
 0x28d   :  { %4445 = vmatprep.subr.bf16.mxu1 %v5656_v38  ;;  %v927_v38 = vld [vmem:[#allocation8 + $0x398] sm:$0xff] }
 0x28e   :  { %4403 = vmatpush1.bf16.msra.mxu0 %v5527_v41  ;;  %v1059_v41 = vld [vmem:[#allocation8 + $0x7b8] sm:$0xff] }
 0x28f   :  { %4446 = vmatpush1.bf16.msra.mxu1 %v5655_v42  ;;  %4404 = vmatprep.subr.bf16.mxu0 %v5520_v48  ;;  %v5599_v42 = vcombine.low %v935_v29, %v939_v32  ;;  %v5727_v48 = vcombine.low %v1063_v33, %v1067_v34  ;;  %v5720_v43 = vcombine.high %v1055_v40, %v1059_v41  ;;  %v1047_v55 = vld [vmem:[#allocation8 + $0x758] sm:$0xff] }
 0x290   :  { %4447 = vmatprep.subr.bf16.mxu1 %v5648_v6  ;;  %v5592_v6 = vcombine.high %v927_v38, %v931_v39  ;;  %v895_v18 = vld [vmem:[#allocation8 + $0x298] sm:$0xff] }
 0x291   :  { %v899_v45 = vld [vmem:[#allocation8 + $0x2b8] sm:$0xff] }
 0x292   :  { %4405 = vmatpush1.bf16.msra.mxu0 %v5519_v12  ;;  %v1051_v12 = vld [vmem:[#allocation8 + $0x778] sm:$0xff] }
 0x293   :  { %4448 = vmatpush1.bf16.msra.mxu1 %v5647_v51  ;;  %4406 = vmatprep.subr.bf16.mxu0 %v5512_v54  ;;  %v5591_v51 = vcombine.low %v927_v38, %v931_v39  ;;  %v5719_v54 = vcombine.low %v1055_v40, %v1059_v41  ;;  %v5712_v57 = vcombine.high %v1047_v55, %v1051_v12  ;;  %v1023_v46 = vld [vmem:[#allocation8 + $0x698] sm:$0xff]  ;;  %v6590_v41 = vpop.f32.mrf.mxu0 }
 0x294   :  { %4449 = vmatprep.subr.bf16.mxu1 %v5640_v62  ;;  %v5584_v62 = vcombine.high %v919_v44, %v923_v49  ;;  %v887_v21 = vld [vmem:[#allocation8 + $0x258] sm:$0xff] }
 0x295   :  { %v891_v22 = vld [vmem:[#allocation8 + $0x278] sm:$0xff] }
 0x296   :  { %4407 = vmatpush1.bf16.msra.mxu0 %v5511_v1  ;;  %v1043_v1 = vld [vmem:[#allocation8 + $0x738] sm:$0xff] }
 0x297   :  { %4450 = vmatpush1.bf16.msra.mxu1 %v5639_v2  ;;  %4408 = vmatprep.subr.bf16.mxu0 %v5504_v4  ;;  %v5583_v2 = vcombine.low %v919_v44, %v923_v49  ;;  %v5711_v4 = vcombine.low %v1047_v55, %v1051_v12  ;;  %v5704_v7 = vcombine.high %v1039_v61, %v1043_v1  ;;  %v1015_v23 = vld [vmem:[#allocation8 + $0x658] sm:$0xff]  ;;  %v6592_v55 = vpop.f32.mrf.mxu0 }
 0x298   :  { %4451 = vmatprep.subr.bf16.mxu1 %v5632_v5  ;;  %v5576_v5 = vcombine.high %v911_v59, %v915_v60  ;;  %v879_v32 = vld [vmem:[#allocation8 + $0x218] sm:$0xff] }
 0x299   :  { %v883_v33 = vld [vmem:[#allocation8 + $0x238] sm:$0xff] }
 0x29a   :  { %4409 = vmatpush1.bf16.msra.mxu0 %v5503_v13  ;;  %v1035_v13 = vld [vmem:[#allocation8 + $0x6f8] sm:$0xff] }
 0x29b   :  { %4452 = vmatpush1.bf16.msra.mxu1 %v5631_v14  ;;  %4410 = vmatprep.subr.bf16.mxu0 %v5496_v15  ;;  %v5575_v14 = vcombine.low %v911_v59, %v915_v60  ;;  %v5703_v15 = vcombine.low %v1039_v61, %v1043_v1  ;;  %v5696_v17 = vcombine.high %v1031_v11, %v1035_v13  ;;  %v1007_v34 = vld [vmem:[#allocation8 + $0x618] sm:$0xff]  ;;  %v6594_v59 = vpop.f32.mrf.mxu1 }
 0x29c   :  { %4453 = vmatprep.subr.bf16.mxu1 %v5624_v16  ;;  %v5568_v16 = vcombine.high %v903_v8, %v907_v9  ;;  %v1127_v39 = vld [vmem:[#allocation8 + $0x9d8] sm:$0xff] }
 0x29d   :  { %v1131_v40 = vld [vmem:[#allocation8 + $0x9f8] sm:$0xff] }
 0x29e   :  { %4411 = vmatpush1.bf16.msra.mxu0 %v5495_v52  ;;  %v1027_v52 = vld [vmem:[#allocation8 + $0x6b8] sm:$0xff]  ;;  %v5792_v44 = vcombine.high %v1127_v39, %v1131_v40 }
 0x29f   :  { %4454 = vmatpush1.bf16.msra.mxu1 %v5623_v47  ;;  %4412 = vmatprep.subr.bf16.mxu0 %v5488_v19  ;;  %v5567_v47 = vcombine.low %v903_v8, %v907_v9  ;;  %v5695_v19 = vcombine.low %v1031_v11, %v1035_v13  ;;  %v5688_v53 = vcombine.high %v1023_v46, %v1027_v52  ;;  %v1119_v12 = vld [vmem:[#allocation8 + $0x998] sm:$0xff]  ;;  %v6600_v11 = vpop.f32.mrf.mxu1 }
 0x2a0   :  { %4455 = vmatprep.subr.bf16.mxu1 %v5616_v50  ;;  %v5560_v50 = vcombine.high %v895_v18, %v899_v45  ;;  %v1111_v1 = vld [vmem:[#allocation8 + $0x958] sm:$0xff] }
 0x2a1   :  { %v1243_v8 = vld [vmem:[#allocation8 + $0xd78] sm:$0xff] }
 0x2a2   :  { %4413 = vmatpush1.bf16.msra.mxu0 %v5487_v24  ;;  %v1019_v24 = vld [vmem:[#allocation8 + $0x678] sm:$0xff] }
 0x2a3   :  { %4456 = vmatpush1.bf16.msra.mxu1 %v5615_v25  ;;  %4414 = vmatprep.subr.bf16.mxu0 %v5480_v26  ;;  %v5559_v25 = vcombine.low %v895_v18, %v899_v45  ;;  %v5687_v26 = vcombine.low %v1023_v46, %v1027_v52  ;;  %v5680_v29 = vcombine.high %v1015_v23, %v1019_v24  ;;  %v1231_v18 = vld [vmem:[#allocation8 + $0xd18] sm:$0xff]  ;;  %v6606_v46 = vpop.f32.mrf.mxu1 }
 0x2a4   :  { %4457 = vmatprep.subr.bf16.mxu1 %v5608_v28  ;;  %v5552_v28 = vcombine.high %v887_v21, %v891_v22 }
 0x2a6   :  { %4415 = vmatpush1.bf16.msra.mxu0 %v5479_v10  ;;  %v1011_v10 = vld [vmem:[#allocation8 + $0x638] sm:$0xff] }
 0x2a7   :  { %4458 = vmatpush1.bf16.msra.mxu1 %v5607_v35  ;;  %4416 = vmatprep.subr.bf16.mxu0 %v5600_v36  ;;  %v5551_v35 = vcombine.low %v887_v21, %v891_v22  ;;  %v5679_v36 = vcombine.low %v1015_v23, %v1019_v24  ;;  %v5672_v38 = vcombine.high %v1007_v34, %v1011_v10  ;;  %v1227_v21 = vld [vmem:[#allocation8 + $0xcf8] sm:$0xff]  ;;  %v6610_v23 = vpop.f32.mrf.mxu1 }
 0x2a8   :  { %4459 = vmatprep.subr.bf16.mxu1 %v5728_v37  ;;  %v5544_v37 = vcombine.high %v879_v32, %v883_v33 }
 0x2aa   :  { %4417 = vmatpush2.bf16.msra.mxu0 %v5599_v42  ;;  %v1255_v42 = vld [vmem:[#allocation8 + $0xdd8] sm:$0xff] }
 0x2ab   :  { %4460 = vmatpush2.bf16.msra.mxu1 %v5727_v48  ;;  %4418 = vmatprep.subr.bf16.mxu0 %v5592_v6  ;;  %v1259_v48 = vld [vmem:[#allocation8 + $0xdf8] sm:$0xff]  ;;  %v5543_v6 = vcombine.low %v879_v32, %v883_v33  ;;  %v6614_v33 = vpop.f32.mrf.mxu1 }
 0x2ac   :  { %4461 = vmatprep.subr.bf16.mxu1 %v5720_v43  ;;  %v5671_v43 = vcombine.low %v1007_v34, %v1011_v10  ;;  %v5920_v49 = vcombine.high %v1255_v42, %v1259_v48  ;;  %v5919_v60 = vcombine.low %v1255_v42, %v1259_v48  ;;  %v1091_v32 = vld [vmem:[#allocation8 + $0x8b8] sm:$0xff] }
 0x2ad   :  { %v1215_v34 = vld [vmem:[#allocation8 + $0xc98] sm:$0xff]  ;;  %v6618_v48 = vpop.f32.mrf.mxu1 }
 0x2ae   :  { %4419 = vmatpush2.bf16.msra.mxu0 %v5591_v51  ;;  %v1123_v51 = vld [vmem:[#allocation8 + $0x9b8] sm:$0xff] }
 0x2af   :  { %4462 = vmatpush2.bf16.msra.mxu1 %v5719_v54  ;;  %4420 = vmatprep.subr.bf16.mxu0 %v5584_v62  ;;  %v5791_v54 = vcombine.low %v1127_v39, %v1131_v40  ;;  %v1247_v62 = vld [vmem:[#allocation8 + $0xd98] sm:$0xff]  ;;  %v5784_v61 = vcombine.high %v1119_v12, %v1123_v51  ;;  %v5783_v9 = vcombine.low %v1119_v12, %v1123_v51 }
 0x2b0   :  { %4463 = vmatprep.subr.bf16.mxu1 %v5712_v57  ;;  %v1251_v57 = vld [vmem:[#allocation8 + $0xdb8] sm:$0xff] }
 0x2b1   :  { %v5911_v13 = vcombine.low %v1247_v62, %v1251_v57  ;;  %v1219_v10 = vld [vmem:[#allocation8 + $0xcb8] sm:$0xff] }
 0x2b2   :  { %4421 = vmatpush2.bf16.msra.mxu0 %v5583_v2  ;;  %v1115_v2 = vld [vmem:[#allocation8 + $0x978] sm:$0xff]  ;;  %v5880_v39 = vcombine.high %v1215_v34, %v1219_v10  ;;  %v5879_v12 = vcombine.low %v1215_v34, %v1219_v10 }
 0x2b3   :  { %4464 = vmatpush2.bf16.msra.mxu1 %v5711_v4  ;;  %4422 = vmatprep.subr.bf16.mxu0 %v5576_v5  ;;  %v6596_v4 = vpop.f32.mrf.mxu0  ;;  %v5912_v5 = vcombine.high %v1247_v62, %v1251_v57  ;;  %v5775_v45 = vcombine.low %v1111_v1, %v1115_v2  ;;  %v1079_v40 = vld [vmem:[#allocation8 + $0x858] sm:$0xff] }
 0x2b4   :  { %4465 = vmatprep.subr.bf16.mxu1 %v5704_v7  ;;  %v1239_v7 = vld [vmem:[#allocation8 + $0xd58] sm:$0xff] }
 0x2b5   :  { %v1083_v42 = vld [vmem:[#allocation8 + $0x878] sm:$0xff] }
 0x2b6   :  { %4423 = vmatpush2.bf16.msra.mxu0 %v5575_v14  ;;  %v5776_v14 = vcombine.high %v1111_v1, %v1115_v2  ;;  %v5744_v51 = vcombine.high %v1079_v40, %v1083_v42  ;;  %v1071_v62 = vld [vmem:[#allocation8 + $0x818] sm:$0xff] }
 0x2b7   :  { %4466 = vmatpush2.bf16.msra.mxu1 %v5703_v15  ;;  %4424 = vmatprep.subr.bf16.mxu0 %v5568_v16  ;;  %v5904_v15 = vcombine.high %v1239_v7, %v1243_v8  ;;  %v1103_v16 = vld [vmem:[#allocation8 + $0x918] sm:$0xff] }
 0x2b8   :  { %4467 = vmatprep.subr.bf16.mxu1 %v5696_v17  ;;  %v6604_v17 = vpop.f32.mrf.mxu0  ;;  %v1075_v57 = vld [vmem:[#allocation8 + $0x838] sm:$0xff] }
 0x2b9   :  { %v1199_v1 = vld [vmem:[#allocation8 + $0xc18] sm:$0xff] }
 0x2ba   :  { %4425 = vmatpush2.bf16.msra.mxu0 %v5567_v47  ;;  %v6608_v52 = vpop.f32.mrf.mxu0  ;;  %v1203_v2 = vld [vmem:[#allocation8 + $0xc38] sm:$0xff] }
 0x2bb   :  { %4468 = vmatpush2.bf16.msra.mxu1 %v5695_v19  ;;  %4426 = vmatprep.subr.bf16.mxu0 %v5560_v50  ;;  %v1095_v19 = vld [vmem:[#allocation8 + $0x8d8] sm:$0xff] }
 0x2bc   :  { %4469 = vmatprep.subr.bf16.mxu1 %v5688_v53  ;;  %v1099_v50 = vld [vmem:[#allocation8 + $0x8f8] sm:$0xff]  ;;  %v6612_v24 = vpop.f32.mrf.mxu0 }
 0x2bd   :  { %v1223_v53 = vld [vmem:[#allocation8 + $0xcd8] sm:$0xff] }
 0x2be   :  { %4427 = vmatpush2.bf16.msra.mxu0 %v5559_v25  ;;  %v1175_v34 = vld [vmem:[#allocation8 + $0xb58] sm:$0xff] }
 0x2bf   :  { %4470 = vmatpush2.bf16.msra.mxu1 %v5687_v26  ;;  %4428 = vmatprep.subr.bf16.mxu0 %v5552_v28  ;;  %v5760_v26 = vcombine.high %v1095_v19, %v1099_v50  ;;  %v5888_v28 = vcombine.high %v1223_v53, %v1227_v21  ;;  %v1179_v10 = vld [vmem:[#allocation8 + $0xb78] sm:$0xff] }
 0x2c0   :  { %4471 = vmatprep.subr.bf16.mxu1 %v5680_v29  ;;  %v1087_v29 = vld [vmem:[#allocation8 + $0x898] sm:$0xff] }
 0x2c2   :  { %4429 = vmatpush2.bf16.msra.mxu0 %v5551_v35  ;;  %v5759_v35 = vcombine.low %v1095_v19, %v1099_v50  ;;  %v1183_v19 = vld [vmem:[#allocation8 + $0xb98] sm:$0xff] }
 0x2c3   :  { %4472 = vmatpush2.bf16.msra.mxu1 %v5679_v36  ;;  %4430 = vmatprep.subr.bf16.mxu0 %v5544_v37  ;;  %v6616_v36 = vpop.f32.mrf.mxu0  ;;  %v5887_v37 = vcombine.low %v1223_v53, %v1227_v21  ;;  %v1187_v50 = vld [vmem:[#allocation8 + $0xbb8] sm:$0xff] }
 0x2c4   :  { %4473 = vmatprep.subr.bf16.mxu1 %v5672_v38  ;;  %v5752_v38 = vcombine.high %v1087_v29, %v1091_v32  ;;  %v1311_v21 = vld [vmem:[#allocation8 + $0xf98] sm:$0xff] }
 0x2c6   :  { %4431 = vmatpush2.bf16.msra.mxu0 %v5543_v6  ;;  %v1207_v6 = vld [vmem:[#allocation8 + $0xc58] sm:$0xff] }
 0x2c7   :  { %4474 = vmatpush2.bf16.msra.mxu1 %v5671_v43  ;;  %4486 = vmatprep.subr.bf16.mxu0 %v5792_v44  ;;  %v1211_v43 = vld [vmem:[#allocation8 + $0xc78] sm:$0xff]  ;;  %v5751_v44 = vcombine.low %v1087_v29, %v1091_v32  ;;  %v5848_v29 = vcombine.high %v1183_v19, %v1187_v50 }
 0x2c8   :  { %4529 = vmatprep.subr.bf16.mxu1 %v5920_v49  ;;  %v6620_v49 = vpop.f32.mrf.mxu0 }
 0x2c9   :  { %4433 = vmatmul.mubr.bf16.vlgmr.msra.gmra.mxu0 %v6512_v63  ;;  %v1107_v63 = vld [vmem:[#allocation8 + $0x938] sm:$0xff] }
 0x2ca   :  { %4476 = vmatmul.mubr.bf16.vlgmr.msra.gmra.mxu1 %v6518_v3  ;;  %4487 = vmatpush1.bf16.msra.mxu0 %v5791_v54  ;;  %v1235_v3 = vld [vmem:[#allocation8 + $0xd38] sm:$0xff]  ;;  %v5768_v47 = vcombine.high %v1103_v16, %v1107_v63  ;;  %v5767_v22 = vcombine.low %v1103_v16, %v1107_v63  ;;  %v5872_v54 = vcombine.high %v1207_v6, %v1211_v43 }
 0x2cb   :  { %4518 = vmatprep.mubr.bf16.mxu0 %v6549_v27  ;;  %4530 = vmatpush1.bf16.msra.mxu1 %v5919_v60  ;;  %v5903_v27 = vcombine.low %v1239_v7, %v1243_v8  ;;  %v5895_v25 = vcombine.low %v1231_v18, %v1235_v3  ;;  %v6622_v60 = vpop.f32.mrf.mxu1  ;;  %v5871_v7 = vcombine.low %v1207_v6, %v1211_v43  ;;  %v1319_v63 = vld [vmem:[#allocation8 + $0xfd8] sm:$0xff] }
 0x2cc   :  { %4561 = vmatprep.mubr.bf16.mxu1 %v6552_v31  ;;  %4488 = vmatprep.subr.bf16.mxu0 %v5784_v61  ;;  %v5896_v31 = vcombine.high %v1231_v18, %v1235_v3  ;;  %v6624_v61 = vpop.f32.mrf.mxu0  ;;  %v5736_v8 = vcombine.high %v1071_v62, %v1075_v57  ;;  %v1323_v18 = vld [vmem:[#allocation8 + $0xff8] sm:$0xff]  ;;  %v5735_v3 = vcombine.low %v1071_v62, %v1075_v57 }
 0x2cd   :  { %4531 = vmatprep.subr.bf16.mxu1 %v5912_v5  ;;  %v5743_v5 = vcombine.low %v1079_v40, %v1083_v42  ;;  %v5840_v43 = vcombine.high %v1175_v34, %v1179_v10  ;;  %v1295_v62 = vld [vmem:[#allocation8 + $0xf18] sm:$0xff] }
 0x2ce   :  { %4489 = vmatpush1.bf16.msra.mxu0 %v5783_v9  ;;  %v5864_v9 = vcombine.high %v1199_v1, %v1203_v2  ;;  %v6628_v16 = vpop.f32.mrf.mxu0  ;;  %v1299_v57 = vld [vmem:[#allocation8 + $0xf38] sm:$0xff] }
 0x2cf   :  { %4532 = vmatpush1.bf16.msra.mxu1 %v5911_v13  ;;  %4490 = vmatprep.subr.bf16.mxu0 %v5776_v14  ;;  %v1191_v13 = vld [vmem:[#allocation8 + $0xbd8] sm:$0xff] }
 0x2d0   :  { %4533 = vmatprep.subr.bf16.mxu1 %v5904_v15  ;;  %v1195_v14 = vld [vmem:[#allocation8 + $0xbf8] sm:$0xff]  ;;  %v6626_v15 = vpop.f32.mrf.mxu1  ;;  %v6632_v53 = vpop.f32.mrf.mxu0 }
 0x2d2   :  { %4491 = vmatpush1.bf16.msra.mxu0 %v5775_v45  ;;  %v6630_v45 = vpop.f32.mrf.mxu1 }
 0x2d3   :  { %4534 = vmatpush1.bf16.msra.mxu1 %v5903_v27  ;;  %4492 = vmatprep.subr.bf16.mxu0 %v5768_v47  ;;  %v5863_v27 = vcombine.low %v1199_v1, %v1203_v2  ;;  %v5856_v47 = vcombine.high %v1191_v13, %v1195_v14  ;;  %v5839_v1 = vcombine.low %v1175_v34, %v1179_v10  ;;  %v1283_v34 = vld [vmem:[#allocation8 + $0xeb8] sm:$0xff] }
 0x2d4   :  { %4535 = vmatprep.subr.bf16.mxu1 %v5896_v31  ;;  %v5984_v31 = vcombine.high %v1319_v63, %v1323_v18 }
 0x2d6   :  { %4493 = vmatpush1.bf16.msra.mxu0 %v5767_v22  ;;  %v1315_v22 = vld [vmem:[#allocation8 + $0xfb8] sm:$0xff] }
 0x2d7   :  { %4536 = vmatpush1.bf16.msra.mxu1 %v5895_v25  ;;  %4494 = vmatprep.subr.bf16.mxu0 %v5760_v26  ;;  %v5855_v25 = vcombine.low %v1191_v13, %v1195_v14  ;;  %v6634_v26 = vpop.f32.mrf.mxu1  ;;  %v5976_v32 = vcombine.high %v1311_v21, %v1315_v22  ;;  %v5975_v6 = vcombine.low %v1311_v21, %v1315_v22  ;;  %v1159_v14 = vld [vmem:[#allocation8 + $0xad8] sm:$0xff] }
 0x2d8   :  { %4537 = vmatprep.subr.bf16.mxu1 %v5888_v28  ;;  %v5983_v28 = vcombine.low %v1319_v63, %v1323_v18  ;;  %v5960_v13 = vcombine.high %v1295_v62, %v1299_v57  ;;  %v1163_v63 = vld [vmem:[#allocation8 + $0xaf8] sm:$0xff] }
 0x2d9   :  { %v6636_v40 = vpop.f32.mrf.mxu1  ;;  %v5823_v10 = vcombine.low %v1159_v14, %v1163_v63 }
 0x2da   :  { %4495 = vmatpush1.bf16.msra.mxu0 %v5759_v35  ;;  %v4096_v35 = vpop.f32.mrf.mxu0 }
 0x2db   :  { %4538 = vmatpush1.bf16.msra.mxu1 %v5887_v37  ;;  %4496 = vmatprep.subr.bf16.mxu0 %v5752_v38  ;;  %v1303_v37 = vld [vmem:[#allocation8 + $0xf58] sm:$0xff]  ;;  %v4139_v2 = vpop.f32.mrf.mxu1 }
 0x2dc   :  { %4539 = vmatprep.subr.bf16.mxu1 %v5880_v39  ;;  %v1307_v38 = vld [vmem:[#allocation8 + $0xf78] sm:$0xff]  ;;  %v5847_v39 = vcombine.low %v1183_v19, %v1187_v50  ;;  %v6638_v42 = vpop.f32.mrf.mxu0  ;;  %v5959_v19 = vcombine.low %v1295_v62, %v1299_v57  ;;  %v5824_v50 = vcombine.high %v1159_v14, %v1163_v63  ;;  %v3964_v57 = vadd.f32 %v6600_v11, %v6592_v55 }
 0x2dd   :  { %v6646_v18 = vpop.f32.mrf.mxu1  ;;  %v1147_v62 = vld [vmem:[#allocation8 + $0xa78] sm:$0xff] }
 0x2de   :  { %4497 = vmatpush1.bf16.msra.mxu0 %v5751_v44  ;;  %v5968_v44 = vcombine.high %v1303_v37, %v1307_v38 }
 0x2df   :  { %4540 = vmatpush1.bf16.msra.mxu1 %v5879_v12  ;;  %4498 = vmatprep.subr.bf16.mxu0 %v5744_v51  ;;  %v1167_v12 = vld [vmem:[#allocation8 + $0xb18] sm:$0xff] }
 0x2e0   :  { %4541 = vmatprep.subr.bf16.mxu1 %v5872_v54  ;;  %v1171_v51 = vld [vmem:[#allocation8 + $0xb38] sm:$0xff]  ;;  %v6640_v54 = vld [vmem:[#allocation10] sm:$0xff] }
 0x2e2   :  { %4499 = vmatpush1.bf16.msra.mxu0 %v5743_v5  ;;  %v4178_v5 = vpop.f32.mrf.mxu0 }
 0x2e3   :  { %4542 = vmatpush1.bf16.msra.mxu1 %v5871_v7  ;;  %4500 = vmatprep.subr.bf16.mxu0 %v5736_v8  ;;  %v5967_v7 = vcombine.low %v1303_v37, %v1307_v38  ;;  %v5832_v8 = vcombine.high %v1167_v12, %v1171_v51  ;;  %v3968_v37 = vadd.f32 %v6610_v23, %v6604_v17  ;;  %v1271_v17 = vld [vmem:[#allocation8 + $0xe58] sm:$0xff] }
 0x2e4   :  { %4543 = vmatprep.subr.bf16.mxu1 %v5864_v9  ;;  %v6644_v9 = vrot.slane %v6640_v54, %v6494_v20  ;;  %v1275_v23 = vld [vmem:[#allocation8 + $0xe78] sm:$0xff] }
 0x2e5   :  { %v5936_v11 = vcombine.high %v1271_v17, %v1275_v23 }
 0x2e6   :  { %4501 = vmatpush1.bf16.msra.mxu0 %v5735_v3  ;;  %v1287_v3 = vld [vmem:[#allocation8 + $0xed8] sm:$0xff]  ;;  %v4597_v21 = vcombine.high %v6644_v9, %v6644_v9 }
 0x2e7   :  { %4544 = vmatpush1.bf16.msra.mxu1 %v5863_v27  ;;  %4502 = vmatprep.subr.bf16.mxu0 %v5856_v47  ;;  %v1291_v27 = vld [vmem:[#allocation8 + $0xef8] sm:$0xff]  ;;  %v5831_v47 = vcombine.low %v1167_v12, %v1171_v51 }
 0x2e8   :  { %4545 = vmatprep.subr.bf16.mxu1 %v5984_v31  ;;  %v6648_v31 = vpop.f32.mrf.mxu0  ;;  %v5952_v22 = vcombine.high %v1287_v3, %v1291_v27  ;;  %v1143_v51 = vld [vmem:[#allocation8 + $0xa58] sm:$0xff] }
 0x2ea   :  { %4503 = vmatpush2.bf16.msra.mxu0 %v5855_v25  ;;  %v1151_v25 = vld [vmem:[#allocation8 + $0xa98] sm:$0xff]  ;;  %v4182_v38 = vpop.f32.mrf.mxu0 }
 0x2eb   :  { %4546 = vmatpush2.bf16.msra.mxu1 %v5983_v28  ;;  %4504 = vmatprep.subr.bf16.mxu0 %v5848_v29  ;;  %v1155_v28 = vld [vmem:[#allocation8 + $0xab8] sm:$0xff]  ;;  %v4221_v29 = vpop.f32.mrf.mxu1 }
 0x2ec   :  { %4547 = vmatprep.subr.bf16.mxu1 %v5976_v32  ;;  %v1279_v32 = vld [vmem:[#allocation8 + $0xe98] sm:$0xff] }
 0x2ed   :  { %v5944_v12 = vcombine.high %v1279_v32, %v1283_v34  ;;  %v5943_v63 = vcombine.low %v1279_v32, %v1283_v34 }
 0x2ee   :  { %4505 = vmatpush2.bf16.msra.mxu0 %v5847_v39  ;;  %v5951_v39 = vcombine.low %v1287_v3, %v1291_v27  ;;  %v5808_v3 = vcombine.high %v1143_v51, %v1147_v62  ;;  %v1139_v27 = vld [vmem:[#allocation8 + $0xa38] sm:$0xff] }
 0x2ef   :  { %4548 = vmatpush2.bf16.msra.mxu1 %v5975_v6  ;;  %4506 = vmatprep.subr.bf16.mxu0 %v5840_v43  ;;  %v5816_v6 = vcombine.high %v1151_v25, %v1155_v28  ;;  %v4619_v43 = vrot.slane %v4597_v21, %v6494_v20 }
 0x2f0   :  { %4549 = vmatprep.subr.bf16.mxu1 %v5968_v44  ;;  %v4140_v44 = vadd.f32 %v4139_v2, %v4096_v35  ;;  %v5815_v35 = vcombine.low %v1151_v25, %v1155_v28  ;;  %v4007_v2 = vadd.f32 %v6612_v24, %v3964_v57  ;;  %v5807_v25 = vcombine.low %v1143_v51, %v1147_v62  ;;  %v6159_v51 = vld [vmem:[#allocation11 + $0xb8] sm:$0xff]   ;;  %v6160_v62 = vld [vmem:[#allocation11 + $0x70] sm:$0xff]  }
 0x2f1   :  { %v4629_v14 = vcombine.high %v4619_v43, %v4619_v43  ;;  %v5935_v28 = vcombine.low %v1271_v17, %v1275_v23  ;;  %v6162_v23 = vld [vmem:[#allocation11 + $0x30] sm:$0xff]  }
 0x2f2   :  { %4507 = vmatpush2.bf16.msra.mxu0 %v5839_v1  ;;  %v4011_v1 = vadd.f32 %v6620_v49, %v3968_v37  ;;  %v1135_v49 = vld [vmem:[#allocation8 + $0xa18] sm:$0xff]  ;;  %v4050_v24 = vadd.f32 %v6618_v48, %v4007_v2  ;;  %v6157_v48 = vld [vmem:[#allocation11 + $0xf8] sm:$0xff]   ;;  %v6168_v2 = vld [vmem:[#allocation11 + $0x60] sm:$0xff]  }
 0x2f3   :  { %4550 = vmatpush2.bf16.msra.mxu1 %v5967_v7  ;;  %4508 = vmatprep.subr.bf16.mxu0 %v5832_v8  ;;  %v6658_v7 = vpop.f32.mrf.mxu1  ;;  %v4136_v8 = vadd.f32 %v6634_v26, %v6628_v16  ;;  %v1263_v16 = vld [vmem:[#allocation8 + $0xe18] sm:$0xff] }
 0x2f4   :  { %4551 = vmatprep.subr.bf16.mxu1 %v5960_v13  ;;  %v4183_v13 = vadd.f32 %v4182_v38, %v4140_v44  ;;  %v1267_v26 = vld [vmem:[#allocation8 + $0xe38] sm:$0xff] }
 0x2f5   :  { %v4179_v55 = vadd.f32 %v4178_v5, %v4136_v8  ;;  %v5800_v5 = vcombine.high %v1135_v49, %v1139_v27  ;;  %v5928_v34 = vcombine.high %v1263_v16, %v1267_v26  ;;  %v6163_v8 = vld [vmem:[#allocation11 + $0xb0] sm:$0xff]  }
 0x2f6   :  { %4509 = vmatpush2.bf16.msra.mxu0 %v5831_v47  ;;  %v4054_v47 = vadd.f32 %v6626_v15, %v4011_v1  ;;  %v6161_v1 = vld [vmem:[#allocation11 + $0xf0] sm:$0xff]  }
 0x2f7   :  { %4552 = vmatpush2.bf16.msra.mxu1 %v5959_v19  ;;  %4510 = vmatprep.subr.bf16.mxu0 %v5824_v50  ;;  %v4639_v19 = vpack.i.b16 %v4619_v43, %v4619_v43  ;;  %v4225_v50 = vpop.f32.mrf.mxu1  ;;  %v4222_v32 = vadd.f32 %v4221_v29, %v4179_v55  ;;  %v6156_v43 = vld [vmem:[#allocation11 + $0x78] sm:$0xff]  }
 0x2f8   :  { %4553 = vmatprep.subr.bf16.mxu1 %v5952_v22  ;;  %v4226_v21 = vadd.f32 %v4225_v50, %v4183_v13  ;;  %v4653_v22 = vpack.i.b16 %v4629_v14, %v4629_v14  ;;  %v6158_v29 = vld [vmem:[#allocation11 + $0x38] sm:$0xff]   ;;  %v6164_v13 = vld [vmem:[#allocation11 + $0x68] sm:$0xff]   ;;  %v3962_v50 = vadd.f32 %v6594_v59, %v6590_v41  ;;  %v6178_v41 = vld [vmem:[#allocation11 + $0x10] sm:$0xff]  }
 0x2f9   :  { %v4644_v15 = vrot.slane %v4639_v19, %v6502_v30  ;;  %v6165_v14 = vld [vmem:[#allocation11 + $0xe8] sm:$0xff]   ;;  %v6172_v55 = vld [vmem:[#allocation11 + $0x58] sm:$0xff]  }
 0x2fa   :  { %4511 = vmatpush2.bf16.msra.mxu0 %v5823_v10  ;;  %v4573_v10 = vpack.c.bf16 %v4054_v47, %v4050_v24  ;;  %v4575_v37 = vpack.c.bf16 %v4226_v21, %v4222_v32  ;;  %v4658_v38 = vrot.slane %v4653_v22, %v6502_v30  ;;  %v4138_v47 = vadd.f32 %v6636_v40, %v6632_v53  ;;  %v6174_v19 = vld [vmem:[#allocation11 + $0x18] sm:$0xff]   ;;  %v6176_v21 = vld [vmem:[#allocation11 + $0x50] sm:$0xff]   ;;  %v6180_v24 = vld [vmem:[#allocation11 + $0x48] sm:$0xff]  }
 0x2fb   :  { %4554 = vmatpush2.bf16.msra.mxu1 %v5951_v39  ;;  %4512 = vmatprep.subr.bf16.mxu0 %v5816_v6  ;;  %v5799_v39 = vcombine.low %v1135_v49, %v1139_v27  ;;  %v5927_v6 = vcombine.low %v1263_v16, %v1267_v26  ;;  %v3966_v49 = vadd.f32 %v6606_v46, %v6596_v4  ;;  %v6175_v26 = vld [vmem:[#allocation11 + $0x98] sm:$0xff]   ;;  %v6177_v22 = vld [vmem:[#allocation11 + $0xd0] sm:$0xff]  }
 0x2fc   :  { %4555 = vmatprep.subr.bf16.mxu1 %v5944_v12  ;;  %v4688_v44 = vadd.bf16 %v4644_v15, %v4573_v10  ;;  %v4690_v12 = vadd.bf16 %v4658_v38, %v4575_v37  ;;  %v4605_v27 = vrot.slane %v6644_v9, %v6494_v20  ;;  %v4134_v4 = vadd.f32 %v6630_v45, %v6624_v61  ;;  %v6186_v37 = vld [vmem:[#allocation11] sm:$0xff]  }
 0x2fd   :  { %v4009_v16 = vadd.f32 %v6616_v36, %v3966_v49  ;;  %v4181_v46 = vadd.f32 %v6648_v31, %v4138_v47  ;;  %v4005_v53 = vadd.f32 %v6608_v52, %v3962_v50  ;;  %v6181_v31 = vld [vmem:[#allocation11 + $0xc8] sm:$0xff]   ;;  %v6203_v50 = vld [vmem:[#allocation11 + $0x140] sm:$0xff]  }
 0x2fe   :  { %4513 = vmatpush2.bf16.msra.mxu0 %v5815_v35  ;;  %v4696_v57 = vmax.bf16 %v6402_v0, %v4688_v44  ;;  %v4698_v17 = vmax.bf16 %v6402_v0, %v4690_v12  ;;  %v6166_v35 = vld [vmem:[#allocation11 + $0x28] sm:$0xff]   ;;  %v4627_v9 = vcombine.high %v4605_v27, %v4605_v27  ;;  %v4177_v40 = vadd.f32 %v6638_v42, %v4134_v4  ;;  %v6190_v44 = vld [vmem:[#allocation11 + $0x170] sm:$0xff]   ;;  %v6206_v12 = vld [vmem:[#allocation11 + $0x1b8] sm:$0xff]  }
 0x2ff   :  { %4556 = vmatpush2.bf16.msra.mxu1 %v5943_v63  ;;  %4514 = vmatprep.subr.bf16.mxu0 %v5808_v3  ;;  %v6170_v63 = vld [vmem:[#allocation11 + $0x20] sm:$0xff]   ;;  %v4052_v59 = vadd.f32 %v6622_v60, %v4009_v16  ;;  %v4632_v36 = vpack.i.b16 %v4605_v27, %v4605_v27  ;;  %v4224_v61 = vadd.f32 %v6658_v7, %v4181_v46  ;;  %v6182_v42 = vld [vmem:[#allocation11 + $0x8] sm:$0xff]  }
 0x300   :  { %4557 = vmatprep.subr.bf16.mxu1 %v5936_v11  ;;  %v6171_v3 = vld [vmem:[#allocation11 + $0xa0] sm:$0xff]   ;;  %v6173_v11 = vld [vmem:[#allocation11 + $0xd8] sm:$0xff]   ;;  %v4646_v45 = vpack.i.b16 %v4627_v9, %v4627_v9  ;;  %v4220_v52 = vadd.f32 %v6646_v18, %v4177_v40  ;;  %v6183_v60 = vld [vmem:[#allocation11 + $0x88] sm:$0xff]   ;;  %v4582_v27 = vcombine.high %v6640_v54, %v6640_v54 }
 0x301   :  { %v4637_v32 = vrot.slane %v4632_v36, %v6502_v30  ;;  %v6185_v7 = vld [vmem:[#allocation11 + $0xc0] sm:$0xff]   ;;  %v6188_v18 = vld [vmem:[#allocation11 + $0x178] sm:$0xff]   ;;  %v6202_v47 = vld [vmem:[#allocation11 + $0x108] sm:$0xff]  }
 0x302   :  { %4515 = vmatpush2.bf16.msra.mxu0 %v5807_v25  ;;  %v6179_v25 = vld [vmem:[#allocation11 + $0x90] sm:$0xff]   ;;  %v4574_v10 = vpack.c.bf16 %v4224_v61, %v4220_v52  ;;  %v4651_v15 = vrot.slane %v4646_v45, %v6502_v30  ;;  %v6214_v52 = vld [vmem:[#allocation11 + $0x198] sm:$0xff]  }
 0x303   :  { %4558 = vmatpush2.bf16.msra.mxu1 %v5935_v28  ;;  %4516 = vmatprep.subr.bf16.mxu0 %v5800_v5  ;;  %v4048_v28 = vadd.f32 %v6614_v33, %v4005_v53  ;;  %v6187_v33 = vld [vmem:[#allocation11 + $0x80] sm:$0xff]  }
 0x304   :  { %4559 = vmatprep.subr.bf16.mxu1 %v5928_v34  ;;  %v6184_v34 = vld [vmem:[#allocation11 + $0x40] sm:$0xff]  }
 0x305   :  { %v4572_v5 = vpack.c.bf16 %v4052_v59, %v4048_v28 }
 0x306   :  { %4517 = vmatpush2.bf16.msra.mxu0 %v5799_v39  ;;  %v4689_v39 = vadd.bf16 %v4651_v15, %v4574_v10 }
 0x307   :  { %4560 = vmatpush2.bf16.msra.mxu1 %v5927_v6  ;;  %6050 = vmatprep.subr.bf16.mxu0 %v6156_v43  ;;  %v4687_v38 = vadd.bf16 %v4637_v32, %v4572_v5  ;;  %v6205_v6 = vld [vmem:[#allocation11 + $0x1f8] sm:$0xff]  }
 0x308   :  { %6072 = vmatprep.subr.bf16.mxu1 %v6157_v48  ;;  %v6189_v43 = vld [vmem:[#allocation11 + $0x138] sm:$0xff]  }
 0x309   :  { %4519 = vmatmul.mubr.bf16.vlgmr.msra.gmra.mxu0 %v6565_v56  ;;  %v6167_v56 = vld [vmem:[#allocation11 + $0xa8] sm:$0xff]   ;;  %v4695_v48 = vmax.bf16 %v6402_v0, %v4687_v38 }
 0x30a   :  { %4562 = vmatmul.mubr.bf16.vlgmr.msra.gmra.mxu1 %v6568_v58  ;;  %6051 = vmatpush3.bf16.msra.mxu0 %v6158_v29  ;;  %v6169_v58 = vld [vmem:[#allocation11 + $0xe0] sm:$0xff]   ;;  %v4697_v29 = vmax.bf16 %v6402_v0, %v4689_v39  ;;  %v4305_v49 = vpop.f32.mrf.mxu1 }
 0x30b   :  { %5254 = vmatprep.mubr.bf16.mxu0 %v4696_v57  ;;  %6073 = vmatpush3.bf16.msra.mxu1 %v6159_v51  ;;  %v6207_v51 = vld [vmem:[#allocation11 + $0x1f0] sm:$0xff]   ;;  %v6192_v57 = vld [vmem:[#allocation11 + $0x168] sm:$0xff]  }
 0x30c   :  { %5295 = vmatprep.mubr.bf16.mxu1 %v4698_v17  ;;  %6052 = vmatprep.subr.bf16.mxu0 %v6160_v62  ;;  %v6191_v62 = vld [vmem:[#allocation11 + $0x130] sm:$0xff]   ;;  %v6209_v17 = vld [vmem:[#allocation11 + $0x1e8] sm:$0xff]   ;;  %v4307_v16 = vpop.f32.mrf.mxu1 }
 0x30d   :  { %6074 = vmatprep.subr.bf16.mxu1 %v6161_v1  ;;  %v6208_v1 = vld [vmem:[#allocation11 + $0x1b0] sm:$0xff]  }
 0x30e   :  { %6053 = vmatpush3.bf16.msra.mxu0 %v6162_v23  ;;  %v6193_v23 = vld [vmem:[#allocation11 + $0x128] sm:$0xff]   ;;  %v4309_v46 = vpop.f32.mrf.mxu1 }
 0x30f   :  { %6075 = vmatpush3.bf16.msra.mxu1 %v6163_v8  ;;  %6054 = vmatprep.subr.bf16.mxu0 %v6164_v13  ;;  %v6194_v8 = vld [vmem:[#allocation11 + $0x160] sm:$0xff]   ;;  %v6210_v13 = vld [vmem:[#allocation11 + $0x1a8] sm:$0xff]  }
 0x310   :  { %6076 = vmatprep.subr.bf16.mxu1 %v6165_v14  ;;  %v6211_v14 = vld [vmem:[#allocation11 + $0x1e0] sm:$0xff]   ;;  %v4311_v53 = vpop.f32.mrf.mxu1 }
 0x312   :  { %6055 = vmatpush3.bf16.msra.mxu0 %v6166_v35  ;;  %v6195_v35 = vld [vmem:[#allocation11 + $0x120] sm:$0xff]  }
 0x313   :  { %6077 = vmatpush3.bf16.msra.mxu1 %v6167_v56  ;;  %6056 = vmatprep.subr.bf16.mxu0 %v6168_v2  ;;  %v6196_v56 = vld [vmem:[#allocation11 + $0x158] sm:$0xff]   ;;  %v6212_v2 = vld [vmem:[#allocation11 + $0x1a0] sm:$0xff]  }
 0x314   :  { %6078 = vmatprep.subr.bf16.mxu1 %v6169_v58  ;;  %v6197_v58 = vld [vmem:[#allocation11 + $0x118] sm:$0xff]  }
 0x316   :  { %6057 = vmatpush3.bf16.msra.mxu0 %v6170_v63  ;;  %v6199_v63 = vld [vmem:[#allocation11 + $0x150] sm:$0xff]  }
 0x317   :  { %6079 = vmatpush3.bf16.msra.mxu1 %v6171_v3  ;;  %6058 = vmatprep.subr.bf16.mxu0 %v6172_v55  ;;  %v6200_v3 = vld [vmem:[#allocation11 + $0x110] sm:$0xff]   ;;  %v4262_v55 = vpop.f32.mrf.mxu0 }
 0x318   :  { %6080 = vmatprep.subr.bf16.mxu1 %v6173_v11  ;;  %v6201_v11 = vld [vmem:[#allocation11 + $0x148] sm:$0xff]  }
 0x31a   :  { %6059 = vmatpush3.bf16.msra.mxu0 %v6174_v19  ;;  %v4264_v19 = vpop.f32.mrf.mxu0 }
 0x31b   :  { %6081 = vmatpush3.bf16.msra.mxu1 %v6175_v26  ;;  %6060 = vmatprep.subr.bf16.mxu0 %v6176_v21  ;;  %v4596_v26 = vrot.slane %v4582_v27, %v6494_v20  ;;  %v6204_v21 = vld [vmem:[#allocation11 + $0x100] sm:$0xff]   ;;  %v4308_v61 = vadd.f32 %v4307_v16, %v4264_v19 }
 0x31c   :  { %6082 = vmatprep.subr.bf16.mxu1 %v6177_v22  ;;  %v4266_v4 = vpop.f32.mrf.mxu0 }
 0x31d   :  { %v4598_v9 = vcombine.high %v4596_v26, %v4596_v26  ;;  %v4612_v54 = vrot.slane %v4596_v26, %v6494_v20  ;;  %v4310_v45 = vadd.f32 %v4309_v46, %v4266_v4 }
 0x31e   :  { %6061 = vmatpush3.bf16.msra.mxu0 %v6178_v41  ;;  %v4268_v22 = vpop.f32.mrf.mxu0  ;;  %v4306_v41 = vadd.f32 %v4305_v49, %v4262_v55 }
 0x31f   :  { %6083 = vmatpush3.bf16.msra.mxu1 %v6179_v25  ;;  %6062 = vmatprep.subr.bf16.mxu0 %v6180_v24  ;;  %v4626_v36 = vrot.slane %v4598_v9, %v6494_v20  ;;  %v6213_v24 = vld [vmem:[#allocation11 + $0x1d8] sm:$0xff]   ;;  %v4660_v5 = vpack.i.b16 %v4612_v54, %v4612_v54  ;;  %v4312_v32 = vadd.f32 %v4311_v53, %v4268_v22 }
 0x320   :  { %6084 = vmatprep.subr.bf16.mxu1 %v6181_v31  ;;  %v4628_v49 = vcombine.high %v4612_v54, %v4612_v54 }
 0x321   :  { %v4667_v15 = vpack.i.b16 %v4626_v36, %v4626_v36  ;;  %v4665_v39 = vrot.slane %v4660_v5, %v6502_v30  ;;  %v4630_v19 = vcombine.high %v4626_v36, %v4626_v36 }
 0x322   :  { %6063 = vmatpush3.bf16.msra.mxu0 %v6182_v42  ;;  %v4674_v9 = vpack.i.b16 %v4628_v49, %v4628_v49 }
 0x323   :  { %6085 = vmatpush3.bf16.msra.mxu1 %v6183_v60  ;;  %6064 = vmatprep.subr.bf16.mxu0 %v6184_v34 }
 0x324   :  { %6086 = vmatprep.subr.bf16.mxu1 %v6185_v7  ;;  %v4679_v54 = vrot.slane %v4674_v9, %v6502_v30 }
 0x326   :  { %6065 = vmatpush3.bf16.msra.mxu0 %v6186_v37  ;;  %v6215_v37 = vld [vmem:[#allocation11 + $0x1d0] sm:$0xff]  }
 0x327   :  { %6087 = vmatpush3.bf16.msra.mxu1 %v6187_v33  ;;  %6094 = vmatprep.subr.bf16.mxu0 %v6188_v18  ;;  %v6216_v18 = vld [vmem:[#allocation11 + $0x190] sm:$0xff]  }
 0x328   :  { %6116 = vmatprep.subr.bf16.mxu1 %v6205_v6 }
 0x329   :  { %5255 = vmatmul.mubr.bf16.vlgmr.msra.gmra.mxu0 %v4695_v48 }
 0x32a   :  { %5296 = vmatmul.mubr.bf16.vlgmr.msra.gmra.mxu1 %v4697_v29  ;;  %6095 = vmatpush3.bf16.msra.mxu0 %v6189_v43  ;;  %v6217_v29 = vld [vmem:[#allocation11 + $0x1c8] sm:$0xff]  }
 0x32b   :  { %6096 = vmatprep.subr.bf16.mxu0 %v6190_v44  ;;  %6117 = vmatpush3.bf16.msra.mxu1 %v6206_v12  ;;  %v4672_v12 = vrot.slane %v4667_v15, %v6502_v30 }
 0x32c   :  { %6118 = vmatprep.subr.bf16.mxu1 %v6207_v51 }
 0x32e   :  { %6097 = vmatpush3.bf16.msra.mxu0 %v6191_v62  ;;  %v6218_v62 = vld [vmem:[#allocation11 + $0x188] sm:$0xff]  }
 0x32f   :  { %6098 = vmatprep.subr.bf16.mxu0 %v6192_v57  ;;  %6119 = vmatpush3.bf16.msra.mxu1 %v6208_v1 }
 0x330   :  { %6120 = vmatprep.subr.bf16.mxu1 %v6209_v17  ;;  %v6219_v17 = vld [vmem:[#allocation11 + $0x1c0] sm:$0xff]  }
 0x332   :  { %6099 = vmatpush3.bf16.msra.mxu0 %v6193_v23  ;;  %v6220_v23 = vld [vmem:[#allocation11 + $0x180] sm:$0xff]  }
 0x333   :  { %6100 = vmatprep.subr.bf16.mxu0 %v6194_v8  ;;  %6121 = vmatpush3.bf16.msra.mxu1 %v6210_v13 }
 0x334   :  { %6122 = vmatprep.subr.bf16.mxu1 %v6211_v14 }
 0x336   :  { %6101 = vmatpush3.bf16.msra.mxu0 %v6195_v35 }
 0x337   :  { %6102 = vmatprep.subr.bf16.mxu0 %v6196_v56  ;;  %6123 = vmatpush3.bf16.msra.mxu1 %v6212_v2 }
 0x338   :  { %6124 = vmatprep.subr.bf16.mxu1 %v6213_v24 }
 0x33a   :  { %6103 = vmatpush3.bf16.msra.mxu0 %v6197_v58 }
 0x33b   :  { %6104 = vmatprep.subr.bf16.mxu0 %v6199_v63  ;;  %6125 = vmatpush3.bf16.msra.mxu1 %v6214_v52 }
 0x33c   :  { %6126 = vmatprep.subr.bf16.mxu1 %v6215_v37 }
 0x33e   :  { %6105 = vmatpush3.bf16.msra.mxu0 %v6200_v3 }
 0x33f   :  { %6106 = vmatprep.subr.bf16.mxu0 %v6201_v11  ;;  %6127 = vmatpush3.bf16.msra.mxu1 %v6216_v18 }
 0x340   :  { %6128 = vmatprep.subr.bf16.mxu1 %v6217_v29 }
 0x342   :  { %6107 = vmatpush3.bf16.msra.mxu0 %v6202_v47 }
 0x343   :  { %6108 = vmatprep.subr.bf16.mxu0 %v6203_v50  ;;  %6129 = vmatpush3.bf16.msra.mxu1 %v6218_v62 }
 0x344   :  { %6130 = vmatprep.subr.bf16.mxu1 %v6219_v17 }
 0x346   :  { %6109 = vmatpush3.bf16.msra.mxu0 %v6204_v21 }
 0x347   :  { %6131 = vmatpush3.bf16.msra.mxu1 %v6220_v23 }
 0x349   :  { %v4348_v40 = vpop.f32.mrf.mxu0 }
 0x34a   :  { %v4391_v59 = vpop.f32.mrf.mxu1  ;;  %v4349_v31 = vadd.f32 %v4348_v40, %v4306_v41 }
 0x34b   :  { %v4350_v25 = vpop.f32.mrf.mxu0 }
 0x34c   :  { %v4393_v28 = vpop.f32.mrf.mxu1  ;;  %v4351_v60 = vadd.f32 %v4350_v25, %v4308_v61  ;;  %v4392_v38 = vadd.f32 %v4391_v59, %v4349_v31  ;;  %v4681_v59 = vpack.i.b16 %v4630_v19, %v4630_v19 }
 0x34d   :  { %v4352_v42 = vpop.f32.mrf.mxu0 }
 0x34e   :  { %v4353_v34 = vadd.f32 %v4352_v42, %v4310_v45  ;;  %v4395_v10 = vpop.f32.mrf.mxu1  ;;  %v4394_v43 = vadd.f32 %v4393_v28, %v4351_v60  ;;  %v4686_v42 = vrot.slane %v4681_v59, %v6502_v30 }
 0x34f   :  { %v4354_v7 = vpop.f32.mrf.mxu0 }
 0x350   :  { %v4396_v20 = vadd.f32 %v4395_v10, %v4353_v34  ;;  %v4355_v33 = vadd.f32 %v4354_v7, %v4312_v32  ;;  %v4397_v6 = vpop.f32.mrf.mxu1 }
 0x352   :  { %v4576_v48 = vpack.c.bf16 %v4396_v20, %v4392_v38  ;;  %v4398_v44 = vadd.f32 %v4397_v6, %v4355_v33 }
 0x354   :  { %v4577_v51 = vpack.c.bf16 %v4398_v44, %v4394_v43  ;;  %v4691_v57 = vadd.bf16 %v4665_v39, %v4576_v48  ;;  %v5985_v43 = vld [vmem:[#allocation13] ss:$0 sm:$0xff] }
 0x356   :  { %v4692_v1 = vadd.bf16 %v4672_v12, %v4577_v51  ;;  %v4699_v13 = vmax.bf16 %v6402_v0, %v4691_v57 }
 0x358   :  { %v4700_v8 = vmax.bf16 %v6402_v0, %v4692_v1 }
 0x35a   :  { %5336 = vmatprep.mubr.bf16.mxu0 %v4700_v8 }
 0x35b   :  { %5337 = vmatmul.mubr.bf16.vlgmr.msra.gmra.mxu0 %v4699_v13 }
 0x389   :  { %v4434_v14 = vpop.f32.mrf.mxu0 }
 0x38a   :  { %v4477_v35 = vpop.f32.mrf.mxu1 }
 0x38b   :  { %v4436_v56 = vpop.f32.mrf.mxu0  ;;  %v4478_v27 = vadd.f32 %v4477_v35, %v4434_v14 }
 0x38c   :  { %v4479_v2 = vpop.f32.mrf.mxu1 }
 0x38d   :  { %v4438_v58 = vpop.f32.mrf.mxu0  ;;  %v4480_v16 = vadd.f32 %v4479_v2, %v4436_v56 }
 0x38e   :  { %v4481_v63 = vpop.f32.mrf.mxu1 }
 0x38f   :  { %v4440_v3 = vpop.f32.mrf.mxu0  ;;  %v4482_v26 = vadd.f32 %v4481_v63, %v4438_v58 }
 0x390   :  { %v4483_v55 = vpop.f32.mrf.mxu1 }
 0x391   :  { %v4484_v22 = vadd.f32 %v4483_v55, %v4440_v3 }
 0x3c9   :  { %v4520_v11 = vpop.f32.mrf.mxu0 }
 0x3ca   :  { %v4563_v47 = vpop.f32.mrf.mxu1  ;;  %v4521_v21 = vadd.f32 %v4520_v11, %v4478_v27 }
 0x3cb   :  { %v4522_v50 = vpop.f32.mrf.mxu0 }
 0x3cc   :  { %v4565_v4 = vpop.f32.mrf.mxu1  ;;  %v4523_v53 = vadd.f32 %v4522_v50, %v4480_v16  ;;  %v4564_v24 = vadd.f32 %v4563_v47, %v4521_v21 }
 0x3cd   :  { %v4524_v46 = vpop.f32.mrf.mxu0 }
 0x3ce   :  { %v4525_v40 = vadd.f32 %v4524_v46, %v4482_v26  ;;  %v4567_v41 = vpop.f32.mrf.mxu1  ;;  %v4566_v36 = vadd.f32 %v4565_v4, %v4523_v53 }
 0x3cf   :  { %v4526_v25 = vpop.f32.mrf.mxu0 }
 0x3d0   :  { %v4568_v61 = vadd.f32 %v4567_v41, %v4525_v40  ;;  %v4527_v45 = vadd.f32 %v4526_v25, %v4484_v22  ;;  %v4569_v31 = vpop.f32.mrf.mxu1 }
 0x3d2   :  { %v4578_v28 = vpack.c.bf16 %v4568_v61, %v4564_v24  ;;  %v4570_v52 = vadd.f32 %v4569_v31, %v4527_v45 }
 0x3d4   :  { %v4579_v5 = vpack.c.bf16 %v4570_v52, %v4566_v36  ;;  %v4693_v32 = vadd.bf16 %v4679_v54, %v4578_v28 }
 0x3d6   :  { %v4694_v60 = vadd.bf16 %v4686_v42, %v4579_v5  ;;  %v4701_v10 = vmax.bf16 %v6402_v0, %v4693_v32 }
 0x3d8   :  { %v4702_v34 = vmax.bf16 %v6402_v0, %v4694_v60 }
 0x3da   :  { %5377 = vmatprep.mubr.bf16.mxu1 %v4702_v34 }
 0x3db   :  { %5378 = vmatmul.mubr.bf16.vlgmr.msra.gmra.mxu1 %v4701_v10 }
 0x3e9   :  { %v6066_v15 = vpop.f32.mrf.mxu0 }
 0x3ea   :  { %v6088_v38 = vpop.f32.mrf.mxu1 }
 0x3eb   :  { %v6067_v7 = vpop.f32.mrf.mxu0 }
 0x3ec   :  { %v6089_v18 = vpop.f32.mrf.mxu1  ;;  %v6068_v6 = vadd.f32 %v6067_v7, %v6066_v15 }
 0x3ed   :  { %v6069_v37 = vpop.f32.mrf.mxu0  ;;  %v6090_v51 = vadd.f32 %v6089_v18, %v6088_v38 }
 0x3ee   :  { %v6091_v30 = vpop.f32.mrf.mxu1  ;;  %v5257_v44 = vadd.f32 %v6068_v6, %v5985_v43 }
 0x3ef   :  { %v6070_v20 = vpop.f32.mrf.mxu0 }
 0x3f0   :  { %v6071_v12 = vadd.f32 %v6070_v20, %v6069_v37  ;;  %v6092_v29 = vpop.f32.mrf.mxu1  ;;  %v5298_v1 = vadd.f32 %v6090_v51, %v5257_v44 }
 0x3f1   :  { %v6093_v8 = vadd.f32 %v6092_v29, %v6091_v30 }
 0x3f2   :  { %v5260_v17 = vadd.f32 %v6071_v12, %v5985_v43 }
 0x3f4   :  { %v5301_v2 = vadd.f32 %v6093_v8, %v5260_v17 }
 0x41b   :  { %v6110_v33 = vpop.f32.mrf.mxu0 }
 0x41d   :  { %v6111_v39 = vpop.f32.mrf.mxu0 }
 0x41e   :  { %v6112_v62 = vadd.f32 %v6111_v39, %v6110_v33 }
 0x41f   :  { %v6113_v48 = vpop.f32.mrf.mxu0 }
 0x420   :  { %v5339_v13 = vadd.f32 %v6112_v62, %v5298_v1 }
 0x421   :  { %v6114_v0 = vpop.f32.mrf.mxu0 }
 0x422   :  { %v6115_v14 = vadd.f32 %v6114_v0, %v6113_v48 }
 0x424   :  { %v5342_v3 = vadd.f32 %v6115_v14, %v5301_v2 }
 0x49b   :  { %v6132_v57 = vpop.f32.mrf.mxu1 }
 0x49d   :  { %v6133_v23 = vpop.f32.mrf.mxu1 }
 0x49e   :  { %v6134_v35 = vadd.f32 %v6133_v23, %v6132_v57 }
 0x49f   :  { %v6135_v56 = vpop.f32.mrf.mxu1 }
 0x4a0   :  { %v5380_v58 = vadd.f32 %v6134_v35, %v5339_v13 }
 0x4a1   :  { %v6136_v63 = vpop.f32.mrf.mxu1 }
 0x4a2   :  { %5386 = vst [vmem:[#allocation14] sm:$0xff] %v5380_v58  ;;  %v6137_v55 = vadd.f32 %v6136_v63, %v6135_v56 }
 0x4a4   :  { %v5383_v11 = vadd.f32 %v6137_v55, %v5342_v3 }
 0x4a6   :  { %5387 = vst [vmem:[#allocation14 + $0x8] sm:$0xff] %v5383_v11 }
 0x4a7   :  { %6372 = shalt.err (!%p6369_p11)
}
 0x4a8   :  { %s6405_s14 = smov 128   ;;  %s6406_s15 = smov 8  }
 0x4a9   :  { %5399 = dma.vmem_to_hbm [thread:$0]  %s5394_s6, 256, %s6716_s7, [#allocation4], %s6405_s14, %s6405_s14, %s6406_s15  }
 0x4aa   :  { %6389 = dma.done.wait [#allocation4], 256  }
 0x4ab   :  { %6390 = vsyncadd [#allocation4], 4294967040 }
 0x4ac   :  { %5403 = vsyncpa [#allocation3], 1 }
 0x4ad   :  { %5404 = vsyncpa [#allocation6], 1 }
 0x4ae   :  { %5405 = vsyncpa [#allocation9], 1 }
 0x4af   :  { %5406 = vsyncpa [#allocation12], 1 }
 0x4b0   :  { %5407 = vsyncpa [#allocation4], 1 }

</bundles_post_ra>
